<compile_context>
chip_gen: v7x
topology: tpu7x:2x2x1
jax: 0.10.0
libtpu: 0.0.40
codegen_flags: <defaults>
</compile_context>

<pallas_src>
import functools

import jax
import jax.numpy as jnp
from jax.experimental import pallas as pl
from jax.experimental.pallas import tpu as pltpu

BN_EPS = 1e-5
LRELU_SLOPE = 0.2
KW = 4          # conv kernel size
PADW = 1        # conv padding

LANE = 128
SUBLANE = 8
TILE_M = 256                      # rows of the im2col slab per grid step
VMEM_LIMIT = 32 * 1024 * 1024     # explicit scoped-VMEM budget (safe v5e..v7x)


def _round_up(x, m):
    return ((x + m - 1) // m) * m


# ---------------------------------------------------------------------------
# Pallas kernels
# ---------------------------------------------------------------------------
def _conv_bias_act_kernel(p_ref, w_ref, aux_ref, o_ref, *, use_lrelu):
    """Fused conv layer without BN: bf16 matmul (MXU, f32 acc) + bias (+LReLU)."""
    x = jnp.dot(p_ref[...], w_ref[...], preferred_element_type=jnp.float32)
    x = x + aux_ref[0:1, :]                     # bias row of packed aux
    if use_lrelu:
        x = jnp.where(x >= 0, x, LRELU_SLOPE * x)
    o_ref[...] = x


def _conv_stats_kernel(p_ref, w_ref, o_ref, sum_ref, sq_ref):
    """BN pass 1: tiled matmul; accumulate per-channel sum / sum-of-squares
    across the M grid axis (accumulator outputs, axis marked "arbitrary")."""
    x = jnp.dot(p_ref[...], w_ref[...], preferred_element_type=jnp.float32)
    o_ref[...] = x

    @pl.when(pl.program_id(0) == 0)
    def _():
        sum_ref[...] = jnp.zeros_like(sum_ref)
        sq_ref[...] = jnp.zeros_like(sq_ref)

    sum_ref[...] += jnp.sum(x, axis=0, keepdims=True)
    sq_ref[...] += jnp.sum(x * x, axis=0, keepdims=True)


def _bn_act_kernel(x_ref, sum_ref, sq_ref, aux_ref, o_ref, *, inv_m, use_lrelu):
    """BN pass 2: normalize with batch statistics, scale/shift, LeakyReLU."""
    x = x_ref[...]
    mean = sum_ref[...] * inv_m
    var = jnp.maximum(sq_ref[...] * inv_m - mean * mean, 0.0)
    inv_std = jax.lax.rsqrt(var + BN_EPS)
    y = (x - mean) * inv_std * aux_ref[1:2, :] + aux_ref[2:3, :]  # gamma, beta
    if use_lrelu:
        y = jnp.where(y >= 0, y, LRELU_SLOPE * y)
    o_ref[...] = y


# ---------------------------------------------------------------------------
# Plain-JAX glue: im2col patch extraction (built in bf16 to halve HBM traffic)
# ---------------------------------------------------------------------------
def _im2col(x, kh, kw, stride, pad):
    # x: (N, H, W, C) -> (N*OH*OW, kh*kw*C); patch feature order is (kh, kw, C)
    n, h, w, c = x.shape
    xp = jnp.pad(x, ((0, 0), (pad, pad), (pad, pad), (0, 0)))
    oh = (h + 2 * pad - kh) // stride + 1
    ow = (w + 2 * pad - kw) // stride + 1
    cols = []
    for i in range(kh):
        for j in range(kw):
            cols.append(xp[:, i:i + stride * oh:stride, j:j + stride * ow:stride, :])
    patches = jnp.concatenate(cols, axis=-1)
    return patches.reshape(n * oh * ow, kh * kw * c), oh, ow


# ---------------------------------------------------------------------------
# One Conv2d(+BN+LeakyReLU) layer via tiled Pallas calls
# ---------------------------------------------------------------------------
def conv_layer(x_nhwc, layer, *, tile_m_max=TILE_M):
    w, b, g, beta = layer["w"], layer["b"], layer["g"], layer["beta"]
    stride, use_bn, use_lrelu = layer["stride"], layer["use_bn"], layer["use_lrelu"]
    kh, kw, cin, cout = w.shape
    n = x_nhwc.shape[0]
    c_pad = _round_up(cout, LANE)     # lane-dense output channels

    # bf16 patches; pad rows to a multiple of the M tile with exact zeros
    # (zero rows contribute exactly 0 to the BN sum / sum-of-squares).
    patches, oh, ow = _im2col(x_nhwc.astype(jnp.bfloat16), kh, kw, stride, PADW)
    m, k = patches.shape
    tile_m = min(tile_m_max, _round_up(m, SUBLANE))
    m_pad = _round_up(m, tile_m)
    if m_pad != m:
        patches = jnp.pad(patches, ((0, m_pad - m), (0, 0)))
    grid_m = m_pad // tile_m

    # bf16 weights, zero-padded on Cout; packed f32 aux = [bias; gamma; beta]
    w2 = jnp.pad(w.reshape(kh * kw * cin, cout), ((0, 0), (0, c_pad - cout)))
    w2 = w2.astype(jnp.bfloat16)
    aux = jnp.zeros((SUBLANE, c_pad), jnp.float32)
    aux = aux.at[0, :cout].set(b).at[1, :cout].set(g).at[2, :cout].set(beta)

    cp_parallel = pltpu.CompilerParams(dimension_semantics=("parallel",),
                                       vmem_limit_bytes=VMEM_LIMIT)
    cp_arbitrary = pltpu.CompilerParams(dimension_semantics=("arbitrary",),
                                        vmem_limit_bytes=VMEM_LIMIT)

    p_spec = pl.BlockSpec((tile_m, k), lambda i: (i, 0))
    w_spec = pl.BlockSpec((k, c_pad), lambda i: (0, 0))
    aux_spec = pl.BlockSpec((SUBLANE, c_pad), lambda i: (0, 0))
    o_spec = pl.BlockSpec((tile_m, c_pad), lambda i: (i, 0))
    vec_spec = pl.BlockSpec((1, c_pad), lambda i: (0, 0))

    if not use_bn:
        kernel = functools.partial(_conv_bias_act_kernel, use_lrelu=use_lrelu)
        out = pl.pallas_call(
            kernel,
            out_shape=jax.ShapeDtypeStruct((m_pad, c_pad), jnp.float32),
            grid=(grid_m,),
            in_specs=[p_spec, w_spec, aux_spec],
            out_specs=o_spec,
            compiler_params=cp_parallel,
        )(patches, w2, aux)
    else:
        # Pass 1: matmul + per-channel sum / sumsq accumulation.
        conv, csum, csq = pl.pallas_call(
            _conv_stats_kernel,
            out_shape=(jax.ShapeDtypeStruct((m_pad, c_pad), jnp.float32),
                       jax.ShapeDtypeStruct((1, c_pad), jnp.float32),
                       jax.ShapeDtypeStruct((1, c_pad), jnp.float32)),
            grid=(grid_m,),
            in_specs=[p_spec, w_spec],
            out_specs=(o_spec, vec_spec, vec_spec),
            compiler_params=cp_arbitrary,
        )(patches, w2)
        # Pass 2: normalize with batch stats (real row count m) + LeakyReLU.
        kernel = functools.partial(_bn_act_kernel, inv_m=1.0 / float(m),
                                   use_lrelu=use_lrelu)
        out = pl.pallas_call(
            kernel,
            out_shape=jax.ShapeDtypeStruct((m_pad, c_pad), jnp.float32),
            grid=(grid_m,),
            in_specs=[o_spec, vec_spec, vec_spec, aux_spec],
            out_specs=o_spec,
            compiler_params=cp_parallel,
        )(conv, csum, csq, aux)

    return out[:m, :cout].reshape(n, oh, ow, cout)


# ---------------------------------------------------------------------------
# Parameter init (deterministic, mirrors the module's __init__ structure)
# ---------------------------------------------------------------------------
def init_params(key, input_nc=3, ndf=16, n_layers=3):
    def conv_params(k, cin, cout, with_bias):
        k1, k2 = jax.random.split(k)
        w = 0.05 * jax.random.normal(k1, (KW, KW, cin, cout), jnp.float32)
        b = (0.05 * jax.random.normal(k2, (cout,), jnp.float32)
             if with_bias else jnp.zeros((cout,), jnp.float32))
        return w, b

    def bn_params(k, cout):
        kg, kb = jax.random.split(k)
        g = 1.0 + 0.1 * jax.random.normal(kg, (cout,), jnp.float32)
        beta = 0.1 * jax.random.normal(kb, (cout,), jnp.float32)
        return g, beta

    keys = jax.random.split(key, 2 * (n_layers + 2))
    layers = []

    # head: Conv(input_nc -> ndf, stride 2, bias=True) + LeakyReLU
    w, b = conv_params(keys[0], input_nc, ndf, with_bias=True)
    layers.append(dict(w=w, b=b, g=jnp.ones((ndf,), jnp.float32),
                       beta=jnp.zeros((ndf,), jnp.float32),
                       stride=2, use_bn=False, use_lrelu=True))

    # body: Conv(stride 2, bias=False) + BatchNorm2d + LeakyReLU
    nf_mult = 1
    for n in range(1, n_layers):
        nf_mult_prev = nf_mult
        nf_mult = min(2 ** n, 8)
        cin, cout = ndf * nf_mult_prev, ndf * nf_mult
        w, b = conv_params(keys[2 * n], cin, cout, with_bias=False)
        g, beta = bn_params(keys[2 * n + 1], cout)
        layers.append(dict(w=w, b=b, g=g, beta=beta,
                           stride=2, use_bn=True, use_lrelu=True))

    # before_last: Conv(stride 1, bias=False) + BatchNorm2d + LeakyReLU
    nf_mult_prev = nf_mult
    nf_mult = min(2 ** n_layers, 8)
    cin, cout = ndf * nf_mult_prev, ndf * nf_mult
    w, b = conv_params(keys[2 * n_layers], cin, cout, with_bias=False)
    g, beta = bn_params(keys[2 * n_layers + 1], cout)
    layers.append(dict(w=w, b=b, g=g, beta=beta,
                       stride=1, use_bn=True, use_lrelu=True))

    # final: Conv(ndf*nf_mult -> 1, stride 1, bias=True), no norm / activation
    w, b = conv_params(keys[2 * n_layers + 2], cout, 1, with_bias=True)
    layers.append(dict(w=w, b=b, g=jnp.ones((1,), jnp.float32),
                       beta=jnp.zeros((1,), jnp.float32),
                       stride=1, use_bn=False, use_lrelu=False))
    return layers, n_layers


# ---------------------------------------------------------------------------
# Forward pass (mirrors NLayerDiscriminator.forward)
# ---------------------------------------------------------------------------
def nlayer_discriminator_forward(x_nchw, layers, n_layers):
    x = jnp.transpose(x_nchw, (0, 2, 3, 1))   # NCHW -> NHWC
    features = []
    f = conv_layer(x, layers[0])              # head
    features.append(f)
    for i in range(n_layers - 1):             # body
        f = conv_layer(f, layers[1 + i])
        features.append(f)
    before_last = conv_layer(f, layers[n_layers])
    final_logits = conv_layer(before_last, layers[n_layers + 1])
    # back to NCHW to match PyTorch outputs
    features = [jnp.transpose(t, (0, 3, 1, 2)) for t in features]
    final_logits = jnp.transpose(final_logits, (0, 3, 1, 2))
    return features, final_logits


if __name__ == "__main__":
    key = jax.random.PRNGKey(0)
    k_param, k_x = jax.random.split(key)

    # small shapes consistent with the module (spatial 32 so the 4x4 tail convs
    # are valid); batch=2, input_nc=3, ndf=16, n_layers=3
    input_nc, ndf, n_layers = 3, 16, 3
    x = jax.random.normal(k_x, (2, input_nc, 32, 32), jnp.float32)  # NCHW

    layers, n_layers = init_params(k_param, input_nc=input_nc, ndf=ndf,
                                   n_layers=n_layers)

    forward = jax.jit(lambda inp: nlayer_discriminator_forward(inp, layers,
                                                               n_layers))
    features, final_logits = forward(x)
    jax.block_until_ready(final_logits)
    for t in features:
        jax.block_until_ready(t)

    # sanity on shapes implied by the module (stride-2 head/body, stride-1 tail)
    assert features[0].shape == (2, ndf, 16, 16)
    assert features[1].shape == (2, ndf * 2, 8, 8)
    assert features[2].shape == (2, ndf * 4, 4, 4)
    assert final_logits.shape == (2, 1, 2, 2)
    assert all(bool(jnp.all(jnp.isfinite(t))) for t in features)
    assert bool(jnp.all(jnp.isfinite(final_logits)))

    print("KERNEL_OK")
</pallas_src>

<mosaic_0001>
module attributes {stable_mosaic.version = 11 : i64} {
  func.func @_conv_bias_act_kernel(%arg0: i32, %arg1: memref<256x48xbf16, #tpu.memory_space<vmem>>, %arg2: memref<48x128xbf16, #tpu.memory_space<vmem>>, %arg3: memref<8x128xf32, #tpu.memory_space<vmem>>, %arg4: memref<256x128xf32, #tpu.memory_space<vmem>>) attributes {dimension_semantics = [#tpu.dimension_semantics<parallel>], iteration_bounds = array<i64: 2>, scalar_prefetch = 0 : i64, scratch_operands = 0 : i64, tpu.core_type = #tpu.core_type<tc>, window_params = [{transform_indices = @transform_0, window_bounds = array<i64: 256, 48>}, {pipeline_mode = #tpu.pipeline_mode<synchronous>, transform_indices = @transform_1, window_bounds = array<i64: 48, 128>}, {pipeline_mode = #tpu.pipeline_mode<synchronous>, transform_indices = @transform_2, window_bounds = array<i64: 8, 128>}, {transform_indices = @transform_3, window_bounds = array<i64: 256, 128>}]} {
    %c0 = arith.constant 0 : index
    %c0_0 = arith.constant 0 : index
    %0 = vector.load %arg1[%c0, %c0_0] : memref<256x48xbf16, #tpu.memory_space<vmem>>, vector<256x48xbf16>
    %c0_1 = arith.constant 0 : index
    %c0_2 = arith.constant 0 : index
    %1 = vector.load %arg2[%c0_1, %c0_2] : memref<48x128xbf16, #tpu.memory_space<vmem>>, vector<48x128xbf16>
    %cst = arith.constant dense<0.000000e+00> : vector<256x128xf32>
    %2 = tpu.matmul %0, %1, %cst {dimension_numbers = #tpu.dot_dimension_numbers<[1], [0], [0], [1], [0, 0, 1, 1], [], []>} : vector<256x48xbf16>, vector<48x128xbf16>, vector<256x128xf32> -> vector<256x128xf32>
    %c0_3 = arith.constant 0 : index
    %c0_4 = arith.constant 0 : index
    %3 = vector.load %arg3[%c0_3, %c0_4] : memref<8x128xf32, #tpu.memory_space<vmem>>, vector<1x128xf32>
    %4 = vector.broadcast %3 : vector<1x128xf32> to vector<256x128xf32>
    %5 = arith.addf %2, %4 : vector<256x128xf32>
    %cst_5 = arith.constant 0.000000e+00 : f32
    %6 = vector.broadcast %cst_5 : f32 to vector<256x128xf32>
    %7 = arith.cmpf oge, %5, %6 : vector<256x128xf32>
    %cst_6 = arith.constant 2.000000e-01 : f32
    %8 = vector.broadcast %cst_6 : f32 to vector<256x128xf32>
    %9 = arith.mulf %8, %5 : vector<256x128xf32>
    %10 = arith.select %7, %5, %9 : vector<256x128xi1>, vector<256x128xf32>
    %c0_7 = arith.constant 0 : index
    %c0_8 = arith.constant 0 : index
    %11 = vector.load %arg4[%c0_7, %c0_8] : memref<256x128xf32, #tpu.memory_space<vmem>>, vector<256x128xf32>
    tpu.vector_store %arg4[%c0_7, %c0_8], %10 {strides = array<i32>} : memref<256x128xf32, #tpu.memory_space<vmem>>, vector<256x128xf32>,
    return
  }
  func.func @transform_0(%arg0: i32) -> (i32, i32) {
    %c0_i32 = arith.constant 0 : i32
    %c0_i32_0 = arith.constant 0 : i32
    return %arg0, %c0_i32 : i32, i32
  }
  func.func @transform_1(%arg0: i32) -> (i32, i32) {
    %c0_i32 = arith.constant 0 : i32
    %c0_i32_0 = arith.constant 0 : i32
    %c0_i32_1 = arith.constant 0 : i32
    return %c0_i32, %c0_i32_0 : i32, i32
  }
  func.func @transform_2(%arg0: i32) -> (i32, i32) {
    %c0_i32 = arith.constant 0 : i32
    %c0_i32_0 = arith.constant 0 : i32
    %c0_i32_1 = arith.constant 0 : i32
    return %c0_i32, %c0_i32_0 : i32, i32
  }
  func.func @transform_3(%arg0: i32) -> (i32, i32) {
    %c0_i32 = arith.constant 0 : i32
    %c0_i32_0 = arith.constant 0 : i32
    return %arg0, %c0_i32 : i32, i32
  }
}

module attributes {stable_mosaic.version = 11 : i64} {
  func.func @_conv_stats_kernel(%arg0: i32, %arg1: memref<128x256xbf16, #tpu.memory_space<vmem>>, %arg2: memref<256x128xbf16, #tpu.memory_space<vmem>>, %arg3: memref<128x128xf32, #tpu.memory_space<vmem>>, %arg4: memref<1x128xf32, #tpu.memory_space<vmem>>, %arg5: memref<1x128xf32, #tpu.memory_space<vmem>>) attributes {dimension_semantics = [#tpu.dimension_semantics<arbitrary>], iteration_bounds = array<i64: 1>, scalar_prefetch = 0 : i64, scratch_operands = 0 : i64, tpu.core_type = #tpu.core_type<tc>, window_params = [{transform_indices = @transform_0, window_bounds = array<i64: 128, 256>}, {pipeline_mode = #tpu.pipeline_mode<synchronous>, transform_indices = @transform_1, window_bounds = array<i64: 256, 128>}, {transform_indices = @transform_2, window_bounds = array<i64: 128, 128>}, {pipeline_mode = #tpu.pipeline_mode<synchronous>, transform_indices = @transform_3, window_bounds = array<i64: 1, 128>}, {pipeline_mode = #tpu.pipeline_mode<synchronous>, transform_indices = @transform_4, window_bounds = array<i64: 1, 128>}]} {
    %c0 = arith.constant 0 : index
    %c0_0 = arith.constant 0 : index
    %0 = vector.load %arg1[%c0, %c0_0] : memref<128x256xbf16, #tpu.memory_space<vmem>>, vector<128x256xbf16>
    %c0_1 = arith.constant 0 : index
    %c0_2 = arith.constant 0 : index
    %1 = vector.load %arg2[%c0_1, %c0_2] : memref<256x128xbf16, #tpu.memory_space<vmem>>, vector<256x128xbf16>
    %cst = arith.constant dense<0.000000e+00> : vector<128x128xf32>
    %2 = tpu.matmul %0, %1, %cst {dimension_numbers = #tpu.dot_dimension_numbers<[1], [0], [0], [1], [0, 0, 1, 1], [], []>} : vector<128x256xbf16>, vector<256x128xbf16>, vector<128x128xf32> -> vector<128x128xf32>
    %c0_3 = arith.constant 0 : index
    %c0_4 = arith.constant 0 : index
    %3 = vector.load %arg3[%c0_3, %c0_4] : memref<128x128xf32, #tpu.memory_space<vmem>>, vector<128x128xf32>
    tpu.vector_store %arg3[%c0_3, %c0_4], %2 {strides = array<i32>} : memref<128x128xf32, #tpu.memory_space<vmem>>, vector<128x128xf32>,
    %c0_i32 = arith.constant 0 : i32
    %4 = arith.cmpi eq, %arg0, %c0_i32 : i32
    %5 = arith.extui %4 : i1 to i32
    %c0_i32_5 = arith.constant 0 : i32
    %6 = arith.cmpi ne, %5, %c0_i32_5 : i32
    scf.if %6 {
      %cst_16 = arith.constant 0.000000e+00 : f32
      %18 = vector.broadcast %cst_16 : f32 to vector<1x128xf32>
      %c0_17 = arith.constant 0 : index
      %c0_18 = arith.constant 0 : index
      %19 = vector.load %arg4[%c0_17, %c0_18] : memref<1x128xf32, #tpu.memory_space<vmem>>, vector<1x128xf32>
      tpu.vector_store %arg4[%c0_17, %c0_18], %18 {strides = array<i32>} : memref<1x128xf32, #tpu.memory_space<vmem>>, vector<1x128xf32>,
      %cst_19 = arith.constant 0.000000e+00 : f32
      %20 = vector.broadcast %cst_19 : f32 to vector<1x128xf32>
      %c0_20 = arith.constant 0 : index
      %c0_21 = arith.constant 0 : index
      %21 = vector.load %arg5[%c0_20, %c0_21] : memref<1x128xf32, #tpu.memory_space<vmem>>, vector<1x128xf32>
      tpu.vector_store %arg5[%c0_20, %c0_21], %20 {strides = array<i32>} : memref<1x128xf32, #tpu.memory_space<vmem>>, vector<1x128xf32>,
    } else {
    }
    %c0_6 = arith.constant 0 : index
    %c0_7 = arith.constant 0 : index
    %7 = vector.load %arg4[%c0_6, %c0_7] : memref<1x128xf32, #tpu.memory_space<vmem>>, vector<1x128xf32>
    %cst_8 = arith.constant dense<0.000000e+00> : vector<128xf32>
    %8 = vector.multi_reduction <add>, %2, %cst_8 [0] : vector<128x128xf32> to vector<128xf32>
    %9 = vector.shape_cast %8 : vector<128xf32> to vector<1x128xf32>
    %10 = arith.addf %7, %9 : vector<1x128xf32>
    %c0_9 = arith.constant 0 : index
    %c0_10 = arith.constant 0 : index
    %11 = vector.load %arg4[%c0_9, %c0_10] : memref<1x128xf32, #tpu.memory_space<vmem>>, vector<1x128xf32>
    tpu.vector_store %arg4[%c0_9, %c0_10], %10 {strides = array<i32>} : memref<1x128xf32, #tpu.memory_space<vmem>>, vector<1x128xf32>,
    %c0_11 = arith.constant 0 : index
    %c0_12 = arith.constant 0 : index
    %12 = vector.load %arg5[%c0_11, %c0_12] : memref<1x128xf32, #tpu.memory_space<vmem>>, vector<1x128xf32>
    %13 = arith.mulf %2, %2 : vector<128x128xf32>
    %cst_13 = arith.constant dense<0.000000e+00> : vector<128xf32>
    %14 = vector.multi_reduction <add>, %13, %cst_13 [0] : vector<128x128xf32> to vector<128xf32>
    %15 = vector.shape_cast %14 : vector<128xf32> to vector<1x128xf32>
    %16 = arith.addf %12, %15 : vector<1x128xf32>
    %c0_14 = arith.constant 0 : index
    %c0_15 = arith.constant 0 : index
    %17 = vector.load %arg5[%c0_14, %c0_15] : memref<1x128xf32, #tpu.memory_space<vmem>>, vector<1x128xf32>
    tpu.vector_store %arg5[%c0_14, %c0_15], %16 {strides = array<i32>} : memref<1x128xf32, #tpu.memory_space<vmem>>, vector<1x128xf32>,
    return
  }
  func.func @transform_0(%arg0: i32) -> (i32, i32) {
    %c0_i32 = arith.constant 0 : i32
    %c0_i32_0 = arith.constant 0 : i32
    return %arg0, %c0_i32 : i32, i32
  }
  func.func @transform_1(%arg0: i32) -> (i32, i32) {
    %c0_i32 = arith.constant 0 : i32
    %c0_i32_0 = arith.constant 0 : i32
    %c0_i32_1 = arith.constant 0 : i32
    return %c0_i32, %c0_i32_0 : i32, i32
  }
  func.func @transform_2(%arg0: i32) -> (i32, i32) {
    %c0_i32 = arith.constant 0 : i32
    %c0_i32_0 = arith.constant 0 : i32
    return %arg0, %c0_i32 : i32, i32
  }
  func.func @transform_3(%arg0: i32) -> (i32, i32) {
    %c0_i32 = arith.constant 0 : i32
    %c0_i32_0 = arith.constant 0 : i32
    %c0_i32_1 = arith.constant 0 : i32
    return %c0_i32, %c0_i32_0 : i32, i32
  }
  func.func @transform_4(%arg0: i32) -> (i32, i32) {
    %c0_i32 = arith.constant 0 : i32
    %c0_i32_0 = arith.constant 0 : i32
    %c0_i32_1 = arith.constant 0 : i32
    return %c0_i32, %c0_i32_0 : i32, i32
  }
}

module attributes {stable_mosaic.version = 11 : i64} {
  func.func @_bn_act_kernel(%arg0: i32, %arg1: memref<128x128xf32, #tpu.memory_space<vmem>>, %arg2: memref<1x128xf32, #tpu.memory_space<vmem>>, %arg3: memref<1x128xf32, #tpu.memory_space<vmem>>, %arg4: memref<8x128xf32, #tpu.memory_space<vmem>>, %arg5: memref<128x128xf32, #tpu.memory_space<vmem>>) attributes {dimension_semantics = [#tpu.dimension_semantics<parallel>], iteration_bounds = array<i64: 1>, scalar_prefetch = 0 : i64, scratch_operands = 0 : i64, tpu.core_type = #tpu.core_type<tc>, window_params = [{transform_indices = @transform_0, window_bounds = array<i64: 128, 128>}, {pipeline_mode = #tpu.pipeline_mode<synchronous>, transform_indices = @transform_1, window_bounds = array<i64: 1, 128>}, {pipeline_mode = #tpu.pipeline_mode<synchronous>, transform_indices = @transform_2, window_bounds = array<i64: 1, 128>}, {pipeline_mode = #tpu.pipeline_mode<synchronous>, transform_indices = @transform_3, window_bounds = array<i64: 8, 128>}, {transform_indices = @transform_4, window_bounds = array<i64: 128, 128>}]} {
    %c0 = arith.constant 0 : index
    %c0_0 = arith.constant 0 : index
    %0 = vector.load %arg1[%c0, %c0_0] : memref<128x128xf32, #tpu.memory_space<vmem>>, vector<128x128xf32>
    %c0_1 = arith.constant 0 : index
    %c0_2 = arith.constant 0 : index
    %1 = vector.load %arg2[%c0_1, %c0_2] : memref<1x128xf32, #tpu.memory_space<vmem>>, vector<1x128xf32>
    %cst = arith.constant 7.812500e-03 : f32
    %2 = vector.broadcast %cst : f32 to vector<1x128xf32>
    %3 = arith.mulf %1, %2 : vector<1x128xf32>
    %c0_3 = arith.constant 0 : index
    %c0_4 = arith.constant 0 : index
    %4 = vector.load %arg3[%c0_3, %c0_4] : memref<1x128xf32, #tpu.memory_space<vmem>>, vector<1x128xf32>
    %cst_5 = arith.constant 7.812500e-03 : f32
    %5 = vector.broadcast %cst_5 : f32 to vector<1x128xf32>
    %6 = arith.mulf %4, %5 : vector<1x128xf32>
    %7 = arith.mulf %3, %3 : vector<1x128xf32>
    %8 = arith.subf %6, %7 : vector<1x128xf32>
    %cst_6 = arith.constant 0.000000e+00 : f32
    %9 = vector.broadcast %cst_6 : f32 to vector<1x128xf32>
    %10 = arith.maximumf %8, %9 : vector<1x128xf32>
    %cst_7 = arith.constant 9.99999974E-6 : f32
    %11 = vector.broadcast %cst_7 : f32 to vector<1x128xf32>
    %12 = arith.addf %10, %11 : vector<1x128xf32>
    %13 = math.rsqrt %12 : vector<1x128xf32>
    %14 = vector.broadcast %3 : vector<1x128xf32> to vector<128x128xf32>
    %15 = arith.subf %0, %14 : vector<128x128xf32>
    %16 = vector.broadcast %13 : vector<1x128xf32> to vector<128x128xf32>
    %17 = arith.mulf %15, %16 : vector<128x128xf32>
    %c1 = arith.constant 1 : index
    %c0_8 = arith.constant 0 : index
    %18 = vector.load %arg4[%c1, %c0_8] : memref<8x128xf32, #tpu.memory_space<vmem>>, vector<1x128xf32>
    %19 = vector.broadcast %18 : vector<1x128xf32> to vector<128x128xf32>
    %20 = arith.mulf %17, %19 : vector<128x128xf32>
    %c2 = arith.constant 2 : index
    %c0_9 = arith.constant 0 : index
    %21 = vector.load %arg4[%c2, %c0_9] : memref<8x128xf32, #tpu.memory_space<vmem>>, vector<1x128xf32>
    %22 = vector.broadcast %21 : vector<1x128xf32> to vector<128x128xf32>
    %23 = arith.addf %20, %22 : vector<128x128xf32>
    %cst_10 = arith.constant 0.000000e+00 : f32
    %24 = vector.broadcast %cst_10 : f32 to vector<128x128xf32>
    %25 = arith.cmpf oge, %23, %24 : vector<128x128xf32>
    %cst_11 = arith.constant 2.000000e-01 : f32
    %26 = vector.broadcast %cst_11 : f32 to vector<128x128xf32>
    %27 = arith.mulf %26, %23 : vector<128x128xf32>
    %28 = arith.select %25, %23, %27 : vector<128x128xi1>, vector<128x128xf32>
    %c0_12 = arith.constant 0 : index
    %c0_13 = arith.constant 0 : index
    %29 = vector.load %arg5[%c0_12, %c0_13] : memref<128x128xf32, #tpu.memory_space<vmem>>, vector<128x128xf32>
    tpu.vector_store %arg5[%c0_12, %c0_13], %28 {strides = array<i32>} : memref<128x128xf32, #tpu.memory_space<vmem>>, vector<128x128xf32>,
    return
  }
  func.func @transform_0(%arg0: i32) -> (i32, i32) {
    %c0_i32 = arith.constant 0 : i32
    %c0_i32_0 = arith.constant 0 : i32
    return %arg0, %c0_i32 : i32, i32
  }
  func.func @transform_1(%arg0: i32) -> (i32, i32) {
    %c0_i32 = arith.constant 0 : i32
    %c0_i32_0 = arith.constant 0 : i32
    %c0_i32_1 = arith.constant 0 : i32
    return %c0_i32, %c0_i32_0 : i32, i32
  }
  func.func @transform_2(%arg0: i32) -> (i32, i32) {
    %c0_i32 = arith.constant 0 : i32
    %c0_i32_0 = arith.constant 0 : i32
    %c0_i32_1 = arith.constant 0 : i32
    return %c0_i32, %c0_i32_0 : i32, i32
  }
  func.func @transform_3(%arg0: i32) -> (i32, i32) {
    %c0_i32 = arith.constant 0 : i32
    %c0_i32_0 = arith.constant 0 : i32
    %c0_i32_1 = arith.constant 0 : i32
    return %c0_i32, %c0_i32_0 : i32, i32
  }
  func.func @transform_4(%arg0: i32) -> (i32, i32) {
    %c0_i32 = arith.constant 0 : i32
    %c0_i32_0 = arith.constant 0 : i32
    return %arg0, %c0_i32 : i32, i32
  }
}

module attributes {stable_mosaic.version = 11 : i64} {
  func.func @_conv_stats_kernel(%arg0: i32, %arg1: memref<32x512xbf16, #tpu.memory_space<vmem>>, %arg2: memref<512x128xbf16, #tpu.memory_space<vmem>>, %arg3: memref<32x128xf32, #tpu.memory_space<vmem>>, %arg4: memref<1x128xf32, #tpu.memory_space<vmem>>, %arg5: memref<1x128xf32, #tpu.memory_space<vmem>>) attributes {dimension_semantics = [#tpu.dimension_semantics<arbitrary>], iteration_bounds = array<i64: 1>, scalar_prefetch = 0 : i64, scratch_operands = 0 : i64, tpu.core_type = #tpu.core_type<tc>, window_params = [{transform_indices = @transform_0, window_bounds = array<i64: 32, 512>}, {pipeline_mode = #tpu.pipeline_mode<synchronous>, transform_indices = @transform_1, window_bounds = array<i64: 512, 128>}, {transform_indices = @transform_2, window_bounds = array<i64: 32, 128>}, {pipeline_mode = #tpu.pipeline_mode<synchronous>, transform_indices = @transform_3, window_bounds = array<i64: 1, 128>}, {pipeline_mode = #tpu.pipeline_mode<synchronous>, transform_indices = @transform_4, window_bounds = array<i64: 1, 128>}]} {
    %c0 = arith.constant 0 : index
    %c0_0 = arith.constant 0 : index
    %0 = vector.load %arg1[%c0, %c0_0] : memref<32x512xbf16, #tpu.memory_space<vmem>>, vector<32x512xbf16>
    %c0_1 = arith.constant 0 : index
    %c0_2 = arith.constant 0 : index
    %1 = vector.load %arg2[%c0_1, %c0_2] : memref<512x128xbf16, #tpu.memory_space<vmem>>, vector<512x128xbf16>
    %cst = arith.constant dense<0.000000e+00> : vector<32x128xf32>
    %2 = tpu.matmul %0, %1, %cst {dimension_numbers = #tpu.dot_dimension_numbers<[1], [0], [0], [1], [0, 0, 1, 1], [], []>} : vector<32x512xbf16>, vector<512x128xbf16>, vector<32x128xf32> -> vector<32x128xf32>
    %c0_3 = arith.constant 0 : index
    %c0_4 = arith.constant 0 : index
    %3 = vector.load %arg3[%c0_3, %c0_4] : memref<32x128xf32, #tpu.memory_space<vmem>>, vector<32x128xf32>
    tpu.vector_store %arg3[%c0_3, %c0_4], %2 {strides = array<i32>} : memref<32x128xf32, #tpu.memory_space<vmem>>, vector<32x128xf32>,
    %c0_i32 = arith.constant 0 : i32
    %4 = arith.cmpi eq, %arg0, %c0_i32 : i32
    %5 = arith.extui %4 : i1 to i32
    %c0_i32_5 = arith.constant 0 : i32
    %6 = arith.cmpi ne, %5, %c0_i32_5 : i32
    scf.if %6 {
      %cst_16 = arith.constant 0.000000e+00 : f32
      %18 = vector.broadcast %cst_16 : f32 to vector<1x128xf32>
      %c0_17 = arith.constant 0 : index
      %c0_18 = arith.constant 0 : index
      %19 = vector.load %arg4[%c0_17, %c0_18] : memref<1x128xf32, #tpu.memory_space<vmem>>, vector<1x128xf32>
      tpu.vector_store %arg4[%c0_17, %c0_18], %18 {strides = array<i32>} : memref<1x128xf32, #tpu.memory_space<vmem>>, vector<1x128xf32>,
      %cst_19 = arith.constant 0.000000e+00 : f32
      %20 = vector.broadcast %cst_19 : f32 to vector<1x128xf32>
      %c0_20 = arith.constant 0 : index
      %c0_21 = arith.constant 0 : index
      %21 = vector.load %arg5[%c0_20, %c0_21] : memref<1x128xf32, #tpu.memory_space<vmem>>, vector<1x128xf32>
      tpu.vector_store %arg5[%c0_20, %c0_21], %20 {strides = array<i32>} : memref<1x128xf32, #tpu.memory_space<vmem>>, vector<1x128xf32>,
    } else {
    }
    %c0_6 = arith.constant 0 : index
    %c0_7 = arith.constant 0 : index
    %7 = vector.load %arg4[%c0_6, %c0_7] : memref<1x128xf32, #tpu.memory_space<vmem>>, vector<1x128xf32>
    %cst_8 = arith.constant dense<0.000000e+00> : vector<128xf32>
    %8 = vector.multi_reduction <add>, %2, %cst_8 [0] : vector<32x128xf32> to vector<128xf32>
    %9 = vector.shape_cast %8 : vector<128xf32> to vector<1x128xf32>
    %10 = arith.addf %7, %9 : vector<1x128xf32>
    %c0_9 = arith.constant 0 : index
    %c0_10 = arith.constant 0 : index
    %11 = vector.load %arg4[%c0_9, %c0_10] : memref<1x128xf32, #tpu.memory_space<vmem>>, vector<1x128xf32>
    tpu.vector_store %arg4[%c0_9, %c0_10], %10 {strides = array<i32>} : memref<1x128xf32, #tpu.memory_space<vmem>>, vector<1x128xf32>,
    %c0_11 = arith.constant 0 : index
    %c0_12 = arith.constant 0 : index
    %12 = vector.load %arg5[%c0_11, %c0_12] : memref<1x128xf32, #tpu.memory_space<vmem>>, vector<1x128xf32>
    %13 = arith.mulf %2, %2 : vector<32x128xf32>
    %cst_13 = arith.constant dense<0.000000e+00> : vector<128xf32>
    %14 = vector.multi_reduction <add>, %13, %cst_13 [0] : vector<32x128xf32> to vector<128xf32>
    %15 = vector.shape_cast %14 : vector<128xf32> to vector<1x128xf32>
    %16 = arith.addf %12, %15 : vector<1x128xf32>
    %c0_14 = arith.constant 0 : index
    %c0_15 = arith.constant 0 : index
    %17 = vector.load %arg5[%c0_14, %c0_15] : memref<1x128xf32, #tpu.memory_space<vmem>>, vector<1x128xf32>
    tpu.vector_store %arg5[%c0_14, %c0_15], %16 {strides = array<i32>} : memref<1x128xf32, #tpu.memory_space<vmem>>, vector<1x128xf32>,
    return
  }
  func.func @transform_0(%arg0: i32) -> (i32, i32) {
    %c0_i32 = arith.constant 0 : i32
    %c0_i32_0 = arith.constant 0 : i32
    return %arg0, %c0_i32 : i32, i32
  }
  func.func @transform_1(%arg0: i32) -> (i32, i32) {
    %c0_i32 = arith.constant 0 : i32
    %c0_i32_0 = arith.constant 0 : i32
    %c0_i32_1 = arith.constant 0 : i32
    return %c0_i32, %c0_i32_0 : i32, i32
  }
  func.func @transform_2(%arg0: i32) -> (i32, i32) {
    %c0_i32 = arith.constant 0 : i32
    %c0_i32_0 = arith.constant 0 : i32
    return %arg0, %c0_i32 : i32, i32
  }
  func.func @transform_3(%arg0: i32) -> (i32, i32) {
    %c0_i32 = arith.constant 0 : i32
    %c0_i32_0 = arith.constant 0 : i32
    %c0_i32_1 = arith.constant 0 : i32
    return %c0_i32, %c0_i32_0 : i32, i32
  }
  func.func @transform_4(%arg0: i32) -> (i32, i32) {
    %c0_i32 = arith.constant 0 : i32
    %c0_i32_0 = arith.constant 0 : i32
    %c0_i32_1 = arith.constant 0 : i32
    return %c0_i32, %c0_i32_0 : i32, i32
  }
}

module attributes {stable_mosaic.version = 11 : i64} {
  func.func @_bn_act_kernel(%arg0: i32, %arg1: memref<32x128xf32, #tpu.memory_space<vmem>>, %arg2: memref<1x128xf32, #tpu.memory_space<vmem>>, %arg3: memref<1x128xf32, #tpu.memory_space<vmem>>, %arg4: memref<8x128xf32, #tpu.memory_space<vmem>>, %arg5: memref<32x128xf32, #tpu.memory_space<vmem>>) attributes {dimension_semantics = [#tpu.dimension_semantics<parallel>], iteration_bounds = array<i64: 1>, scalar_prefetch = 0 : i64, scratch_operands = 0 : i64, tpu.core_type = #tpu.core_type<tc>, window_params = [{transform_indices = @transform_0, window_bounds = array<i64: 32, 128>}, {pipeline_mode = #tpu.pipeline_mode<synchronous>, transform_indices = @transform_1, window_bounds = array<i64: 1, 128>}, {pipeline_mode = #tpu.pipeline_mode<synchronous>, transform_indices = @transform_2, window_bounds = array<i64: 1, 128>}, {pipeline_mode = #tpu.pipeline_mode<synchronous>, transform_indices = @transform_3, window_bounds = array<i64: 8, 128>}, {transform_indices = @transform_4, window_bounds = array<i64: 32, 128>}]} {
    %c0 = arith.constant 0 : index
    %c0_0 = arith.constant 0 : index
    %0 = vector.load %arg1[%c0, %c0_0] : memref<32x128xf32, #tpu.memory_space<vmem>>, vector<32x128xf32>
    %c0_1 = arith.constant 0 : index
    %c0_2 = arith.constant 0 : index
    %1 = vector.load %arg2[%c0_1, %c0_2] : memref<1x128xf32, #tpu.memory_space<vmem>>, vector<1x128xf32>
    %cst = arith.constant 3.125000e-02 : f32
    %2 = vector.broadcast %cst : f32 to vector<1x128xf32>
    %3 = arith.mulf %1, %2 : vector<1x128xf32>
    %c0_3 = arith.constant 0 : index
    %c0_4 = arith.constant 0 : index
    %4 = vector.load %arg3[%c0_3, %c0_4] : memref<1x128xf32, #tpu.memory_space<vmem>>, vector<1x128xf32>
    %cst_5 = arith.constant 3.125000e-02 : f32
    %5 = vector.broadcast %cst_5 : f32 to vector<1x128xf32>
    %6 = arith.mulf %4, %5 : vector<1x128xf32>
    %7 = arith.mulf %3, %3 : vector<1x128xf32>
    %8 = arith.subf %6, %7 : vector<1x128xf32>
    %cst_6 = arith.constant 0.000000e+00 : f32
    %9 = vector.broadcast %cst_6 : f32 to vector<1x128xf32>
    %10 = arith.maximumf %8, %9 : vector<1x128xf32>
    %cst_7 = arith.constant 9.99999974E-6 : f32
    %11 = vector.broadcast %cst_7 : f32 to vector<1x128xf32>
    %12 = arith.addf %10, %11 : vector<1x128xf32>
    %13 = math.rsqrt %12 : vector<1x128xf32>
    %14 = vector.broadcast %3 : vector<1x128xf32> to vector<32x128xf32>
    %15 = arith.subf %0, %14 : vector<32x128xf32>
    %16 = vector.broadcast %13 : vector<1x128xf32> to vector<32x128xf32>
    %17 = arith.mulf %15, %16 : vector<32x128xf32>
    %c1 = arith.constant 1 : index
    %c0_8 = arith.constant 0 : index
    %18 = vector.load %arg4[%c1, %c0_8] : memref<8x128xf32, #tpu.memory_space<vmem>>, vector<1x128xf32>
    %19 = vector.broadcast %18 : vector<1x128xf32> to vector<32x128xf32>
    %20 = arith.mulf %17, %19 : vector<32x128xf32>
    %c2 = arith.constant 2 : index
    %c0_9 = arith.constant 0 : index
    %21 = vector.load %arg4[%c2, %c0_9] : memref<8x128xf32, #tpu.memory_space<vmem>>, vector<1x128xf32>
    %22 = vector.broadcast %21 : vector<1x128xf32> to vector<32x128xf32>
    %23 = arith.addf %20, %22 : vector<32x128xf32>
    %cst_10 = arith.constant 0.000000e+00 : f32
    %24 = vector.broadcast %cst_10 : f32 to vector<32x128xf32>
    %25 = arith.cmpf oge, %23, %24 : vector<32x128xf32>
    %cst_11 = arith.constant 2.000000e-01 : f32
    %26 = vector.broadcast %cst_11 : f32 to vector<32x128xf32>
    %27 = arith.mulf %26, %23 : vector<32x128xf32>
    %28 = arith.select %25, %23, %27 : vector<32x128xi1>, vector<32x128xf32>
    %c0_12 = arith.constant 0 : index
    %c0_13 = arith.constant 0 : index
    %29 = vector.load %arg5[%c0_12, %c0_13] : memref<32x128xf32, #tpu.memory_space<vmem>>, vector<32x128xf32>
    tpu.vector_store %arg5[%c0_12, %c0_13], %28 {strides = array<i32>} : memref<32x128xf32, #tpu.memory_space<vmem>>, vector<32x128xf32>,
    return
  }
  func.func @transform_0(%arg0: i32) -> (i32, i32) {
    %c0_i32 = arith.constant 0 : i32
    %c0_i32_0 = arith.constant 0 : i32
    return %arg0, %c0_i32 : i32, i32
  }
  func.func @transform_1(%arg0: i32) -> (i32, i32) {
    %c0_i32 = arith.constant 0 : i32
    %c0_i32_0 = arith.constant 0 : i32
    %c0_i32_1 = arith.constant 0 : i32
    return %c0_i32, %c0_i32_0 : i32, i32
  }
  func.func @transform_2(%arg0: i32) -> (i32, i32) {
    %c0_i32 = arith.constant 0 : i32
    %c0_i32_0 = arith.constant 0 : i32
    %c0_i32_1 = arith.constant 0 : i32
    return %c0_i32, %c0_i32_0 : i32, i32
  }
  func.func @transform_3(%arg0: i32) -> (i32, i32) {
    %c0_i32 = arith.constant 0 : i32
    %c0_i32_0 = arith.constant 0 : i32
    %c0_i32_1 = arith.constant 0 : i32
    return %c0_i32, %c0_i32_0 : i32, i32
  }
  func.func @transform_4(%arg0: i32) -> (i32, i32) {
    %c0_i32 = arith.constant 0 : i32
    %c0_i32_0 = arith.constant 0 : i32
    return %arg0, %c0_i32 : i32, i32
  }
}

module attributes {stable_mosaic.version = 11 : i64} {
  func.func @_conv_stats_kernel(%arg0: i32, %arg1: memref<24x1024xbf16, #tpu.memory_space<vmem>>, %arg2: memref<1024x128xbf16, #tpu.memory_space<vmem>>, %arg3: memref<24x128xf32, #tpu.memory_space<vmem>>, %arg4: memref<1x128xf32, #tpu.memory_space<vmem>>, %arg5: memref<1x128xf32, #tpu.memory_space<vmem>>) attributes {dimension_semantics = [#tpu.dimension_semantics<arbitrary>], iteration_bounds = array<i64: 1>, scalar_prefetch = 0 : i64, scratch_operands = 0 : i64, tpu.core_type = #tpu.core_type<tc>, window_params = [{transform_indices = @transform_0, window_bounds = array<i64: 24, 1024>}, {pipeline_mode = #tpu.pipeline_mode<synchronous>, transform_indices = @transform_1, window_bounds = array<i64: 1024, 128>}, {transform_indices = @transform_2, window_bounds = array<i64: 24, 128>}, {pipeline_mode = #tpu.pipeline_mode<synchronous>, transform_indices = @transform_3, window_bounds = array<i64: 1, 128>}, {pipeline_mode = #tpu.pipeline_mode<synchronous>, transform_indices = @transform_4, window_bounds = array<i64: 1, 128>}]} {
    %c0 = arith.constant 0 : index
    %c0_0 = arith.constant 0 : index
    %0 = vector.load %arg1[%c0, %c0_0] : memref<24x1024xbf16, #tpu.memory_space<vmem>>, vector<24x1024xbf16>
    %c0_1 = arith.constant 0 : index
    %c0_2 = arith.constant 0 : index
    %1 = vector.load %arg2[%c0_1, %c0_2] : memref<1024x128xbf16, #tpu.memory_space<vmem>>, vector<1024x128xbf16>
    %cst = arith.constant dense<0.000000e+00> : vector<24x128xf32>
    %2 = tpu.matmul %0, %1, %cst {dimension_numbers = #tpu.dot_dimension_numbers<[1], [0], [0], [1], [0, 0, 1, 1], [], []>} : vector<24x1024xbf16>, vector<1024x128xbf16>, vector<24x128xf32> -> vector<24x128xf32>
    %c0_3 = arith.constant 0 : index
    %c0_4 = arith.constant 0 : index
    %3 = vector.load %arg3[%c0_3, %c0_4] : memref<24x128xf32, #tpu.memory_space<vmem>>, vector<24x128xf32>
    tpu.vector_store %arg3[%c0_3, %c0_4], %2 {strides = array<i32>} : memref<24x128xf32, #tpu.memory_space<vmem>>, vector<24x128xf32>,
    %c0_i32 = arith.constant 0 : i32
    %4 = arith.cmpi eq, %arg0, %c0_i32 : i32
    %5 = arith.extui %4 : i1 to i32
    %c0_i32_5 = arith.constant 0 : i32
    %6 = arith.cmpi ne, %5, %c0_i32_5 : i32
    scf.if %6 {
      %cst_16 = arith.constant 0.000000e+00 : f32
      %18 = vector.broadcast %cst_16 : f32 to vector<1x128xf32>
      %c0_17 = arith.constant 0 : index
      %c0_18 = arith.constant 0 : index
      %19 = vector.load %arg4[%c0_17, %c0_18] : memref<1x128xf32, #tpu.memory_space<vmem>>, vector<1x128xf32>
      tpu.vector_store %arg4[%c0_17, %c0_18], %18 {strides = array<i32>} : memref<1x128xf32, #tpu.memory_space<vmem>>, vector<1x128xf32>,
      %cst_19 = arith.constant 0.000000e+00 : f32
      %20 = vector.broadcast %cst_19 : f32 to vector<1x128xf32>
      %c0_20 = arith.constant 0 : index
      %c0_21 = arith.constant 0 : index
      %21 = vector.load %arg5[%c0_20, %c0_21] : memref<1x128xf32, #tpu.memory_space<vmem>>, vector<1x128xf32>
      tpu.vector_store %arg5[%c0_20, %c0_21], %20 {strides = array<i32>} : memref<1x128xf32, #tpu.memory_space<vmem>>, vector<1x128xf32>,
    } else {
    }
    %c0_6 = arith.constant 0 : index
    %c0_7 = arith.constant 0 : index
    %7 = vector.load %arg4[%c0_6, %c0_7] : memref<1x128xf32, #tpu.memory_space<vmem>>, vector<1x128xf32>
    %cst_8 = arith.constant dense<0.000000e+00> : vector<128xf32>
    %8 = vector.multi_reduction <add>, %2, %cst_8 [0] : vector<24x128xf32> to vector<128xf32>
    %9 = vector.shape_cast %8 : vector<128xf32> to vector<1x128xf32>
    %10 = arith.addf %7, %9 : vector<1x128xf32>
    %c0_9 = arith.constant 0 : index
    %c0_10 = arith.constant 0 : index
    %11 = vector.load %arg4[%c0_9, %c0_10] : memref<1x128xf32, #tpu.memory_space<vmem>>, vector<1x128xf32>
    tpu.vector_store %arg4[%c0_9, %c0_10], %10 {strides = array<i32>} : memref<1x128xf32, #tpu.memory_space<vmem>>, vector<1x128xf32>,
    %c0_11 = arith.constant 0 : index
    %c0_12 = arith.constant 0 : index
    %12 = vector.load %arg5[%c0_11, %c0_12] : memref<1x128xf32, #tpu.memory_space<vmem>>, vector<1x128xf32>
    %13 = arith.mulf %2, %2 : vector<24x128xf32>
    %cst_13 = arith.constant dense<0.000000e+00> : vector<128xf32>
    %14 = vector.multi_reduction <add>, %13, %cst_13 [0] : vector<24x128xf32> to vector<128xf32>
    %15 = vector.shape_cast %14 : vector<128xf32> to vector<1x128xf32>
    %16 = arith.addf %12, %15 : vector<1x128xf32>
    %c0_14 = arith.constant 0 : index
    %c0_15 = arith.constant 0 : index
    %17 = vector.load %arg5[%c0_14, %c0_15] : memref<1x128xf32, #tpu.memory_space<vmem>>, vector<1x128xf32>
    tpu.vector_store %arg5[%c0_14, %c0_15], %16 {strides = array<i32>} : memref<1x128xf32, #tpu.memory_space<vmem>>, vector<1x128xf32>,
    return
  }
  func.func @transform_0(%arg0: i32) -> (i32, i32) {
    %c0_i32 = arith.constant 0 : i32
    %c0_i32_0 = arith.constant 0 : i32
    return %arg0, %c0_i32 : i32, i32
  }
  func.func @transform_1(%arg0: i32) -> (i32, i32) {
    %c0_i32 = arith.constant 0 : i32
    %c0_i32_0 = arith.constant 0 : i32
    %c0_i32_1 = arith.constant 0 : i32
    return %c0_i32, %c0_i32_0 : i32, i32
  }
  func.func @transform_2(%arg0: i32) -> (i32, i32) {
    %c0_i32 = arith.constant 0 : i32
    %c0_i32_0 = arith.constant 0 : i32
    return %arg0, %c0_i32 : i32, i32
  }
  func.func @transform_3(%arg0: i32) -> (i32, i32) {
    %c0_i32 = arith.constant 0 : i32
    %c0_i32_0 = arith.constant 0 : i32
    %c0_i32_1 = arith.constant 0 : i32
    return %c0_i32, %c0_i32_0 : i32, i32
  }
  func.func @transform_4(%arg0: i32) -> (i32, i32) {
    %c0_i32 = arith.constant 0 : i32
    %c0_i32_0 = arith.constant 0 : i32
    %c0_i32_1 = arith.constant 0 : i32
    return %c0_i32, %c0_i32_0 : i32, i32
  }
}

module attributes {stable_mosaic.version = 11 : i64} {
  func.func @_bn_act_kernel(%arg0: i32, %arg1: memref<24x128xf32, #tpu.memory_space<vmem>>, %arg2: memref<1x128xf32, #tpu.memory_space<vmem>>, %arg3: memref<1x128xf32, #tpu.memory_space<vmem>>, %arg4: memref<8x128xf32, #tpu.memory_space<vmem>>, %arg5: memref<24x128xf32, #tpu.memory_space<vmem>>) attributes {dimension_semantics = [#tpu.dimension_semantics<parallel>], iteration_bounds = array<i64: 1>, scalar_prefetch = 0 : i64, scratch_operands = 0 : i64, tpu.core_type = #tpu.core_type<tc>, window_params = [{transform_indices = @transform_0, window_bounds = array<i64: 24, 128>}, {pipeline_mode = #tpu.pipeline_mode<synchronous>, transform_indices = @transform_1, window_bounds = array<i64: 1, 128>}, {pipeline_mode = #tpu.pipeline_mode<synchronous>, transform_indices = @transform_2, window_bounds = array<i64: 1, 128>}, {pipeline_mode = #tpu.pipeline_mode<synchronous>, transform_indices = @transform_3, window_bounds = array<i64: 8, 128>}, {transform_indices = @transform_4, window_bounds = array<i64: 24, 128>}]} {
    %c0 = arith.constant 0 : index
    %c0_0 = arith.constant 0 : index
    %0 = vector.load %arg1[%c0, %c0_0] : memref<24x128xf32, #tpu.memory_space<vmem>>, vector<24x128xf32>
    %c0_1 = arith.constant 0 : index
    %c0_2 = arith.constant 0 : index
    %1 = vector.load %arg2[%c0_1, %c0_2] : memref<1x128xf32, #tpu.memory_space<vmem>>, vector<1x128xf32>
    %cst = arith.constant 0.055555556 : f32
    %2 = vector.broadcast %cst : f32 to vector<1x128xf32>
    %3 = arith.mulf %1, %2 : vector<1x128xf32>
    %c0_3 = arith.constant 0 : index
    %c0_4 = arith.constant 0 : index
    %4 = vector.load %arg3[%c0_3, %c0_4] : memref<1x128xf32, #tpu.memory_space<vmem>>, vector<1x128xf32>
    %cst_5 = arith.constant 0.055555556 : f32
    %5 = vector.broadcast %cst_5 : f32 to vector<1x128xf32>
    %6 = arith.mulf %4, %5 : vector<1x128xf32>
    %7 = arith.mulf %3, %3 : vector<1x128xf32>
    %8 = arith.subf %6, %7 : vector<1x128xf32>
    %cst_6 = arith.constant 0.000000e+00 : f32
    %9 = vector.broadcast %cst_6 : f32 to vector<1x128xf32>
    %10 = arith.maximumf %8, %9 : vector<1x128xf32>
    %cst_7 = arith.constant 9.99999974E-6 : f32
    %11 = vector.broadcast %cst_7 : f32 to vector<1x128xf32>
    %12 = arith.addf %10, %11 : vector<1x128xf32>
    %13 = math.rsqrt %12 : vector<1x128xf32>
    %14 = vector.broadcast %3 : vector<1x128xf32> to vector<24x128xf32>
    %15 = arith.subf %0, %14 : vector<24x128xf32>
    %16 = vector.broadcast %13 : vector<1x128xf32> to vector<24x128xf32>
    %17 = arith.mulf %15, %16 : vector<24x128xf32>
    %c1 = arith.constant 1 : index
    %c0_8 = arith.constant 0 : index
    %18 = vector.load %arg4[%c1, %c0_8] : memref<8x128xf32, #tpu.memory_space<vmem>>, vector<1x128xf32>
    %19 = vector.broadcast %18 : vector<1x128xf32> to vector<24x128xf32>
    %20 = arith.mulf %17, %19 : vector<24x128xf32>
    %c2 = arith.constant 2 : index
    %c0_9 = arith.constant 0 : index
    %21 = vector.load %arg4[%c2, %c0_9] : memref<8x128xf32, #tpu.memory_space<vmem>>, vector<1x128xf32>
    %22 = vector.broadcast %21 : vector<1x128xf32> to vector<24x128xf32>
    %23 = arith.addf %20, %22 : vector<24x128xf32>
    %cst_10 = arith.constant 0.000000e+00 : f32
    %24 = vector.broadcast %cst_10 : f32 to vector<24x128xf32>
    %25 = arith.cmpf oge, %23, %24 : vector<24x128xf32>
    %cst_11 = arith.constant 2.000000e-01 : f32
    %26 = vector.broadcast %cst_11 : f32 to vector<24x128xf32>
    %27 = arith.mulf %26, %23 : vector<24x128xf32>
    %28 = arith.select %25, %23, %27 : vector<24x128xi1>, vector<24x128xf32>
    %c0_12 = arith.constant 0 : index
    %c0_13 = arith.constant 0 : index
    %29 = vector.load %arg5[%c0_12, %c0_13] : memref<24x128xf32, #tpu.memory_space<vmem>>, vector<24x128xf32>
    tpu.vector_store %arg5[%c0_12, %c0_13], %28 {strides = array<i32>} : memref<24x128xf32, #tpu.memory_space<vmem>>, vector<24x128xf32>,
    return
  }
  func.func @transform_0(%arg0: i32) -> (i32, i32) {
    %c0_i32 = arith.constant 0 : i32
    %c0_i32_0 = arith.constant 0 : i32
    return %arg0, %c0_i32 : i32, i32
  }
  func.func @transform_1(%arg0: i32) -> (i32, i32) {
    %c0_i32 = arith.constant 0 : i32
    %c0_i32_0 = arith.constant 0 : i32
    %c0_i32_1 = arith.constant 0 : i32
    return %c0_i32, %c0_i32_0 : i32, i32
  }
  func.func @transform_2(%arg0: i32) -> (i32, i32) {
    %c0_i32 = arith.constant 0 : i32
    %c0_i32_0 = arith.constant 0 : i32
    %c0_i32_1 = arith.constant 0 : i32
    return %c0_i32, %c0_i32_0 : i32, i32
  }
  func.func @transform_3(%arg0: i32) -> (i32, i32) {
    %c0_i32 = arith.constant 0 : i32
    %c0_i32_0 = arith.constant 0 : i32
    %c0_i32_1 = arith.constant 0 : i32
    return %c0_i32, %c0_i32_0 : i32, i32
  }
  func.func @transform_4(%arg0: i32) -> (i32, i32) {
    %c0_i32 = arith.constant 0 : i32
    %c0_i32_0 = arith.constant 0 : i32
    return %arg0, %c0_i32 : i32, i32
  }
}

module attributes {stable_mosaic.version = 11 : i64} {
  func.func @_conv_bias_act_kernel(%arg0: i32, %arg1: memref<8x2048xbf16, #tpu.memory_space<vmem>>, %arg2: memref<2048x128xbf16, #tpu.memory_space<vmem>>, %arg3: memref<8x128xf32, #tpu.memory_space<vmem>>, %arg4: memref<8x128xf32, #tpu.memory_space<vmem>>) attributes {dimension_semantics = [#tpu.dimension_semantics<parallel>], iteration_bounds = array<i64: 1>, scalar_prefetch = 0 : i64, scratch_operands = 0 : i64, tpu.core_type = #tpu.core_type<tc>, window_params = [{transform_indices = @transform_0, window_bounds = array<i64: 8, 2048>}, {pipeline_mode = #tpu.pipeline_mode<synchronous>, transform_indices = @transform_1, window_bounds = array<i64: 2048, 128>}, {pipeline_mode = #tpu.pipeline_mode<synchronous>, transform_indices = @transform_2, window_bounds = array<i64: 8, 128>}, {transform_indices = @transform_3, window_bounds = array<i64: 8, 128>}]} {
    %c0 = arith.constant 0 : index
    %c0_0 = arith.constant 0 : index
    %0 = vector.load %arg1[%c0, %c0_0] : memref<8x2048xbf16, #tpu.memory_space<vmem>>, vector<8x2048xbf16>
    %c0_1 = arith.constant 0 : index
    %c0_2 = arith.constant 0 : index
    %1 = vector.load %arg2[%c0_1, %c0_2] : memref<2048x128xbf16, #tpu.memory_space<vmem>>, vector<2048x128xbf16>
    %cst = arith.constant dense<0.000000e+00> : vector<8x128xf32>
    %2 = tpu.matmul %0, %1, %cst {dimension_numbers = #tpu.dot_dimension_numbers<[1], [0], [0], [1], [0, 0, 1, 1], [], []>} : vector<8x2048xbf16>, vector<2048x128xbf16>, vector<8x128xf32> -> vector<8x128xf32>
    %c0_3 = arith.constant 0 : index
    %c0_4 = arith.constant 0 : index
    %3 = vector.load %arg3[%c0_3, %c0_4] : memref<8x128xf32, #tpu.memory_space<vmem>>, vector<1x128xf32>
    %4 = vector.broadcast %3 : vector<1x128xf32> to vector<8x128xf32>
    %5 = arith.addf %2, %4 : vector<8x128xf32>
    %c0_5 = arith.constant 0 : index
    %c0_6 = arith.constant 0 : index
    %6 = vector.load %arg4[%c0_5, %c0_6] : memref<8x128xf32, #tpu.memory_space<vmem>>, vector<8x128xf32>
    tpu.vector_store %arg4[%c0_5, %c0_6], %5 {strides = array<i32>} : memref<8x128xf32, #tpu.memory_space<vmem>>, vector<8x128xf32>,
    return
  }
  func.func @transform_0(%arg0: i32) -> (i32, i32) {
    %c0_i32 = arith.constant 0 : i32
    %c0_i32_0 = arith.constant 0 : i32
    return %arg0, %c0_i32 : i32, i32
  }
  func.func @transform_1(%arg0: i32) -> (i32, i32) {
    %c0_i32 = arith.constant 0 : i32
    %c0_i32_0 = arith.constant 0 : i32
    %c0_i32_1 = arith.constant 0 : i32
    return %c0_i32, %c0_i32_0 : i32, i32
  }
  func.func @transform_2(%arg0: i32) -> (i32, i32) {
    %c0_i32 = arith.constant 0 : i32
    %c0_i32_0 = arith.constant 0 : i32
    %c0_i32_1 = arith.constant 0 : i32
    return %c0_i32, %c0_i32_0 : i32, i32
  }
  func.func @transform_3(%arg0: i32) -> (i32, i32) {
    %c0_i32 = arith.constant 0 : i32
    %c0_i32_0 = arith.constant 0 : i32
    return %arg0, %c0_i32 : i32, i32
  }
}

</mosaic_0001>

<bundles_post_ra>
// kernel: _lambda_.8
= control target key start
LH: loop header
LB: loop body
LE: loop exit
PB: predicated region body
PF: predicated region fallthrough
CT: control target
= control target key end

     0   :  { %s875_s12 = smov 0   ;;  %s1010_s0 = inlined_call_operand.vmem [shape: bf16[512,48], index: 0, kind: input, shape index: {}]   ;;  %s1011_s1 = inlined_call_operand.vmem [shape: bf16[48,128], index: 1, kind: input, shape index: {}]   ;;  %s1012_s2 = inlined_call_operand.vmem [shape: f32[8,128], index: 2, kind: input, shape index: {}]   ;;  %s1013_s3 = inlined_call_operand.vmem [shape: f32[512,128], index: 3, kind: output, shape index: {}]  }
   0x1 LB: > { %s710_s13 = sadd.s32 4294967295, %s853_s12   ;;  %p714_p0 = scmp.ge.s32.totalorder %s853_s12, 1  ;;  %s853_s12 = sphi %s875_s12, %s13_s12  }
   0x2   : > { %p138_p1 = scmp.lt.s32.totalorder %s853_s12, 3 }
   0x4   : > { %p139_p2 = pnand %p714_p0, %p138_p1 }
   0x5   : > { %v828_v0 = vld [vmem:[%s1011_s1] sm:$0xff] (!%p139_p2)   ;;  %s715_s16 = sshll.u32 (!%p139_p2), %s710_s13, 5  ;;  %v829_v1 = vld [vmem:[%s1011_s1 + $0x8] sm:$0xff] (!%p139_p2)   ;;  %v830_v2 = vld [vmem:[%s1011_s1 + $0x10] sm:$0xff] (!%p139_p2)   ;;  %vm316_vm0 = vcmask (!%p139_p2), 392192  }
   0x6   : > { %142 = sbr.rel (%p139_p2) target bundleno = 268 (0x10c), region = 32  ;;  %p163_p3 = scmp.lt.s32.totalorder (!%p139_p2), %s715_s16, 63  ;;  %776 = vmatprep.subr.bf16.mxu0 (!%p139_p2), %v828_v0  ;;  %814 = vmatprep.subr.bf16.mxu1 (!%p139_p2), %v828_v0  ;;  %v935_v19 = vld [vmem:[%s1012_s2] ss:$0 sm:$0xff] (!%p139_p2) }
   0x7   : > { %777 = vmatpush3.bf16.msra.mxu0 (!%p139_p2), %v828_v0  ;;  %817 = vmatpush3.bf16.msra.mxu1 (!%p139_p2), %v828_v0 }
   0x8   : > { %778 = vmatprep.subr.bf16.mxu0 (!%p139_p2), %v829_v1  ;;  %815 = vmatprep.subr.bf16.mxu1 (!%p139_p2), %v829_v1 }
   0xb   : > { %779 = vmatpush3.bf16.msra.mxu0 (!%p139_p2), %v829_v1  ;;  %818 = vmatpush3.bf16.msra.mxu1 (!%p139_p2), %v829_v1 }
   0xc   : > { %780 = vmatprep.subr.bf16.mxu0 (!%p139_p2), %v830_v2  ;;  %816 = vmatprep.subr.bf16.mxu1 (!%p139_p2), %v830_v2 }
   0xd   : > { %s1015_s16 = smov (!%p163_p3, %s715_s16), 63 }
   0xe   : > { %s716_s21 = sshll.u32 %s1015_s16, 2  ;;  %s718_s27 = sshll.u32 %s1015_s16, 3 }
   0xf   : > { %s898_s24 = scalar_lea.vmem %s1010_s0, %s716_s21  ;;  %781 = vmatpush3.bf16.msra.mxu0 %v830_v2  ;;  %819 = vmatpush3.bf16.msra.mxu1 %v830_v2  ;;  %s945_s30 = scalar_lea.vmem %s1013_s3, %s718_s27 }
  0x10   : > { %v831_v3 = vld [vmem:[%s898_s24] sm:$0xff]   ;;  %v833_v5 = vld [vmem:[%s898_s24 + $0x8] sm:$0xff]   ;;  %v835_v7 = vld [vmem:[%s898_s24 + $0x10] sm:$0xff]  }
  0x11   : > { %v832_v4 = vld [vmem:[%s898_s24 + $0x40] sm:$0xff]   ;;  %782 = vmatprep.mubr.msk.bf16.mxu0 %vm316_vm0, %v831_v3  ;;  %v834_v6 = vld [vmem:[%s898_s24 + $0x48] sm:$0xff]   ;;  %v836_v8 = vld [vmem:[%s898_s24 + $0x50] sm:$0xff]  }
  0x12   : > { %798 = vmatprep.mubr.msk.bf16.mxu1 %vm316_vm0, %v832_v4  ;;  %783 = vmatmul.mubr.msk.bf16.vlgmr.msra.gmra.mrb[0].mxu0 %vm316_vm0, %v833_v5  ;;  %v837_v9 = vld [vmem:[%s898_s24 + $0x18] sm:$0xff]   ;;  %v839_v11 = vld [vmem:[%s898_s24 + $0x20] sm:$0xff]   ;;  %v841_v13 = vld [vmem:[%s898_s24 + $0x28] sm:$0xff]  }
  0x13   : > { %799 = vmatmul.mubr.msk.bf16.vlgmr.msra.gmra.mrb[0].mxu1 %vm316_vm0, %v834_v6  ;;  %786 = vmatprep.mubr.msk.bf16.mxu0 %vm316_vm0, %v835_v7  ;;  %v838_v10 = vld [vmem:[%s898_s24 + $0x58] sm:$0xff]   ;;  %v840_v12 = vld [vmem:[%s898_s24 + $0x60] sm:$0xff]   ;;  %v842_v14 = vld [vmem:[%s898_s24 + $0x68] sm:$0xff]  }
  0x14   : > { %802 = vmatprep.mubr.msk.bf16.mxu1 %vm316_vm0, %v836_v8  ;;  %v843_v15 = vld [vmem:[%s898_s24 + $0x30] sm:$0xff]   ;;  %v845_v17 = vld [vmem:[%s898_s24 + $0x38] sm:$0xff]  }
  0x15   : > { %v844_v16 = vld [vmem:[%s898_s24 + $0x70] sm:$0xff]   ;;  %v846_v18 = vld [vmem:[%s898_s24 + $0x78] sm:$0xff]  }
  0x1a   : > { %787 = vmatmul.mubr.msk.bf16.gmra.mrb[4].mxu0 %vm316_vm0, %v837_v9 }
  0x1b   : > { %803 = vmatmul.mubr.msk.bf16.gmra.mrb[4].mxu1 %vm316_vm0, %v838_v10  ;;  %790 = vmatprep.mubr.msk.bf16.mxu0 %vm316_vm0, %v839_v11 }
  0x1c   : > { %806 = vmatprep.mubr.msk.bf16.mxu1 %vm316_vm0, %v840_v12 }
  0x22   : > { %791 = vmatmul.mubr.msk.bf16.gmra.mrb[8].mxu0 %vm316_vm0, %v841_v13 }
  0x23   : > { %807 = vmatmul.mubr.msk.bf16.gmra.mrb[8].mxu1 %vm316_vm0, %v842_v14  ;;  %794 = vmatprep.mubr.msk.bf16.mxu0 %vm316_vm0, %v843_v15 }
  0x24   : > { %810 = vmatprep.mubr.msk.bf16.mxu1 %vm316_vm0, %v844_v16 }
  0x2a   : > { %795 = vmatmul.mubr.msk.bf16.gmra.mrb[12].mxu0 %vm316_vm0, %v845_v17 }
  0x2b   : > { %811 = vmatmul.mubr.msk.bf16.gmra.mrb[12].mxu1 %vm316_vm0, %v846_v18 }
  0xe5   : > { %v784_v20 = vpop.f32.mrb[0].mxu0 }
  0xe6   : > { %v800_v21 = vpop.f32.mrb[0].mxu1  ;;  %v408_v22 = vadd.f32 %v784_v20, %v935_v19  ;;  %v399_v24 = vpop.f32.mrb[1].mxu0 }
  0xe7   : > { %v472_v23 = vadd.f32 %v800_v21, %v935_v19  ;;  %v463_v25 = vpop.f32.mrb[1].mxu1  ;;  %v400_v26 = vadd.f32 %v935_v19, %v399_v24  ;;  %v785_v28 = vpop.f32.mrb[2].mxu0 }
  0xe8   : > { %v464_v27 = vadd.f32 %v935_v19, %v463_v25  ;;  %v801_v29 = vpop.f32.mrb[2].mxu1  ;;  %vm528_vm1 = vcmp.ge.f32.partialorder %v408_v22, 0.0  ;;  %v560_v30 = vmul.f32 0.2, %v408_v22  ;;  %v411_v36 = vadd.f32 %v785_v28, %v935_v19  ;;  %v402_v38 = vpop.f32.mrb[3].mxu0 }
  0xe9   : > { %vm544_vm2 = vcmp.ge.f32.partialorder %v472_v23, 0.0  ;;  %v576_v31 = vmul.f32 0.2, %v472_v23  ;;  %vm526_vm3 = vcmp.ge.f32.partialorder %v400_v26, 0.0  ;;  %v558_v32 = vmul.f32 0.2, %v400_v26 }
  0xea   : > { %vm542_vm4 = vcmp.ge.f32.partialorder %v464_v27, 0.0  ;;  %v574_v33 = vmul.f32 0.2, %v464_v27  ;;  %v592_v34 = vsel %vm528_vm1, %v408_v22, %v560_v30  ;;  %v475_v37 = vadd.f32 %v801_v29, %v935_v19  ;;  %v466_v39 = vpop.f32.mrb[3].mxu1 }
  0xeb   : > { %v608_v35 = vsel %vm544_vm2, %v472_v23, %v576_v31  ;;  %624 = vst [vmem:[%s945_s30 + $0x10] sm:$0xff] %v592_v34  ;;  %v590_v40 = vsel %vm526_vm3, %v400_v26, %v558_v32  ;;  %v403_v42 = vadd.f32 %v935_v19, %v402_v38  ;;  %v467_v43 = vadd.f32 %v935_v19, %v466_v39 }
  0xec   : > { %640 = vst [vmem:[%s945_s30 + $0x90] sm:$0xff] %v608_v35  ;;  %v606_v41 = vsel %vm542_vm4, %v464_v27, %v574_v33  ;;  %622 = vst [vmem:[%s945_s30] sm:$0xff] %v590_v40  ;;  %vm529_vm5 = vcmp.ge.f32.partialorder %v411_v36, 0.0  ;;  %v561_v44 = vmul.f32 0.2, %v411_v36  ;;  %vm545_vm6 = vcmp.ge.f32.partialorder %v475_v37, 0.0 }
  0xed   : > { %638 = vst [vmem:[%s945_s30 + $0x80] sm:$0xff] %v606_v41  ;;  %v577_v45 = vmul.f32 0.2, %v475_v37  ;;  %vm527_vm7 = vcmp.ge.f32.partialorder %v403_v42, 0.0  ;;  %v559_v46 = vmul.f32 0.2, %v403_v42 }
  0xee   : > { %vm543_vm8 = vcmp.ge.f32.partialorder %v467_v43, 0.0  ;;  %v575_v47 = vmul.f32 0.2, %v467_v43  ;;  %v593_v48 = vsel %vm529_vm5, %v411_v36, %v561_v44  ;;  %v788_v50 = vpop.f32.mrb[4].mxu0  ;;  %v804_v51 = vpop.f32.mrb[4].mxu1 }
  0xef   : > { %v609_v49 = vsel %vm545_vm6, %v475_v37, %v577_v45  ;;  %625 = vst [vmem:[%s945_s30 + $0x18] sm:$0xff] %v593_v48  ;;  %v591_v52 = vsel %vm527_vm7, %v403_v42, %v559_v46  ;;  %v424_v54 = vadd.f32 %v788_v50, %v935_v19  ;;  %v488_v55 = vadd.f32 %v804_v51, %v935_v19  ;;  %v415_v56 = vpop.f32.mrb[5].mxu0  ;;  %v479_v57 = vpop.f32.mrb[5].mxu1 }
  0xf0   : > { %641 = vst [vmem:[%s945_s30 + $0x98] sm:$0xff] %v609_v49  ;;  %v607_v53 = vsel %vm543_vm8, %v467_v43, %v575_v47  ;;  %623 = vst [vmem:[%s945_s30 + $0x8] sm:$0xff] %v591_v52  ;;  %v416_v58 = vadd.f32 %v935_v19, %v415_v56  ;;  %v480_v59 = vadd.f32 %v935_v19, %v479_v57  ;;  %v789_v60 = vpop.f32.mrb[6].mxu0  ;;  %v805_v61 = vpop.f32.mrb[6].mxu1 }
  0xf1   : > { %639 = vst [vmem:[%s945_s30 + $0x88] sm:$0xff] %v607_v53  ;;  %vm532_vm9 = vcmp.ge.f32.partialorder %v424_v54, 0.0  ;;  %v564_v62 = vmul.f32 0.2, %v424_v54  ;;  %vm548_vm10 = vcmp.ge.f32.partialorder %v488_v55, 0.0  ;;  %v427_v4 = vadd.f32 %v789_v60, %v935_v19  ;;  %v418_v6 = vpop.f32.mrb[7].mxu0 }
  0xf2   : > { %v580_v63 = vmul.f32 0.2, %v488_v55  ;;  %vm530_vm11 = vcmp.ge.f32.partialorder %v416_v58, 0.0  ;;  %v562_v0 = vmul.f32 0.2, %v416_v58  ;;  %vm546_vm12 = vcmp.ge.f32.partialorder %v480_v59, 0.0 }
  0xf3   : > { %v578_v1 = vmul.f32 0.2, %v480_v59  ;;  %v596_v2 = vsel %vm532_vm9, %v424_v54, %v564_v62  ;;  %v491_v5 = vadd.f32 %v805_v61, %v935_v19  ;;  %v482_v7 = vpop.f32.mrb[7].mxu1  ;;  %v419_v10 = vadd.f32 %v935_v19, %v418_v6 }
  0xf4   : > { %v612_v3 = vsel %vm548_vm10, %v488_v55, %v580_v63  ;;  %628 = vst [vmem:[%s945_s30 + $0x30] sm:$0xff] %v596_v2  ;;  %v594_v8 = vsel %vm530_vm11, %v416_v58, %v562_v0  ;;  %v483_v11 = vadd.f32 %v935_v19, %v482_v7  ;;  %vm533_vm13 = vcmp.ge.f32.partialorder %v427_v4, 0.0 }
  0xf5   : > { %644 = vst [vmem:[%s945_s30 + $0xb0] sm:$0xff] %v612_v3  ;;  %v610_v9 = vsel %vm546_vm12, %v480_v59, %v578_v1  ;;  %626 = vst [vmem:[%s945_s30 + $0x20] sm:$0xff] %v594_v8  ;;  %v565_v12 = vmul.f32 0.2, %v427_v4  ;;  %vm549_vm14 = vcmp.ge.f32.partialorder %v491_v5, 0.0  ;;  %vm531_vm15 = vcmp.ge.f32.partialorder %v419_v10, 0.0 }
  0xf6   : > { %642 = vst [vmem:[%s945_s30 + $0xa0] sm:$0xff] %v610_v9  ;;  %v581_v13 = vmul.f32 0.2, %v491_v5  ;;  %v563_v14 = vmul.f32 0.2, %v419_v10  ;;  %vm547_vm0 = vcmp.ge.f32.partialorder %v483_v11, 0.0 }
  0xf7   : > { %v579_v15 = vmul.f32 0.2, %v483_v11  ;;  %v597_v16 = vsel %vm533_vm13, %v427_v4, %v565_v12  ;;  %v792_v18 = vpop.f32.mrb[8].mxu0  ;;  %v808_v20 = vpop.f32.mrb[8].mxu1 }
  0xf8   : > { %v613_v17 = vsel %vm549_vm14, %v491_v5, %v581_v13  ;;  %629 = vst [vmem:[%s945_s30 + $0x38] sm:$0xff] %v597_v16  ;;  %v595_v21 = vsel %vm531_vm15, %v419_v10, %v563_v14  ;;  %v440_v23 = vadd.f32 %v792_v18, %v935_v19  ;;  %v504_v24 = vadd.f32 %v808_v20, %v935_v19  ;;  %v431_v25 = vpop.f32.mrb[9].mxu0  ;;  %v495_v26 = vpop.f32.mrb[9].mxu1 }
  0xf9   : > { %645 = vst [vmem:[%s945_s30 + $0xb8] sm:$0xff] %v613_v17  ;;  %v611_v22 = vsel %vm547_vm0, %v483_v11, %v579_v15  ;;  %627 = vst [vmem:[%s945_s30 + $0x28] sm:$0xff] %v595_v21  ;;  %v432_v27 = vadd.f32 %v935_v19, %v431_v25  ;;  %v496_v28 = vadd.f32 %v935_v19, %v495_v26  ;;  %v793_v29 = vpop.f32.mrb[10].mxu0  ;;  %v809_v30 = vpop.f32.mrb[10].mxu1 }
  0xfa   : > { %643 = vst [vmem:[%s945_s30 + $0xa8] sm:$0xff] %v611_v22  ;;  %vm536_vm1 = vcmp.ge.f32.partialorder %v440_v23, 0.0  ;;  %v568_v31 = vmul.f32 0.2, %v440_v23  ;;  %vm552_vm2 = vcmp.ge.f32.partialorder %v504_v24, 0.0  ;;  %v443_v37 = vadd.f32 %v793_v29, %v935_v19  ;;  %v434_v39 = vpop.f32.mrb[11].mxu0 }
  0xfb   : > { %v584_v32 = vmul.f32 0.2, %v504_v24  ;;  %vm534_vm3 = vcmp.ge.f32.partialorder %v432_v27, 0.0  ;;  %v566_v33 = vmul.f32 0.2, %v432_v27  ;;  %vm550_vm4 = vcmp.ge.f32.partialorder %v496_v28, 0.0 }
  0xfc   : > { %v582_v34 = vmul.f32 0.2, %v496_v28  ;;  %v600_v35 = vsel %vm536_vm1, %v440_v23, %v568_v31  ;;  %v507_v38 = vadd.f32 %v809_v30, %v935_v19  ;;  %v498_v40 = vpop.f32.mrb[11].mxu1  ;;  %v435_v43 = vadd.f32 %v935_v19, %v434_v39 }
  0xfd   : > { %v616_v36 = vsel %vm552_vm2, %v504_v24, %v584_v32  ;;  %632 = vst [vmem:[%s945_s30 + $0x50] sm:$0xff] %v600_v35  ;;  %v598_v41 = vsel %vm534_vm3, %v432_v27, %v566_v33  ;;  %v499_v44 = vadd.f32 %v935_v19, %v498_v40  ;;  %v796_v45 = vpop.f32.mrb[12].mxu0  ;;  %vm537_vm5 = vcmp.ge.f32.partialorder %v443_v37, 0.0 }
  0xfe   : > { %648 = vst [vmem:[%s945_s30 + $0xd0] sm:$0xff] %v616_v36  ;;  %v614_v42 = vsel %vm550_vm4, %v496_v28, %v582_v34  ;;  %v812_v46 = vpop.f32.mrb[12].mxu1  ;;  %630 = vst [vmem:[%s945_s30 + $0x40] sm:$0xff] %v598_v41  ;;  %v569_v47 = vmul.f32 0.2, %v443_v37  ;;  %vm553_vm6 = vcmp.ge.f32.partialorder %v507_v38, 0.0  ;;  %v456_v53 = vadd.f32 %v796_v45, %v935_v19 }
  0xff   : > { %646 = vst [vmem:[%s945_s30 + $0xc0] sm:$0xff] %v614_v42  ;;  %v585_v48 = vmul.f32 0.2, %v507_v38  ;;  %vm535_vm7 = vcmp.ge.f32.partialorder %v435_v43, 0.0  ;;  %v567_v49 = vmul.f32 0.2, %v435_v43  ;;  %v520_v54 = vadd.f32 %v812_v46, %v935_v19 }
 0x100   : > { %vm551_vm8 = vcmp.ge.f32.partialorder %v499_v44, 0.0  ;;  %v583_v50 = vmul.f32 0.2, %v499_v44  ;;  %v601_v51 = vsel %vm537_vm5, %v443_v37, %v569_v47  ;;  %v447_v55 = vpop.f32.mrb[13].mxu0  ;;  %v511_v56 = vpop.f32.mrb[13].mxu1  ;;  %vm540_vm9 = vcmp.ge.f32.partialorder %v456_v53, 0.0 }
 0x101   : > { %v617_v52 = vsel %vm553_vm6, %v507_v38, %v585_v48  ;;  %633 = vst [vmem:[%s945_s30 + $0x58] sm:$0xff] %v601_v51  ;;  %v599_v57 = vsel %vm535_vm7, %v435_v43, %v567_v49  ;;  %v448_v59 = vadd.f32 %v935_v19, %v447_v55  ;;  %v512_v60 = vadd.f32 %v935_v19, %v511_v56  ;;  %v797_v61 = vpop.f32.mrb[14].mxu0  ;;  %v813_v62 = vpop.f32.mrb[14].mxu1 }
 0x102   : > { %649 = vst [vmem:[%s945_s30 + $0xd8] sm:$0xff] %v617_v52  ;;  %v615_v58 = vsel %vm551_vm8, %v499_v44, %v583_v50  ;;  %631 = vst [vmem:[%s945_s30 + $0x48] sm:$0xff] %v599_v57  ;;  %v572_v63 = vmul.f32 0.2, %v456_v53  ;;  %vm556_vm10 = vcmp.ge.f32.partialorder %v520_v54, 0.0  ;;  %v459_v5 = vadd.f32 %v797_v61, %v935_v19  ;;  %v450_v7 = vpop.f32.mrb[15].mxu0 }
 0x103   : > { %647 = vst [vmem:[%s945_s30 + $0xc8] sm:$0xff] %v615_v58  ;;  %v588_v0 = vmul.f32 0.2, %v520_v54  ;;  %vm538_vm11 = vcmp.ge.f32.partialorder %v448_v59, 0.0  ;;  %v570_v1 = vmul.f32 0.2, %v448_v59  ;;  %v523_v6 = vadd.f32 %v813_v62, %v935_v19 }
 0x104   : > { %vm554_vm12 = vcmp.ge.f32.partialorder %v512_v60, 0.0  ;;  %v586_v2 = vmul.f32 0.2, %v512_v60  ;;  %v604_v3 = vsel %vm540_vm9, %v456_v53, %v572_v63  ;;  %v514_v8 = vpop.f32.mrb[15].mxu1  ;;  %v451_v11 = vadd.f32 %v935_v19, %v450_v7 }
 0x105   : > { %v620_v4 = vsel %vm556_vm10, %v520_v54, %v588_v0  ;;  %636 = vst [vmem:[%s945_s30 + $0x70] sm:$0xff] %v604_v3  ;;  %v602_v9 = vsel %vm538_vm11, %v448_v59, %v570_v1  ;;  %v515_v12 = vadd.f32 %v935_v19, %v514_v8  ;;  %vm541_vm13 = vcmp.ge.f32.partialorder %v459_v5, 0.0 }
 0x106   : > { %652 = vst [vmem:[%s945_s30 + $0xf0] sm:$0xff] %v620_v4  ;;  %v618_v10 = vsel %vm554_vm12, %v512_v60, %v586_v2  ;;  %634 = vst [vmem:[%s945_s30 + $0x60] sm:$0xff] %v602_v9  ;;  %v573_v13 = vmul.f32 0.2, %v459_v5  ;;  %vm557_vm14 = vcmp.ge.f32.partialorder %v523_v6, 0.0  ;;  %vm539_vm15 = vcmp.ge.f32.partialorder %v451_v11, 0.0 }
 0x107   : > { %650 = vst [vmem:[%s945_s30 + $0xe0] sm:$0xff] %v618_v10  ;;  %v589_v14 = vmul.f32 0.2, %v523_v6  ;;  %v571_v15 = vmul.f32 0.2, %v451_v11  ;;  %vm555_vm0 = vcmp.ge.f32.partialorder %v515_v12, 0.0 }
 0x108   : > { %v587_v16 = vmul.f32 0.2, %v515_v12  ;;  %v605_v17 = vsel %vm541_vm13, %v459_v5, %v573_v13 }
 0x109   : > { %v621_v18 = vsel %vm557_vm14, %v523_v6, %v589_v14  ;;  %637 = vst [vmem:[%s945_s30 + $0x78] sm:$0xff] %v605_v17  ;;  %v603_v20 = vsel %vm539_vm15, %v451_v11, %v571_v15 }
 0x10a   : > { %653 = vst [vmem:[%s945_s30 + $0xf8] sm:$0xff] %v621_v18  ;;  %v619_v21 = vsel %vm555_vm0, %v515_v12, %v587_v16  ;;  %635 = vst [vmem:[%s945_s30 + $0x68] sm:$0xff] %v603_v20 }
 0x10b   : > { %651 = vst [vmem:[%s945_s30 + $0xe8] sm:$0xff] %v619_v21 }
 0x10c PF: > { %s13_s12 = sadd.s32 1, %s853_s12  }
 0x10d   : > { %p10_p4 = scmp.ge.s32.totalorder %s13_s12, 4  }
 0x10f   :  { %12 = sbr.rel (!%p10_p4) target bundleno = 1 (0x1), region = 62 }

// kernel: _lambda_.9
= control target key start
LH: loop header
LB: loop body
LE: loop exit
PB: predicated region body
PF: predicated region fallthrough
CT: control target
= control target key end

     0   :  { %v587_v32 = vmov 0.0   ;;  %s793_s1 = inlined_call_operand.vmem [shape: bf16[256,128], index: 1, kind: input, shape index: {}]   ;;  %s794_s0 = inlined_call_operand.vmem [shape: bf16[128,256], index: 0, kind: input, shape index: {}]   ;;  %s795_s3 = inlined_call_operand.vmem [shape: f32[1,128], index: 3, kind: output, shape index: {1}]   ;;  %s796_s4 = inlined_call_operand.vmem [shape: f32[1,128], index: 4, kind: output, shape index: {2}]   ;;  %s797_s2 = inlined_call_operand.vmem [shape: f32[128,128], index: 2, kind: output, shape index: {0}]  }
   0x1   :  { %v547_v0 = vld [vmem:[%s793_s1 + $0x40] sm:$0xff]   ;;  %v549_v2 = vld [vmem:[%s793_s1 + $0x48] sm:$0xff]   ;;  %v551_v4 = vld [vmem:[%s793_s1 + $0x50] sm:$0xff]   ;;  %356 = vst [vmem:[%s795_s3] sm:$0x1] %v587_v32 }
   0x2   :  { %v548_v1 = vld [vmem:[%s793_s1] sm:$0xff]   ;;  %466 = vmatprep.subr.bf16.mxu0 %v547_v0  ;;  %530 = vmatprep.subr.bf16.mxu1 %v547_v0  ;;  %v550_v3 = vld [vmem:[%s793_s1 + $0x8] sm:$0xff]   ;;  %v552_v5 = vld [vmem:[%s793_s1 + $0x10] sm:$0xff]   ;;  %357 = vst [vmem:[%s796_s4] sm:$0x1] %v587_v32 }
   0x3   :  { %467 = vmatpush3.bf16.msra.mxu0 %v548_v1  ;;  %538 = vmatpush3.bf16.msra.mxu1 %v548_v1  ;;  %v553_v6 = vld [vmem:[%s793_s1 + $0x58] sm:$0xff]   ;;  %v555_v8 = vld [vmem:[%s793_s1 + $0x60] sm:$0xff]   ;;  %v557_v10 = vld [vmem:[%s793_s1 + $0x68] sm:$0xff]  }
   0x4   :  { %468 = vmatprep.subr.bf16.mxu0 %v549_v2  ;;  %531 = vmatprep.subr.bf16.mxu1 %v549_v2  ;;  %v554_v7 = vld [vmem:[%s793_s1 + $0x18] sm:$0xff]   ;;  %v556_v9 = vld [vmem:[%s793_s1 + $0x20] sm:$0xff]   ;;  %v558_v12 = vld [vmem:[%s793_s1 + $0x28] sm:$0xff]  }
   0x5   :  { %v565_v11 = vld [vmem:[%s794_s0 + $0x4] ss:$8 sps:$4 sm:$0xff]   ;;  %v559_v14 = vld [vmem:[%s793_s1 + $0x70] sm:$0xff]   ;;  %v561_v16 = vld [vmem:[%s793_s1 + $0x78] sm:$0xff]  }
   0x6   :  { %v571_v13 = vld [vmem:[%s794_s0 + $0x44] ss:$8 sps:$4 sm:$0xff]   ;;  %271 = vmatprep.mubr.bf16.mxu0 %v565_v11  ;;  %v560_v15 = vld [vmem:[%s793_s1 + $0x30] sm:$0xff]   ;;  %v562_v17 = vld [vmem:[%s793_s1 + $0x38] sm:$0xff]  }
   0x7   :  { %469 = vmatpush3.bf16.msra.mxu0 %v550_v3  ;;  %539 = vmatpush3.bf16.msra.mxu1 %v550_v3  ;;  %v563_v18 = vld [vmem:[%s794_s0] ss:$8 sps:$4 sm:$0xff]   ;;  %v566_v20 = vld [vmem:[%s794_s0 + $0x14] ss:$8 sps:$4 sm:$0xff]   ;;  %v568_v22 = vld [vmem:[%s794_s0 + $0x10] ss:$8 sps:$4 sm:$0xff]  }
   0x8   :  { %470 = vmatprep.subr.bf16.mxu0 %v551_v4  ;;  %532 = vmatprep.subr.bf16.mxu1 %v551_v4  ;;  %v569_v19 = vld [vmem:[%s794_s0 + $0x40] ss:$8 sps:$4 sm:$0xff]   ;;  %v575_v21 = vld [vmem:[%s794_s0 + $0x54] ss:$8 sps:$4 sm:$0xff]   ;;  %v577_v23 = vld [vmem:[%s794_s0 + $0x50] ss:$8 sps:$4 sm:$0xff]  }
   0x9   :  { %303 = vmatprep.mubr.bf16.mxu1 %v571_v13  ;;  %v572_v24 = vld [vmem:[%s794_s0 + $0x24] ss:$8 sps:$4 sm:$0xff]   ;;  %v574_v26 = vld [vmem:[%s794_s0 + $0x20] ss:$8 sps:$4 sm:$0xff]   ;;  %v578_v28 = vld [vmem:[%s794_s0 + $0x34] ss:$8 sps:$4 sm:$0xff]  }
   0xa   :  { %v581_v25 = vld [vmem:[%s794_s0 + $0x64] ss:$8 sps:$4 sm:$0xff]   ;;  %v583_v27 = vld [vmem:[%s794_s0 + $0x60] ss:$8 sps:$4 sm:$0xff]   ;;  %v584_v29 = vld [vmem:[%s794_s0 + $0x74] ss:$8 sps:$4 sm:$0xff]  }
   0xb   :  { %471 = vmatpush3.bf16.msra.mxu0 %v552_v5  ;;  %540 = vmatpush3.bf16.msra.mxu1 %v552_v5  ;;  %v580_v30 = vld [vmem:[%s794_s0 + $0x30] ss:$8 sps:$4 sm:$0xff]  }
   0xc   :  { %472 = vmatprep.subr.bf16.mxu0 %v553_v6  ;;  %533 = vmatprep.subr.bf16.mxu1 %v553_v6  ;;  %v586_v31 = vld [vmem:[%s794_s0 + $0x70] ss:$8 sps:$4 sm:$0xff]  }
   0xf   :  { %473 = vmatpush3.bf16.msra.mxu0 %v554_v7  ;;  %541 = vmatpush3.bf16.msra.mxu1 %v554_v7 }
  0x10   :  { %474 = vmatprep.subr.bf16.mxu0 %v555_v8  ;;  %534 = vmatprep.subr.bf16.mxu1 %v555_v8 }
  0x13   :  { %475 = vmatpush3.bf16.msra.mxu0 %v556_v9  ;;  %542 = vmatpush3.bf16.msra.mxu1 %v556_v9 }
  0x14   :  { %476 = vmatprep.subr.bf16.mxu0 %v557_v10  ;;  %535 = vmatprep.subr.bf16.mxu1 %v557_v10 }
  0x17   :  { %477 = vmatpush3.bf16.msra.mxu0 %v558_v12  ;;  %543 = vmatpush3.bf16.msra.mxu1 %v558_v12 }
  0x18   :  { %478 = vmatprep.subr.bf16.mxu0 %v559_v14  ;;  %536 = vmatprep.subr.bf16.mxu1 %v559_v14 }
  0x1b   :  { %479 = vmatpush3.bf16.msra.mxu0 %v560_v15  ;;  %544 = vmatpush3.bf16.msra.mxu1 %v560_v15 }
  0x1c   :  { %480 = vmatprep.subr.bf16.mxu0 %v561_v16  ;;  %537 = vmatprep.subr.bf16.mxu1 %v561_v16 }
  0x1f   :  { %481 = vmatpush3.bf16.msra.mxu0 %v562_v17  ;;  %545 = vmatpush3.bf16.msra.mxu1 %v562_v17 }
  0x22   :  { %272 = vmatmul.mubr.bf16.vlgmr.msra.gmra.mrb[0].mxu0 %v563_v18  ;;  %304 = vmatmul.mubr.bf16.vlgmr.msra.gmra.mrb[0].mxu1 %v569_v19 }
  0x23   :  { %279 = vmatprep.mubr.bf16.mxu0 %v566_v20  ;;  %311 = vmatprep.mubr.bf16.mxu1 %v575_v21 }
  0x2a   :  { %280 = vmatmul.mubr.bf16.gmra.mrb[4].mxu0 %v568_v22  ;;  %312 = vmatmul.mubr.bf16.gmra.mrb[4].mxu1 %v577_v23 }
  0x2b   :  { %287 = vmatprep.mubr.bf16.mxu0 %v572_v24  ;;  %319 = vmatprep.mubr.bf16.mxu1 %v581_v25 }
  0x32   :  { %288 = vmatmul.mubr.bf16.gmra.mrb[8].mxu0 %v574_v26  ;;  %320 = vmatmul.mubr.bf16.gmra.mrb[8].mxu1 %v583_v27 }
  0x33   :  { %295 = vmatprep.mubr.bf16.mxu0 %v578_v28  ;;  %327 = vmatprep.mubr.bf16.mxu1 %v584_v29 }
  0x3a   :  { %296 = vmatmul.mubr.bf16.gmra.mrb[12].mxu0 %v580_v30  ;;  %328 = vmatmul.mubr.bf16.gmra.mrb[12].mxu1 %v586_v31 }
  0xf5   :  { %v482_v33 = vpop.f32.mrb[0].mxu0  ;;  %v506_v34 = vpop.f32.mrb[0].mxu1 }
  0xf6   :  { %v483_v35 = vpop.f32.mrb[1].mxu0  ;;  %v507_v36 = vpop.f32.mrb[1].mxu1 }
  0xf7   :  { %v484_v37 = vadd.f32 %v483_v35, %v482_v33  ;;  %v485_v38 = vpop.f32.mrb[2].mxu0  ;;  %v715_v39 = vadd.f32 %v507_v36, %v506_v34  ;;  %v509_v40 = vpop.f32.mrb[2].mxu1 }
  0xf8   :  { %v486_v41 = vpop.f32.mrb[3].mxu0  ;;  %v510_v42 = vpop.f32.mrb[3].mxu1 }
  0xf9   :  { %336 = vst [vmem:[%s797_s2] sm:$0xff] %v484_v37  ;;  %v487_v43 = vadd.f32 %v486_v41, %v485_v38  ;;  %344 = vst [vmem:[%s797_s2 + $0x40] sm:$0xff] %v715_v39  ;;  %v724_v44 = vadd.f32 %v510_v42, %v509_v40  ;;  %v383_v45 = vmul.f32 %v484_v37, %v484_v37 }
  0xfa   :  { %v391_v38 = vmul.f32 %v715_v39, %v715_v39 }
  0xfb   :  { %337 = vst [vmem:[%s797_s2 + $0x8] sm:$0xff] %v487_v43  ;;  %v359_v46 = vadd.f32 %v487_v43, %v484_v37  ;;  %v384_v47 = vmul.f32 %v487_v43, %v487_v43  ;;  %345 = vst [vmem:[%s797_s2 + $0x48] sm:$0xff] %v724_v44  ;;  %v392_v42 = vmul.f32 %v724_v44, %v724_v44 }
  0xfd   :  { %v399_v48 = vadd.f32 %v384_v47, %v383_v45  ;;  %v488_v49 = vpop.f32.mrb[4].mxu0  ;;  %v512_v50 = vpop.f32.mrb[4].mxu1 }
  0xfe   :  { %v489_v51 = vpop.f32.mrb[5].mxu0  ;;  %v513_v52 = vpop.f32.mrb[5].mxu1 }
  0xff   :  { %v490_v53 = vadd.f32 %v489_v51, %v488_v49  ;;  %v491_v54 = vpop.f32.mrb[6].mxu0  ;;  %v733_v55 = vadd.f32 %v513_v52, %v512_v50  ;;  %v515_v56 = vpop.f32.mrb[6].mxu1 }
 0x100   :  { %v492_v57 = vpop.f32.mrb[7].mxu0  ;;  %v516_v58 = vpop.f32.mrb[7].mxu1 }
 0x101   :  { %338 = vst [vmem:[%s797_s2 + $0x10] sm:$0xff] %v490_v53  ;;  %v360_v59 = vadd.f32 %v490_v53, %v359_v46  ;;  %v385_v60 = vmul.f32 %v490_v53, %v490_v53  ;;  %v493_v61 = vadd.f32 %v492_v57, %v491_v54  ;;  %346 = vst [vmem:[%s797_s2 + $0x50] sm:$0xff] %v733_v55 }
 0x102   :  { %v517_v62 = vadd.f32 %v516_v58, %v515_v56  ;;  %v393_v46 = vmul.f32 %v733_v55, %v733_v55 }
 0x103   :  { %v400_v63 = vadd.f32 %v399_v48, %v385_v60  ;;  %339 = vst [vmem:[%s797_s2 + $0x18] sm:$0xff] %v493_v61  ;;  %v361_v0 = vadd.f32 %v493_v61, %v360_v59  ;;  %v386_v1 = vmul.f32 %v493_v61, %v493_v61 }
 0x104   :  { %347 = vst [vmem:[%s797_s2 + $0x58] sm:$0xff] %v517_v62  ;;  %v394_v49 = vmul.f32 %v517_v62, %v517_v62 }
 0x105   :  { %v401_v2 = vadd.f32 %v400_v63, %v386_v1  ;;  %v494_v3 = vpop.f32.mrb[8].mxu0  ;;  %v518_v4 = vpop.f32.mrb[8].mxu1 }
 0x106   :  { %v495_v5 = vpop.f32.mrb[9].mxu0  ;;  %v519_v6 = vpop.f32.mrb[9].mxu1 }
 0x107   :  { %v496_v7 = vadd.f32 %v495_v5, %v494_v3  ;;  %v497_v8 = vpop.f32.mrb[10].mxu0  ;;  %v520_v9 = vadd.f32 %v519_v6, %v518_v4  ;;  %v521_v10 = vpop.f32.mrb[10].mxu1 }
 0x108   :  { %v498_v11 = vpop.f32.mrb[11].mxu0  ;;  %v522_v12 = vpop.f32.mrb[11].mxu1 }
 0x109   :  { %340 = vst [vmem:[%s797_s2 + $0x20] sm:$0xff] %v496_v7  ;;  %v362_v13 = vadd.f32 %v496_v7, %v361_v0  ;;  %v387_v14 = vmul.f32 %v496_v7, %v496_v7  ;;  %v499_v15 = vadd.f32 %v498_v11, %v497_v8  ;;  %348 = vst [vmem:[%s797_s2 + $0x60] sm:$0xff] %v520_v9  ;;  %v358_v8 = vld [vmem:[%s795_s3] sm:$0x1] }
 0x10a   :  { %v523_v16 = vadd.f32 %v522_v12, %v521_v10  ;;  %v395_v53 = vmul.f32 %v520_v9, %v520_v9  ;;  %v382_v11 = vld [vmem:[%s796_s4] sm:$0x1] }
 0x10b   :  { %v402_v17 = vadd.f32 %v401_v2, %v387_v14  ;;  %341 = vst [vmem:[%s797_s2 + $0x28] sm:$0xff] %v499_v15  ;;  %v363_v18 = vadd.f32 %v499_v15, %v362_v13  ;;  %v388_v19 = vmul.f32 %v499_v15, %v499_v15 }
 0x10c   :  { %349 = vst [vmem:[%s797_s2 + $0x68] sm:$0xff] %v523_v16  ;;  %v396_v57 = vmul.f32 %v523_v16, %v523_v16 }
 0x10d   :  { %v403_v20 = vadd.f32 %v402_v17, %v388_v19  ;;  %v500_v21 = vpop.f32.mrb[12].mxu0  ;;  %v524_v22 = vpop.f32.mrb[12].mxu1 }
 0x10e   :  { %v501_v23 = vpop.f32.mrb[13].mxu0  ;;  %v525_v24 = vpop.f32.mrb[13].mxu1 }
 0x10f   :  { %v502_v25 = vadd.f32 %v501_v23, %v500_v21  ;;  %v503_v26 = vpop.f32.mrb[14].mxu0  ;;  %v526_v27 = vadd.f32 %v525_v24, %v524_v22  ;;  %v527_v28 = vpop.f32.mrb[14].mxu1 }
 0x110   :  { %v504_v29 = vpop.f32.mrb[15].mxu0  ;;  %v528_v30 = vpop.f32.mrb[15].mxu1 }
 0x111   :  { %342 = vst [vmem:[%s797_s2 + $0x30] sm:$0xff] %v502_v25  ;;  %v364_v31 = vadd.f32 %v502_v25, %v363_v18  ;;  %v389_v32 = vmul.f32 %v502_v25, %v502_v25  ;;  %v505_v33 = vadd.f32 %v504_v29, %v503_v26  ;;  %350 = vst [vmem:[%s797_s2 + $0x70] sm:$0xff] %v526_v27 }
 0x112   :  { %v529_v34 = vadd.f32 %v528_v30, %v527_v28  ;;  %v397_v58 = vmul.f32 %v526_v27, %v526_v27 }
 0x113   :  { %v404_v35 = vadd.f32 %v403_v20, %v389_v32  ;;  %343 = vst [vmem:[%s797_s2 + $0x38] sm:$0xff] %v505_v33  ;;  %v365_v36 = vadd.f32 %v505_v33, %v364_v31  ;;  %v390_v37 = vmul.f32 %v505_v33, %v505_v33 }
 0x114   :  { %351 = vst [vmem:[%s797_s2 + $0x78] sm:$0xff] %v529_v34  ;;  %v398_v63 = vmul.f32 %v529_v34, %v529_v34 }
 0x115   :  { %v366_v40 = vadd.f32 %v715_v39, %v365_v36  ;;  %v405_v41 = vadd.f32 %v404_v35, %v390_v37 }
 0x117   :  { %v367_v43 = vadd.f32 %v724_v44, %v366_v40  ;;  %v406_v45 = vadd.f32 %v405_v41, %v391_v38 }
 0x119   :  { %v407_v47 = vadd.f32 %v406_v45, %v392_v42  ;;  %v368_v48 = vadd.f32 %v733_v55, %v367_v43 }
 0x11b   :  { %v369_v50 = vadd.f32 %v517_v62, %v368_v48  ;;  %v408_v51 = vadd.f32 %v407_v47, %v393_v46 }
 0x11d   :  { %v370_v52 = vadd.f32 %v520_v9, %v369_v50  ;;  %v409_v54 = vadd.f32 %v408_v51, %v394_v49 }
 0x11f   :  { %v410_v39 = vadd.f32 %v409_v54, %v395_v53  ;;  %v371_v56 = vadd.f32 %v523_v16, %v370_v52 }
 0x121   :  { %v411_v59 = vadd.f32 %v410_v39, %v396_v57  ;;  %v372_v60 = vadd.f32 %v526_v27, %v371_v56 }
 0x123   :  { %v412_v44 = vadd.f32 %v411_v59, %v397_v58  ;;  %v373_v61 = vadd.f32 %v529_v34, %v372_v60 }
 0x125   :  { %v374_v0 = vrot.slane %v373_v61, 4  ;;  %v413_v1 = vadd.f32 %v412_v44, %v398_v63 }
 0x127   :  { %v375_v2 = vadd.f32 %v374_v0, %v373_v61  ;;  %v414_v3 = vrot.slane %v413_v1, 4 }
 0x129   :  { %v376_v55 = vrot.slane %v375_v2, 2  ;;  %v415_v4 = vadd.f32 %v414_v3, %v413_v1 }
 0x12b   :  { %v377_v62 = vadd.f32 %v376_v55, %v375_v2  ;;  %v416_v5 = vrot.slane %v415_v4, 2 }
 0x12d   :  { %v378_v6 = vrot.slane %v377_v62, 1  ;;  %v417_v7 = vadd.f32 %v416_v5, %v415_v4 }
 0x12f   :  { %v379_v9 = vadd.f32 %v378_v6, %v377_v62  ;;  %v418_v10 = vrot.slane %v417_v7, 1 }
 0x131   :  { %v380_v12 = vadd.f32 %v379_v9, %v358_v8  ;;  %v419_v13 = vadd.f32 %v418_v10, %v417_v7 }
 0x133   :  { %381 = vst [vmem:[%s795_s3] sm:$0x1] %v380_v12  ;;  %v420_v14 = vadd.f32 %v419_v13, %v382_v11 }
 0x135   :  { %421 = vst [vmem:[%s796_s4] sm:$0x1] %v420_v14 }

// kernel: _lambda_.10
= control target key start
LH: loop header
LB: loop body
LE: loop exit
PB: predicated region body
PF: predicated region fallthrough
CT: control target
= control target key end

     0   :  { %v43_v5 = vlaneseq  ;;  %s450_s1 = inlined_call_operand.vmem [shape: f32[1,128], index: 1, kind: input, shape index: {}]   ;;  %s451_s2 = inlined_call_operand.vmem [shape: f32[1,128], index: 2, kind: input, shape index: {}]   ;;  %s452_s0 = inlined_call_operand.vmem [shape: f32[128,128], index: 0, kind: input, shape index: {}]   ;;  %s453_s3 = inlined_call_operand.vmem [shape: f32[8,128], index: 3, kind: input, shape index: {}]   ;;  %s454_s4 = inlined_call_operand.vmem [shape: f32[128,128], index: 4, kind: output, shape index: {}]  }
   0x1   :  { %v33_v0 = vld [vmem:[%s450_s1] sm:$0x1]  ;;  %v18_v13 = vld [vmem:[%s452_s0 + $0x8] sm:$0xff]  ;;  %v19_v14 = vld [vmem:[%s452_s0 + $0x10] sm:$0xff] }
   0x2   :  { %v35_v1 = vld [vmem:[%s451_s2] sm:$0x1]  ;;  %v34_v2 = vmul.f32 0.0078125, %v33_v0  ;;  %v44_v8 = vshrl.u32 %v43_v5, 7  ;;  %v20_v15 = vld [vmem:[%s452_s0 + $0x18] sm:$0xff]  ;;  %v22_v17 = vld [vmem:[%s452_s0 + $0x28] sm:$0xff] }
   0x3   :  { %v36_v3 = vmul.f32 0.0078125, %v35_v1  ;;  %v17_v11 = vld [vmem:[%s452_s0] sm:$0xff]  ;;  %v23_v18 = vld [vmem:[%s452_s0 + $0x30] sm:$0xff]  ;;  %v24_v19 = vld [vmem:[%s452_s0 + $0x38] sm:$0xff] }
   0x4   :  { %v37_v4 = vmul.f32 %v34_v2, %v34_v2  ;;  %v45_v10 = vsub.s32 0, %v44_v8  ;;  %v21_v16 = vld [vmem:[%s452_s0 + $0x20] sm:$0xff]  ;;  %v265_v21 = vld [vmem:[%s452_s0 + $0x48] sm:$0xff]  ;;  %v271_v23 = vld [vmem:[%s452_s0 + $0x50] sm:$0xff] }
   0x5   :  { %v260_v20 = vld [vmem:[%s452_s0 + $0x40] sm:$0xff]  ;;  %v276_v24 = vld [vmem:[%s452_s0 + $0x58] sm:$0xff]  ;;  %v290_v30 = vld [vmem:[%s452_s0 + $0x68] sm:$0xff] }
   0x6   :  { %v38_v6 = vsub.f32 %v36_v3, %v37_v4  ;;  %v234_v12 = vrot.slane %v34_v2, %v45_v10  ;;  %v281_v25 = vld [vmem:[%s452_s0 + $0x60] sm:$0xff]  ;;  %v295_v31 = vld [vmem:[%s452_s0 + $0x70] sm:$0xff]  ;;  %v300_v32 = vld [vmem:[%s452_s0 + $0x78] sm:$0xff] }
   0x7   :  { %v318_v42 = vld [vmem:[%s453_s3 + $0x1] ss:$0 sm:$0xff]  ;;  %v335_v51 = vld [vmem:[%s453_s3 + $0x2] ss:$0 sm:$0xff] }
   0x8   :  { %v39_v7 = vmax.f32 %v38_v6, 0.0  ;;  %v48_v22 = vsub.f32 %v17_v11, %v234_v12  ;;  %v49_v26 = vsub.f32 %v18_v13, %v234_v12  ;;  %v50_v27 = vsub.f32 %v19_v14, %v234_v12 }
   0x9   :  { %v51_v28 = vsub.f32 %v20_v15, %v234_v12  ;;  %v52_v29 = vsub.f32 %v21_v16, %v234_v12  ;;  %v53_v34 = vsub.f32 %v22_v17, %v234_v12  ;;  %v54_v35 = vsub.f32 %v23_v18, %v234_v12 }
   0xa   :  { %v40_v9 = vadd.f32 1e-05, %v39_v7  ;;  %v55_v36 = vsub.f32 %v24_v19, %v234_v12  ;;  %v56_v37 = vsub.f32 %v260_v20, %v234_v12  ;;  %v57_v39 = vsub.f32 %v265_v21, %v234_v12 }
   0xb   :  { %v58_v40 = vsub.f32 %v271_v23, %v234_v12  ;;  %v59_v41 = vsub.f32 %v276_v24, %v234_v12  ;;  %v60_v43 = vsub.f32 %v281_v25, %v234_v12  ;;  %v61_v44 = vsub.f32 %v290_v30, %v234_v12 }
   0xc   :  { %198 = vrsqrt.f32 %v40_v9  ;;  %v62_v45 = vsub.f32 %v295_v31, %v234_v12  ;;  %v63_v46 = vsub.f32 %v300_v32, %v234_v12 }
  0x16   :  { %v199_v33 = vpop.eup %198 }
  0x17   :  { %v307_v38 = vrot.slane %v199_v33, %v45_v10 }
  0x19   :  { %v70_v47 = vmul.f32 %v307_v38, %v48_v22  ;;  %v71_v48 = vmul.f32 %v307_v38, %v49_v26  ;;  %v72_v49 = vmul.f32 %v307_v38, %v50_v27  ;;  %v73_v50 = vmul.f32 %v307_v38, %v51_v28 }
  0x1a   :  { %v74_v52 = vmul.f32 %v307_v38, %v52_v29  ;;  %v75_v53 = vmul.f32 %v307_v38, %v53_v34  ;;  %v76_v54 = vmul.f32 %v307_v38, %v54_v35  ;;  %v77_v55 = vmul.f32 %v307_v38, %v55_v36 }
  0x1b   :  { %v91_v56 = vmul.f32 %v318_v42, %v70_v47  ;;  %v92_v57 = vmul.f32 %v318_v42, %v71_v48  ;;  %v93_v58 = vmul.f32 %v318_v42, %v72_v49  ;;  %v94_v59 = vmul.f32 %v318_v42, %v73_v50 }
  0x1c   :  { %v95_v60 = vmul.f32 %v318_v42, %v74_v52  ;;  %v96_v61 = vmul.f32 %v318_v42, %v75_v53  ;;  %v97_v62 = vmul.f32 %v318_v42, %v76_v54  ;;  %v98_v63 = vmul.f32 %v318_v42, %v77_v55 }
  0x1d   :  { %v112_v0 = vadd.f32 %v335_v51, %v91_v56  ;;  %v113_v1 = vadd.f32 %v335_v51, %v92_v57  ;;  %v114_v2 = vadd.f32 %v335_v51, %v93_v58  ;;  %v115_v3 = vadd.f32 %v335_v51, %v94_v59 }
  0x1e   :  { %v116_v4 = vadd.f32 %v335_v51, %v95_v60  ;;  %v117_v5 = vadd.f32 %v335_v51, %v96_v61  ;;  %v118_v6 = vadd.f32 %v335_v51, %v97_v62  ;;  %v119_v7 = vadd.f32 %v335_v51, %v98_v63 }
  0x1f   :  { %vm128_vm0 = vcmp.ge.f32.partialorder %v112_v0, 0.0  ;;  %v144_v8 = vmul.f32 0.2, %v112_v0  ;;  %vm129_vm1 = vcmp.ge.f32.partialorder %v113_v1, 0.0  ;;  %v145_v9 = vmul.f32 0.2, %v113_v1 }
  0x20   :  { %vm130_vm2 = vcmp.ge.f32.partialorder %v114_v2, 0.0  ;;  %v146_v10 = vmul.f32 0.2, %v114_v2  ;;  %vm131_vm3 = vcmp.ge.f32.partialorder %v115_v3, 0.0  ;;  %v147_v11 = vmul.f32 0.2, %v115_v3 }
  0x21   :  { %v160_v13 = vsel %vm128_vm0, %v112_v0, %v144_v8  ;;  %v161_v14 = vsel %vm129_vm1, %v113_v1, %v145_v9  ;;  %vm132_vm4 = vcmp.ge.f32.partialorder %v116_v4, 0.0  ;;  %v148_v15 = vmul.f32 0.2, %v116_v4 }
  0x22   :  { %176 = vst [vmem:[%s454_s4] sm:$0xff] %v160_v13  ;;  %177 = vst [vmem:[%s454_s4 + $0x8] sm:$0xff] %v161_v14  ;;  %v162_v16 = vsel %vm130_vm2, %v114_v2, %v146_v10  ;;  %v163_v17 = vsel %vm131_vm3, %v115_v3, %v147_v11  ;;  %vm133_vm5 = vcmp.ge.f32.partialorder %v117_v5, 0.0  ;;  %v149_v18 = vmul.f32 0.2, %v117_v5 }
  0x23   :  { %178 = vst [vmem:[%s454_s4 + $0x10] sm:$0xff] %v162_v16  ;;  %179 = vst [vmem:[%s454_s4 + $0x18] sm:$0xff] %v163_v17  ;;  %v164_v19 = vsel %vm132_vm4, %v116_v4, %v148_v15  ;;  %vm134_vm6 = vcmp.ge.f32.partialorder %v118_v6, 0.0  ;;  %v150_v21 = vmul.f32 0.2, %v118_v6  ;;  %vm135_vm7 = vcmp.ge.f32.partialorder %v119_v7, 0.0 }
  0x24   :  { %180 = vst [vmem:[%s454_s4 + $0x20] sm:$0xff] %v164_v19  ;;  %v165_v22 = vsel %vm133_vm5, %v117_v5, %v149_v18  ;;  %v151_v26 = vmul.f32 0.2, %v119_v7  ;;  %v78_v27 = vmul.f32 %v307_v38, %v56_v37  ;;  %v79_v28 = vmul.f32 %v307_v38, %v57_v39 }
  0x25   :  { %181 = vst [vmem:[%s454_s4 + $0x28] sm:$0xff] %v165_v22  ;;  %v166_v29 = vsel %vm134_vm6, %v118_v6, %v150_v21  ;;  %v80_v33 = vmul.f32 %v307_v38, %v58_v40  ;;  %v81_v34 = vmul.f32 %v307_v38, %v59_v41  ;;  %v82_v20 = vmul.f32 %v307_v38, %v60_v43 }
  0x26   :  { %182 = vst [vmem:[%s454_s4 + $0x30] sm:$0xff] %v166_v29  ;;  %v167_v35 = vsel %vm135_vm7, %v119_v7, %v151_v26  ;;  %v99_v36 = vmul.f32 %v318_v42, %v78_v27  ;;  %v100_v23 = vmul.f32 %v318_v42, %v79_v28  ;;  %v83_v24 = vmul.f32 %v307_v38, %v61_v44 }
  0x27   :  { %183 = vst [vmem:[%s454_s4 + $0x38] sm:$0xff] %v167_v35  ;;  %v101_v25 = vmul.f32 %v318_v42, %v80_v33  ;;  %v102_v37 = vmul.f32 %v318_v42, %v81_v34  ;;  %v103_v39 = vmul.f32 %v318_v42, %v82_v20  ;;  %v84_v40 = vmul.f32 %v307_v38, %v62_v45 }
  0x28   :  { %v120_v41 = vadd.f32 %v335_v51, %v99_v36  ;;  %v121_v30 = vadd.f32 %v335_v51, %v100_v23  ;;  %v104_v43 = vmul.f32 %v318_v42, %v83_v24  ;;  %v85_v44 = vmul.f32 %v307_v38, %v63_v46 }
  0x29   :  { %v122_v47 = vadd.f32 %v335_v51, %v101_v25  ;;  %v123_v48 = vadd.f32 %v335_v51, %v102_v37  ;;  %v124_v49 = vadd.f32 %v335_v51, %v103_v39  ;;  %v105_v31 = vmul.f32 %v318_v42, %v84_v40 }
  0x2a   :  { %vm136_vm8 = vcmp.ge.f32.partialorder %v120_v41, 0.0  ;;  %v152_v45 = vmul.f32 0.2, %v120_v41  ;;  %vm137_vm9 = vcmp.ge.f32.partialorder %v121_v30, 0.0  ;;  %v153_v50 = vmul.f32 0.2, %v121_v30 }
  0x2b   :  { %vm138_vm10 = vcmp.ge.f32.partialorder %v122_v47, 0.0  ;;  %v154_v52 = vmul.f32 0.2, %v122_v47  ;;  %vm139_vm11 = vcmp.ge.f32.partialorder %v123_v48, 0.0  ;;  %v155_v53 = vmul.f32 0.2, %v123_v48 }
  0x2c   :  { %v168_v54 = vsel %vm136_vm8, %v120_v41, %v152_v45  ;;  %v169_v12 = vsel %vm137_vm9, %v121_v30, %v153_v50  ;;  %vm140_vm12 = vcmp.ge.f32.partialorder %v124_v49, 0.0  ;;  %v156_v32 = vmul.f32 0.2, %v124_v49 }
  0x2d   :  { %184 = vst [vmem:[%s454_s4 + $0x40] sm:$0xff] %v168_v54  ;;  %185 = vst [vmem:[%s454_s4 + $0x48] sm:$0xff] %v169_v12  ;;  %v170_v38 = vsel %vm138_vm10, %v122_v47, %v154_v52  ;;  %v171_v46 = vsel %vm139_vm11, %v123_v48, %v155_v53  ;;  %v125_v55 = vadd.f32 %v335_v51, %v104_v43 }
  0x2e   :  { %v126_v56 = vadd.f32 %v335_v51, %v105_v31  ;;  %186 = vst [vmem:[%s454_s4 + $0x50] sm:$0xff] %v170_v38  ;;  %187 = vst [vmem:[%s454_s4 + $0x58] sm:$0xff] %v171_v46  ;;  %v172_v57 = vsel %vm140_vm12, %v124_v49, %v156_v32  ;;  %v106_v58 = vmul.f32 %v318_v42, %v85_v44 }
  0x2f   :  { %188 = vst [vmem:[%s454_s4 + $0x60] sm:$0xff] %v172_v57  ;;  %vm141_vm13 = vcmp.ge.f32.partialorder %v125_v55, 0.0  ;;  %v157_v59 = vmul.f32 0.2, %v125_v55 }
  0x30   :  { %vm142_vm14 = vcmp.ge.f32.partialorder %v126_v56, 0.0  ;;  %v158_v60 = vmul.f32 0.2, %v126_v56  ;;  %v127_v61 = vadd.f32 %v335_v51, %v106_v58 }
  0x31   :  { %v173_v62 = vsel %vm141_vm13, %v125_v55, %v157_v59 }
  0x32   :  { %v174_v63 = vsel %vm142_vm14, %v126_v56, %v158_v60  ;;  %189 = vst [vmem:[%s454_s4 + $0x68] sm:$0xff] %v173_v62  ;;  %vm143_vm15 = vcmp.ge.f32.partialorder %v127_v61, 0.0  ;;  %v159_v42 = vmul.f32 0.2, %v127_v61 }
  0x33   :  { %190 = vst [vmem:[%s454_s4 + $0x70] sm:$0xff] %v174_v63 }
  0x34   :  { %v175_v0 = vsel %vm143_vm15, %v127_v61, %v159_v42 }
  0x35   :  { %191 = vst [vmem:[%s454_s4 + $0x78] sm:$0xff] %v175_v0 }

// kernel: _lambda_.11
= control target key start
LH: loop header
LB: loop body
LE: loop exit
PB: predicated region body
PF: predicated region fallthrough
CT: control target
= control target key end

     0   :  { %v608_v40 = vmov 0.0   ;;  %s784_s1 = inlined_call_operand.vmem [shape: bf16[512,128], index: 1, kind: input, shape index: {}]   ;;  %s785_s0 = inlined_call_operand.vmem [shape: bf16[32,512], index: 0, kind: input, shape index: {}]   ;;  %s786_s3 = inlined_call_operand.vmem [shape: f32[1,128], index: 3, kind: output, shape index: {1}]   ;;  %s787_s4 = inlined_call_operand.vmem [shape: f32[1,128], index: 4, kind: output, shape index: {2}]   ;;  %s788_s2 = inlined_call_operand.vmem [shape: f32[32,128], index: 2, kind: output, shape index: {0}]  }
   0x1   :  { %v564_v0 = vld [vmem:[%s784_s1 + $0x40] sm:$0xff]   ;;  %v568_v4 = vld [vmem:[%s784_s1 + $0x48] sm:$0xff]   ;;  %v572_v8 = vld [vmem:[%s784_s1 + $0x50] sm:$0xff]   ;;  %425 = vst [vmem:[%s786_s3] sm:$0x1] %v608_v40 }
   0x2   :  { %v565_v1 = vld [vmem:[%s784_s1 + $0xc0] sm:$0xff]   ;;  %507 = vmatprep.subr.bf16.mxu0 %v564_v0  ;;  %v569_v5 = vld [vmem:[%s784_s1 + $0xc8] sm:$0xff]   ;;  %v573_v9 = vld [vmem:[%s784_s1 + $0xd0] sm:$0xff]   ;;  %426 = vst [vmem:[%s787_s4] sm:$0x1] %v608_v40 }
   0x3   :  { %v566_v2 = vld [vmem:[%s784_s1] sm:$0xff]   ;;  %535 = vmatprep.subr.bf16.mxu1 %v565_v1  ;;  %v570_v6 = vld [vmem:[%s784_s1 + $0x8] sm:$0xff]   ;;  %v574_v10 = vld [vmem:[%s784_s1 + $0x10] sm:$0xff]  }
   0x4   :  { %v567_v3 = vld [vmem:[%s784_s1 + $0x80] sm:$0xff]   ;;  %508 = vmatpush3.bf16.msra.mxu0 %v566_v2  ;;  %v571_v7 = vld [vmem:[%s784_s1 + $0x88] sm:$0xff]   ;;  %v575_v11 = vld [vmem:[%s784_s1 + $0x90] sm:$0xff]  }
   0x5   :  { %536 = vmatpush3.bf16.msra.mxu1 %v567_v3  ;;  %509 = vmatprep.subr.bf16.mxu0 %v568_v4  ;;  %v576_v12 = vld [vmem:[%s784_s1 + $0x58] sm:$0xff]   ;;  %v580_v16 = vld [vmem:[%s784_s1 + $0x60] sm:$0xff]   ;;  %v584_v20 = vld [vmem:[%s784_s1 + $0x68] sm:$0xff]  }
   0x6   :  { %537 = vmatprep.subr.bf16.mxu1 %v569_v5  ;;  %v577_v13 = vld [vmem:[%s784_s1 + $0xd8] sm:$0xff]   ;;  %v581_v17 = vld [vmem:[%s784_s1 + $0xe0] sm:$0xff]   ;;  %v585_v21 = vld [vmem:[%s784_s1 + $0xe8] sm:$0xff]  }
   0x7   :  { %v578_v14 = vld [vmem:[%s784_s1 + $0x18] sm:$0xff]   ;;  %v582_v18 = vld [vmem:[%s784_s1 + $0x20] sm:$0xff]   ;;  %v586_v22 = vld [vmem:[%s784_s1 + $0x28] sm:$0xff]  }
   0x8   :  { %510 = vmatpush3.bf16.msra.mxu0 %v570_v6  ;;  %v579_v15 = vld [vmem:[%s784_s1 + $0x98] sm:$0xff]   ;;  %v583_v19 = vld [vmem:[%s784_s1 + $0xa0] sm:$0xff]   ;;  %v587_v23 = vld [vmem:[%s784_s1 + $0xa8] sm:$0xff]  }
   0x9   :  { %538 = vmatpush3.bf16.msra.mxu1 %v571_v7  ;;  %511 = vmatprep.subr.bf16.mxu0 %v572_v8  ;;  %v588_v24 = vld [vmem:[%s784_s1 + $0x70] sm:$0xff]   ;;  %v592_v28 = vld [vmem:[%s784_s1 + $0x78] sm:$0xff]  }
   0xa   :  { %539 = vmatprep.subr.bf16.mxu1 %v573_v9  ;;  %v589_v25 = vld [vmem:[%s784_s1 + $0xf0] sm:$0xff]   ;;  %v593_v29 = vld [vmem:[%s784_s1 + $0xf8] sm:$0xff]  }
   0xb   :  { %v590_v26 = vld [vmem:[%s784_s1 + $0x30] sm:$0xff]   ;;  %v594_v30 = vld [vmem:[%s784_s1 + $0x38] sm:$0xff]  }
   0xc   :  { %512 = vmatpush3.bf16.msra.mxu0 %v574_v10  ;;  %v591_v27 = vld [vmem:[%s784_s1 + $0xb0] sm:$0xff]   ;;  %v595_v31 = vld [vmem:[%s784_s1 + $0xb8] sm:$0xff]  }
   0xd   :  { %540 = vmatpush3.bf16.msra.mxu1 %v575_v11  ;;  %513 = vmatprep.subr.bf16.mxu0 %v576_v12  ;;  %v596_v32 = vld [vmem:[%s785_s0] ss:$16 sps:$4 sm:$0xff]   ;;  %v598_v33 = vld [vmem:[%s785_s0 + $0x4] ss:$16 sps:$4 sm:$0xff]   ;;  %v599_v34 = vld [vmem:[%s785_s0 + $0x8] ss:$16 sps:$4 sm:$0xff]  }
   0xe   :  { %541 = vmatprep.subr.bf16.mxu1 %v577_v13  ;;  %v601_v35 = vld [vmem:[%s785_s0 + $0xc] ss:$16 sps:$4 sm:$0xff]   ;;  %351 = vmatprep.mubr.bf16.mxu0 %v598_v33  ;;  %v602_v36 = vld [vmem:[%s785_s0 + $0x24] ss:$16 sps:$4 sm:$0xff]   ;;  %v606_v38 = vld [vmem:[%s785_s0 + $0x20] ss:$16 sps:$4 sm:$0xff]  }
   0xf   :  { %400 = vmatprep.mubr.bf16.mxu1 %v601_v35  ;;  %v604_v37 = vld [vmem:[%s785_s0 + $0x2c] ss:$16 sps:$4 sm:$0xff]   ;;  %v607_v39 = vld [vmem:[%s785_s0 + $0x28] ss:$16 sps:$4 sm:$0xff]  }
  0x10   :  { %514 = vmatpush3.bf16.msra.mxu0 %v578_v14 }
  0x11   :  { %542 = vmatpush3.bf16.msra.mxu1 %v579_v15  ;;  %515 = vmatprep.subr.bf16.mxu0 %v580_v16 }
  0x12   :  { %543 = vmatprep.subr.bf16.mxu1 %v581_v17 }
  0x14   :  { %516 = vmatpush3.bf16.msra.mxu0 %v582_v18 }
  0x15   :  { %544 = vmatpush3.bf16.msra.mxu1 %v583_v19  ;;  %517 = vmatprep.subr.bf16.mxu0 %v584_v20 }
  0x16   :  { %545 = vmatprep.subr.bf16.mxu1 %v585_v21 }
  0x18   :  { %518 = vmatpush3.bf16.msra.mxu0 %v586_v22 }
  0x19   :  { %546 = vmatpush3.bf16.msra.mxu1 %v587_v23  ;;  %519 = vmatprep.subr.bf16.mxu0 %v588_v24  ;;  %v427_v24 = vld [vmem:[%s786_s3] sm:$0x1] }
  0x1a   :  { %547 = vmatprep.subr.bf16.mxu1 %v589_v25 }
  0x1c   :  { %520 = vmatpush3.bf16.msra.mxu0 %v590_v26 }
  0x1d   :  { %548 = vmatpush3.bf16.msra.mxu1 %v591_v27  ;;  %521 = vmatprep.subr.bf16.mxu0 %v592_v28  ;;  %v439_v27 = vld [vmem:[%s787_s4] sm:$0x1] }
  0x1e   :  { %549 = vmatprep.subr.bf16.mxu1 %v593_v29 }
  0x20   :  { %522 = vmatpush3.bf16.msra.mxu0 %v594_v30 }
  0x21   :  { %550 = vmatpush3.bf16.msra.mxu1 %v595_v31 }
  0x23   :  { %352 = vmatmul.mubr.bf16.vlgmr.msra.gmra.mrb[0].mxu0 %v596_v32 }
  0x24   :  { %401 = vmatmul.mubr.bf16.vlgmr.msra.gmra.mrb[0].mxu1 %v599_v34  ;;  %359 = vmatprep.mubr.bf16.mxu0 %v602_v36 }
  0x25   :  { %408 = vmatprep.mubr.bf16.mxu1 %v604_v37 }
  0x2b   :  { %360 = vmatmul.mubr.bf16.gmra.mrb[4].mxu0 %v606_v38 }
  0x2c   :  { %409 = vmatmul.mubr.bf16.gmra.mrb[4].mxu1 %v607_v39 }
  0xf6   :  { %v523_v41 = vpop.f32.mrb[0].mxu0 }
  0xf7   :  { %v551_v42 = vpop.f32.mrb[0].mxu1  ;;  %v524_v43 = vpop.f32.mrb[1].mxu0 }
  0xf8   :  { %v525_v44 = vadd.f32 %v524_v43, %v523_v41  ;;  %v552_v45 = vpop.f32.mrb[1].mxu1  ;;  %v526_v46 = vpop.f32.mrb[2].mxu0 }
  0xf9   :  { %v553_v47 = vadd.f32 %v552_v45, %v551_v42  ;;  %v554_v48 = vpop.f32.mrb[2].mxu1  ;;  %v527_v49 = vpop.f32.mrb[3].mxu0 }
  0xfa   :  { %v528_v50 = vadd.f32 %v527_v49, %v526_v46  ;;  %v555_v51 = vpop.f32.mrb[3].mxu1 }
  0xfb   :  { %v403_v52 = vadd.f32 %v553_v47, %v525_v44  ;;  %v556_v53 = vadd.f32 %v555_v51, %v554_v48 }
  0xfd   :  { %417 = vst [vmem:[%s788_s2] sm:$0xff] %v403_v52  ;;  %v406_v54 = vadd.f32 %v556_v53, %v528_v50  ;;  %v440_v56 = vmul.f32 %v403_v52, %v403_v52 }
  0xfe   :  { %v529_v55 = vpop.f32.mrb[4].mxu0 }
  0xff   :  { %418 = vst [vmem:[%s788_s2 + $0x8] sm:$0xff] %v406_v54  ;;  %v428_v57 = vadd.f32 %v406_v54, %v403_v52  ;;  %v441_v58 = vmul.f32 %v406_v54, %v406_v54  ;;  %v557_v59 = vpop.f32.mrb[4].mxu1  ;;  %v530_v60 = vpop.f32.mrb[5].mxu0 }
 0x100   :  { %v531_v61 = vadd.f32 %v530_v60, %v529_v55  ;;  %v558_v62 = vpop.f32.mrb[5].mxu1  ;;  %v532_v63 = vpop.f32.mrb[6].mxu0 }
 0x101   :  { %v444_v0 = vadd.f32 %v441_v58, %v440_v56  ;;  %v559_v1 = vadd.f32 %v558_v62, %v557_v59  ;;  %v560_v2 = vpop.f32.mrb[6].mxu1  ;;  %v533_v3 = vpop.f32.mrb[7].mxu0 }
 0x102   :  { %v534_v4 = vadd.f32 %v533_v3, %v532_v63  ;;  %v561_v5 = vpop.f32.mrb[7].mxu1 }
 0x103   :  { %v411_v6 = vadd.f32 %v559_v1, %v531_v61  ;;  %v562_v7 = vadd.f32 %v561_v5, %v560_v2 }
 0x105   :  { %419 = vst [vmem:[%s788_s2 + $0x10] sm:$0xff] %v411_v6  ;;  %v429_v8 = vadd.f32 %v428_v57, %v411_v6  ;;  %v442_v9 = vmul.f32 %v411_v6, %v411_v6  ;;  %v414_v10 = vadd.f32 %v562_v7, %v534_v4 }
 0x107   :  { %v445_v11 = vadd.f32 %v444_v0, %v442_v9  ;;  %420 = vst [vmem:[%s788_s2 + $0x18] sm:$0xff] %v414_v10  ;;  %v430_v12 = vadd.f32 %v429_v8, %v414_v10  ;;  %v443_v13 = vmul.f32 %v414_v10, %v414_v10 }
 0x109   :  { %v431_v14 = vrot.slane %v430_v12, 4  ;;  %v446_v15 = vadd.f32 %v445_v11, %v443_v13 }
 0x10b   :  { %v432_v16 = vadd.f32 %v431_v14, %v430_v12  ;;  %v447_v17 = vrot.slane %v446_v15, 4 }
 0x10d   :  { %v433_v18 = vrot.slane %v432_v16, 2  ;;  %v448_v19 = vadd.f32 %v447_v17, %v446_v15 }
 0x10f   :  { %v434_v20 = vadd.f32 %v433_v18, %v432_v16  ;;  %v449_v21 = vrot.slane %v448_v19, 2 }
 0x111   :  { %v435_v22 = vrot.slane %v434_v20, 1  ;;  %v450_v23 = vadd.f32 %v449_v21, %v448_v19 }
 0x113   :  { %v436_v25 = vadd.f32 %v435_v22, %v434_v20  ;;  %v451_v26 = vrot.slane %v450_v23, 1 }
 0x115   :  { %v437_v28 = vadd.f32 %v436_v25, %v427_v24  ;;  %v452_v29 = vadd.f32 %v451_v26, %v450_v23 }
 0x117   :  { %438 = vst [vmem:[%s786_s3] sm:$0x1] %v437_v28  ;;  %v453_v30 = vadd.f32 %v452_v29, %v439_v27 }
 0x119   :  { %454 = vst [vmem:[%s787_s4] sm:$0x1] %v453_v30 }

// kernel: _lambda_.12
= control target key start
LH: loop header
LB: loop body
LE: loop exit
PB: predicated region body
PF: predicated region fallthrough
CT: control target
= control target key end

     0   :  { %v31_v5 = vlaneseq  ;;  %s153_s1 = inlined_call_operand.vmem [shape: f32[1,128], index: 1, kind: input, shape index: {}]   ;;  %s154_s2 = inlined_call_operand.vmem [shape: f32[1,128], index: 2, kind: input, shape index: {}]   ;;  %s155_s0 = inlined_call_operand.vmem [shape: f32[32,128], index: 0, kind: input, shape index: {}]   ;;  %s156_s3 = inlined_call_operand.vmem [shape: f32[8,128], index: 3, kind: input, shape index: {}]   ;;  %s157_s4 = inlined_call_operand.vmem [shape: f32[32,128], index: 4, kind: output, shape index: {}]  }
   0x1   :  { %v21_v0 = vld [vmem:[%s153_s1] sm:$0x1]  ;;  %v18_v13 = vld [vmem:[%s155_s0 + $0x8] sm:$0xff]  ;;  %v19_v14 = vld [vmem:[%s155_s0 + $0x10] sm:$0xff] }
   0x2   :  { %v23_v1 = vld [vmem:[%s154_s2] sm:$0x1]  ;;  %v22_v2 = vmul.f32 0.03125, %v21_v0  ;;  %v32_v8 = vshrl.u32 %v31_v5, 7  ;;  %v20_v15 = vld [vmem:[%s155_s0 + $0x18] sm:$0xff] }
   0x3   :  { %v24_v3 = vmul.f32 0.03125, %v23_v1  ;;  %v17_v11 = vld [vmem:[%s155_s0] sm:$0xff] }
   0x4   :  { %v25_v4 = vmul.f32 %v22_v2, %v22_v2  ;;  %v33_v10 = vsub.s32 0, %v32_v8  ;;  %v88_v22 = vld [vmem:[%s156_s3 + $0x1] ss:$0 sm:$0xff]  ;;  %v89_v27 = vld [vmem:[%s156_s3 + $0x2] ss:$0 sm:$0xff] }
   0x6   :  { %v26_v6 = vsub.f32 %v24_v3, %v25_v4  ;;  %v34_v12 = vrot.slane %v22_v2, %v33_v10 }
   0x8   :  { %v27_v7 = vmax.f32 %v26_v6, 0.0  ;;  %v36_v16 = vsub.f32 %v17_v11, %v34_v12  ;;  %v37_v17 = vsub.f32 %v18_v13, %v34_v12  ;;  %v38_v18 = vsub.f32 %v19_v14, %v34_v12 }
   0x9   :  { %v39_v19 = vsub.f32 %v20_v15, %v34_v12 }
   0xa   :  { %v28_v9 = vadd.f32 1e-05, %v27_v7 }
   0xc   :  { %90 = vrsqrt.f32 %v28_v9 }
  0x16   :  { %v91_v20 = vpop.eup %90 }
  0x17   :  { %v44_v21 = vrot.slane %v91_v20, %v33_v10 }
  0x19   :  { %v46_v23 = vmul.f32 %v44_v21, %v36_v16  ;;  %v47_v24 = vmul.f32 %v44_v21, %v37_v17  ;;  %v48_v25 = vmul.f32 %v44_v21, %v38_v18  ;;  %v49_v26 = vmul.f32 %v44_v21, %v39_v19 }
  0x1b   :  { %v55_v28 = vmul.f32 %v88_v22, %v46_v23  ;;  %v56_v29 = vmul.f32 %v88_v22, %v47_v24  ;;  %v57_v30 = vmul.f32 %v88_v22, %v48_v25  ;;  %v58_v31 = vmul.f32 %v88_v22, %v49_v26 }
  0x1d   :  { %v64_v32 = vadd.f32 %v89_v27, %v55_v28  ;;  %v65_v33 = vadd.f32 %v89_v27, %v56_v29  ;;  %v66_v34 = vadd.f32 %v89_v27, %v57_v30  ;;  %v67_v35 = vadd.f32 %v89_v27, %v58_v31 }
  0x1f   :  { %vm68_vm0 = vcmp.ge.f32.partialorder %v64_v32, 0.0  ;;  %v72_v36 = vmul.f32 0.2, %v64_v32  ;;  %vm69_vm1 = vcmp.ge.f32.partialorder %v65_v33, 0.0  ;;  %v73_v37 = vmul.f32 0.2, %v65_v33 }
  0x20   :  { %vm70_vm2 = vcmp.ge.f32.partialorder %v66_v34, 0.0  ;;  %v74_v38 = vmul.f32 0.2, %v66_v34  ;;  %vm71_vm3 = vcmp.ge.f32.partialorder %v67_v35, 0.0  ;;  %v75_v39 = vmul.f32 0.2, %v67_v35 }
  0x21   :  { %v76_v40 = vsel %vm68_vm0, %v64_v32, %v72_v36  ;;  %v77_v41 = vsel %vm69_vm1, %v65_v33, %v73_v37 }
  0x22   :  { %80 = vst [vmem:[%s157_s4] sm:$0xff] %v76_v40  ;;  %81 = vst [vmem:[%s157_s4 + $0x8] sm:$0xff] %v77_v41  ;;  %v78_v42 = vsel %vm70_vm2, %v66_v34, %v74_v38  ;;  %v79_v43 = vsel %vm71_vm3, %v67_v35, %v75_v39 }
  0x23   :  { %82 = vst [vmem:[%s157_s4 + $0x10] sm:$0xff] %v78_v42  ;;  %83 = vst [vmem:[%s157_s4 + $0x18] sm:$0xff] %v79_v43 }

// kernel: _lambda_.14
= control target key start
LH: loop header
LB: loop body
LE: loop exit
PB: predicated region body
PF: predicated region fallthrough
CT: control target
= control target key end

     0   :  { %v30_v5 = vlaneseq  ;;  %s138_s1 = inlined_call_operand.vmem [shape: f32[1,128], index: 1, kind: input, shape index: {}]   ;;  %s139_s2 = inlined_call_operand.vmem [shape: f32[1,128], index: 2, kind: input, shape index: {}]   ;;  %s140_s0 = inlined_call_operand.vmem [shape: f32[24,128], index: 0, kind: input, shape index: {}]   ;;  %s141_s3 = inlined_call_operand.vmem [shape: f32[8,128], index: 3, kind: input, shape index: {}]   ;;  %s142_s4 = inlined_call_operand.vmem [shape: f32[24,128], index: 4, kind: output, shape index: {}]  }
   0x1   :  { %v20_v0 = vld [vmem:[%s138_s1] sm:$0x1]  ;;  %v18_v13 = vld [vmem:[%s140_s0 + $0x8] sm:$0xff]  ;;  %v19_v14 = vld [vmem:[%s140_s0 + $0x10] sm:$0xff] }
   0x2   :  { %v22_v1 = vld [vmem:[%s139_s2] sm:$0x1]  ;;  %v21_v2 = vmul.f32 0.055555556, %v20_v0  ;;  %v31_v8 = vshrl.u32 %v30_v5, 7 }
   0x3   :  { %v23_v3 = vmul.f32 0.055555556, %v22_v1  ;;  %v17_v12 = vld [vmem:[%s140_s0] sm:$0xff] }
   0x4   :  { %v24_v4 = vmul.f32 %v21_v2, %v21_v2  ;;  %v32_v10 = vsub.s32 0, %v31_v8  ;;  %v79_v20 = vld [vmem:[%s141_s3 + $0x1] ss:$0 sm:$0xff]  ;;  %v80_v24 = vld [vmem:[%s141_s3 + $0x2] ss:$0 sm:$0xff] }
   0x6   :  { %v25_v6 = vsub.f32 %v23_v3, %v24_v4  ;;  %v33_v11 = vrot.slane %v21_v2, %v32_v10 }
   0x8   :  { %v26_v7 = vmax.f32 %v25_v6, 0.0  ;;  %v35_v15 = vsub.f32 %v17_v12, %v33_v11  ;;  %v36_v16 = vsub.f32 %v18_v13, %v33_v11  ;;  %v37_v17 = vsub.f32 %v19_v14, %v33_v11 }
   0xa   :  { %v27_v9 = vadd.f32 1e-05, %v26_v7 }
   0xc   :  { %81 = vrsqrt.f32 %v27_v9 }
  0x16   :  { %v82_v18 = vpop.eup %81 }
  0x17   :  { %v42_v19 = vrot.slane %v82_v18, %v32_v10 }
  0x19   :  { %v44_v21 = vmul.f32 %v42_v19, %v35_v15  ;;  %v45_v22 = vmul.f32 %v42_v19, %v36_v16  ;;  %v46_v23 = vmul.f32 %v42_v19, %v37_v17 }
  0x1b   :  { %v52_v25 = vmul.f32 %v79_v20, %v44_v21  ;;  %v53_v26 = vmul.f32 %v79_v20, %v45_v22  ;;  %v54_v27 = vmul.f32 %v79_v20, %v46_v23 }
  0x1d   :  { %v60_v28 = vadd.f32 %v80_v24, %v52_v25  ;;  %v61_v29 = vadd.f32 %v80_v24, %v53_v26  ;;  %v62_v30 = vadd.f32 %v80_v24, %v54_v27 }
  0x1f   :  { %vm63_vm0 = vcmp.ge.f32.partialorder %v60_v28, 0.0  ;;  %v66_v31 = vmul.f32 0.2, %v60_v28  ;;  %vm64_vm1 = vcmp.ge.f32.partialorder %v61_v29, 0.0  ;;  %v67_v32 = vmul.f32 0.2, %v61_v29 }
  0x20   :  { %vm65_vm2 = vcmp.ge.f32.partialorder %v62_v30, 0.0  ;;  %v68_v33 = vmul.f32 0.2, %v62_v30 }
  0x21   :  { %v69_v34 = vsel %vm63_vm0, %v60_v28, %v66_v31  ;;  %v70_v35 = vsel %vm64_vm1, %v61_v29, %v67_v32 }
  0x22   :  { %72 = vst [vmem:[%s142_s4] sm:$0xff] %v69_v34  ;;  %73 = vst [vmem:[%s142_s4 + $0x8] sm:$0xff] %v70_v35  ;;  %v71_v36 = vsel %vm65_vm2, %v62_v30, %v68_v33 }
  0x23   :  { %74 = vst [vmem:[%s142_s4 + $0x10] sm:$0xff] %v71_v36 }

// kernel: _lambda_.13
= control target key start
LH: loop header
LB: loop body
LE: loop exit
PB: predicated region body
PF: predicated region fallthrough
CT: control target
= control target key end

     0   :  { %s1391_s1 = inlined_call_operand.vmem [shape: bf16[1024,128], index: 1, kind: input, shape index: {}]   ;;  %s1392_s0 = inlined_call_operand.vmem [shape: bf16[24,1024], index: 0, kind: input, shape index: {}]   ;;  %s1393_s3 = inlined_call_operand.vmem [shape: f32[1,128], index: 3, kind: output, shape index: {1}]   ;;  %s1394_s4 = inlined_call_operand.vmem [shape: f32[1,128], index: 4, kind: output, shape index: {2}]   ;;  %s1395_s2 = inlined_call_operand.vmem [shape: f32[24,128], index: 2, kind: output, shape index: {0}]  }
   0x1   :  { %v1038_v0 = vld [vmem:[%s1391_s1 + $0x40] sm:$0xff]   ;;  %v1042_v4 = vld [vmem:[%s1391_s1 + $0x48] sm:$0xff]   ;;  %v1046_v8 = vld [vmem:[%s1391_s1 + $0x50] sm:$0xff]  }
   0x2   :  { %v1039_v1 = vld [vmem:[%s1391_s1 + $0xc0] sm:$0xff]   ;;  %925 = vmatprep.subr.bf16.mxu0 %v1038_v0  ;;  %v1043_v5 = vld [vmem:[%s1391_s1 + $0xc8] sm:$0xff]   ;;  %v1047_v9 = vld [vmem:[%s1391_s1 + $0xd0] sm:$0xff]  }
   0x3   :  { %v1040_v2 = vld [vmem:[%s1391_s1] sm:$0xff]   ;;  %953 = vmatprep.subr.bf16.mxu1 %v1039_v1  ;;  %v1044_v6 = vld [vmem:[%s1391_s1 + $0x8] sm:$0xff]   ;;  %v1048_v10 = vld [vmem:[%s1391_s1 + $0x10] sm:$0xff]  }
   0x4   :  { %v1041_v3 = vld [vmem:[%s1391_s1 + $0x80] sm:$0xff]   ;;  %926 = vmatpush3.bf16.msra.mxu0 %v1040_v2  ;;  %v1045_v7 = vld [vmem:[%s1391_s1 + $0x88] sm:$0xff]   ;;  %v1049_v11 = vld [vmem:[%s1391_s1 + $0x90] sm:$0xff]  }
   0x5   :  { %954 = vmatpush3.bf16.msra.mxu1 %v1041_v3  ;;  %927 = vmatprep.subr.bf16.mxu0 %v1042_v4  ;;  %v1050_v12 = vld [vmem:[%s1391_s1 + $0x58] sm:$0xff]   ;;  %v1054_v16 = vld [vmem:[%s1391_s1 + $0x60] sm:$0xff]   ;;  %v1058_v20 = vld [vmem:[%s1391_s1 + $0x68] sm:$0xff]  }
   0x6   :  { %955 = vmatprep.subr.bf16.mxu1 %v1043_v5  ;;  %v1051_v13 = vld [vmem:[%s1391_s1 + $0xd8] sm:$0xff]   ;;  %v1055_v17 = vld [vmem:[%s1391_s1 + $0xe0] sm:$0xff]   ;;  %v1059_v21 = vld [vmem:[%s1391_s1 + $0xe8] sm:$0xff]  }
   0x7   :  { %v1052_v14 = vld [vmem:[%s1391_s1 + $0x18] sm:$0xff]   ;;  %v1056_v18 = vld [vmem:[%s1391_s1 + $0x20] sm:$0xff]   ;;  %v1060_v22 = vld [vmem:[%s1391_s1 + $0x28] sm:$0xff]  }
   0x8   :  { %928 = vmatpush3.bf16.msra.mxu0 %v1044_v6  ;;  %v1053_v15 = vld [vmem:[%s1391_s1 + $0x98] sm:$0xff]   ;;  %v1057_v19 = vld [vmem:[%s1391_s1 + $0xa0] sm:$0xff]   ;;  %v1061_v23 = vld [vmem:[%s1391_s1 + $0xa8] sm:$0xff]  }
   0x9   :  { %956 = vmatpush3.bf16.msra.mxu1 %v1045_v7  ;;  %929 = vmatprep.subr.bf16.mxu0 %v1046_v8  ;;  %v1062_v24 = vld [vmem:[%s1391_s1 + $0x70] sm:$0xff]   ;;  %v1066_v28 = vld [vmem:[%s1391_s1 + $0x78] sm:$0xff]   ;;  %v15_v32 = vld [vmem:[%s1392_s0] sm:$0xff] }
   0xa   :  { %957 = vmatprep.subr.bf16.mxu1 %v1047_v9  ;;  %v1063_v25 = vld [vmem:[%s1391_s1 + $0xf0] sm:$0xff]   ;;  %v1067_v29 = vld [vmem:[%s1391_s1 + $0xf8] sm:$0xff]   ;;  %v19_v33 = vld [vmem:[%s1392_s0 + $0x20] sm:$0xff] }
   0xb   :  { %v1064_v26 = vld [vmem:[%s1391_s1 + $0x30] sm:$0xff]   ;;  %v1068_v30 = vld [vmem:[%s1391_s1 + $0x38] sm:$0xff]   ;;  %v16_v34 = vld [vmem:[%s1392_s0 + $0x8] sm:$0xff]  ;;  %v845_v35 = vcombine.low %v15_v32, %v19_v33  ;;  %v846_v36 = vcombine.high %v15_v32, %v19_v33 }
   0xc   :  { %930 = vmatpush3.bf16.msra.mxu0 %v1048_v10  ;;  %v1065_v27 = vld [vmem:[%s1391_s1 + $0xb0] sm:$0xff]   ;;  %v1069_v31 = vld [vmem:[%s1391_s1 + $0xb8] sm:$0xff]   ;;  %v20_v37 = vld [vmem:[%s1392_s0 + $0x28] sm:$0xff] }
   0xd   :  { %958 = vmatpush3.bf16.msra.mxu1 %v1049_v11  ;;  %931 = vmatprep.subr.bf16.mxu0 %v1050_v12  ;;  %v847_v38 = vcombine.low %v16_v34, %v20_v37  ;;  %v848_v39 = vcombine.high %v16_v34, %v20_v37  ;;  %v1070_v40 = vld [vmem:[%s1391_s1 + $0x140] sm:$0xff]   ;;  %v1074_v44 = vld [vmem:[%s1391_s1 + $0x148] sm:$0xff]   ;;  %v1078_v48 = vld [vmem:[%s1391_s1 + $0x150] sm:$0xff]  }
   0xe   :  { %959 = vmatprep.subr.bf16.mxu1 %v1051_v13  ;;  %639 = vmatprep.mubr.bf16.mxu0 %v846_v36  ;;  %v1071_v41 = vld [vmem:[%s1391_s1 + $0x1c0] sm:$0xff]   ;;  %v1075_v45 = vld [vmem:[%s1391_s1 + $0x1c8] sm:$0xff]   ;;  %v1079_v49 = vld [vmem:[%s1391_s1 + $0x1d0] sm:$0xff]  }
   0xf   :  { %687 = vmatprep.mubr.bf16.mxu1 %v848_v39  ;;  %v1072_v42 = vld [vmem:[%s1391_s1 + $0x100] sm:$0xff]   ;;  %v1076_v46 = vld [vmem:[%s1391_s1 + $0x108] sm:$0xff]   ;;  %v1080_v50 = vld [vmem:[%s1391_s1 + $0x110] sm:$0xff]  }
  0x10   :  { %932 = vmatpush3.bf16.msra.mxu0 %v1052_v14  ;;  %v1073_v43 = vld [vmem:[%s1391_s1 + $0x180] sm:$0xff]   ;;  %v1077_v47 = vld [vmem:[%s1391_s1 + $0x188] sm:$0xff]   ;;  %v1081_v51 = vld [vmem:[%s1391_s1 + $0x190] sm:$0xff]  }
  0x11   :  { %960 = vmatpush3.bf16.msra.mxu1 %v1053_v15  ;;  %933 = vmatprep.subr.bf16.mxu0 %v1054_v16  ;;  %v1082_v52 = vld [vmem:[%s1391_s1 + $0x158] sm:$0xff]   ;;  %v1086_v56 = vld [vmem:[%s1391_s1 + $0x160] sm:$0xff]   ;;  %v1091_v62 = vld [vmem:[%s1391_s1 + $0x168] sm:$0xff]  }
  0x12   :  { %961 = vmatprep.subr.bf16.mxu1 %v1055_v17  ;;  %v1083_v53 = vld [vmem:[%s1391_s1 + $0x1d8] sm:$0xff]   ;;  %v1087_v57 = vld [vmem:[%s1391_s1 + $0x1e0] sm:$0xff]   ;;  %v1092_v0 = vld [vmem:[%s1391_s1 + $0x1e8] sm:$0xff]  }
  0x13   :  { %v1084_v54 = vld [vmem:[%s1391_s1 + $0x118] sm:$0xff]   ;;  %v1088_v58 = vld [vmem:[%s1391_s1 + $0x120] sm:$0xff]   ;;  %v1094_v1 = vld [vmem:[%s1391_s1 + $0x128] sm:$0xff]  }
  0x14   :  { %934 = vmatpush3.bf16.msra.mxu0 %v1056_v18  ;;  %v1085_v55 = vld [vmem:[%s1391_s1 + $0x198] sm:$0xff]   ;;  %v1089_v59 = vld [vmem:[%s1391_s1 + $0x1a0] sm:$0xff]   ;;  %v1095_v2 = vld [vmem:[%s1391_s1 + $0x1a8] sm:$0xff]  }
  0x15   :  { %962 = vmatpush3.bf16.msra.mxu1 %v1057_v19  ;;  %935 = vmatprep.subr.bf16.mxu0 %v1058_v20  ;;  %v23_v60 = vld [vmem:[%s1392_s0 + $0x40] sm:$0xff]  ;;  %v24_v3 = vld [vmem:[%s1392_s0 + $0x48] sm:$0xff]  ;;  %v1098_v6 = vld [vmem:[%s1391_s1 + $0x170] sm:$0xff]  }
  0x16   :  { %963 = vmatprep.subr.bf16.mxu1 %v1059_v21  ;;  %v854_v61 = vcombine.high %v23_v60, %v23_v60  ;;  %v853_v63 = vcombine.low %v23_v60, %v23_v60  ;;  %v856_v4 = vcombine.high %v24_v3, %v24_v3  ;;  %v855_v5 = vcombine.low %v24_v3, %v24_v3  ;;  %v1099_v7 = vld [vmem:[%s1391_s1 + $0x1f0] sm:$0xff]   ;;  %v1102_v10 = vld [vmem:[%s1391_s1 + $0x178] sm:$0xff]  }
  0x17   :  { %v1100_v8 = vld [vmem:[%s1391_s1 + $0x130] sm:$0xff]   ;;  %v1103_v11 = vld [vmem:[%s1391_s1 + $0x1f8] sm:$0xff]  }
  0x18   :  { %936 = vmatpush3.bf16.msra.mxu0 %v1060_v22  ;;  %v1101_v9 = vld [vmem:[%s1391_s1 + $0x1b0] sm:$0xff]   ;;  %v1104_v12 = vld [vmem:[%s1391_s1 + $0x138] sm:$0xff]  }
  0x19   :  { %964 = vmatpush3.bf16.msra.mxu1 %v1061_v23  ;;  %937 = vmatprep.subr.bf16.mxu0 %v1062_v24  ;;  %v1105_v13 = vld [vmem:[%s1391_s1 + $0x1b8] sm:$0xff]   ;;  %v17_v14 = vld [vmem:[%s1392_s0 + $0x10] sm:$0xff] }
  0x1a   :  { %965 = vmatprep.subr.bf16.mxu1 %v1063_v25  ;;  %v21_v15 = vld [vmem:[%s1392_s0 + $0x30] sm:$0xff]  ;;  %v18_v16 = vld [vmem:[%s1392_s0 + $0x18] sm:$0xff] }
  0x1b   :  { %v849_v17 = vcombine.low %v17_v14, %v21_v15  ;;  %v850_v18 = vcombine.high %v17_v14, %v21_v15  ;;  %v22_v19 = vld [vmem:[%s1392_s0 + $0x38] sm:$0xff]  ;;  %v25_v20 = vld [vmem:[%s1392_s0 + $0x50] sm:$0xff] }
  0x1c   :  { %938 = vmatpush3.bf16.msra.mxu0 %v1064_v26  ;;  %v26_v21 = vld [vmem:[%s1392_s0 + $0x58] sm:$0xff]  ;;  %v851_v22 = vcombine.low %v18_v16, %v22_v19  ;;  %v852_v23 = vcombine.high %v18_v16, %v22_v19  ;;  %v858_v24 = vcombine.high %v25_v20, %v25_v20  ;;  %v857_v26 = vcombine.low %v25_v20, %v25_v20 }
  0x1d   :  { %966 = vmatpush3.bf16.msra.mxu1 %v1065_v27  ;;  %939 = vmatprep.subr.bf16.mxu0 %v1066_v28  ;;  %v860_v25 = vcombine.high %v26_v21, %v26_v21  ;;  %v859_v27 = vcombine.low %v26_v21, %v26_v21  ;;  %v1110_v28 = vmov 0.0  }
  0x1e   :  { %967 = vmatprep.subr.bf16.mxu1 %v1067_v29  ;;  %806 = vst [vmem:[%s1393_s3] sm:$0x1] %v1110_v28  ;;  %807 = vst [vmem:[%s1394_s4] sm:$0x1] %v1110_v28 }
  0x20   :  { %940 = vmatpush3.bf16.msra.mxu0 %v1068_v30 }
  0x21   :  { %968 = vmatpush3.bf16.msra.mxu1 %v1069_v31  ;;  %981 = vmatprep.subr.bf16.mxu0 %v1070_v40 }
  0x22   :  { %1009 = vmatprep.subr.bf16.mxu1 %v1071_v41 }
  0x23   :  { %640 = vmatmul.mubr.bf16.vlgmr.msra.gmra.mrb[0].mxu0 %v845_v35 }
  0x24   :  { %688 = vmatmul.mubr.bf16.vlgmr.msra.gmra.mrb[0].mxu1 %v847_v38  ;;  %982 = vmatpush3.bf16.msra.mxu0 %v1072_v42 }
  0x25   :  { %1010 = vmatpush3.bf16.msra.mxu1 %v1073_v43  ;;  %983 = vmatprep.subr.bf16.mxu0 %v1074_v44 }
  0x26   :  { %1011 = vmatprep.subr.bf16.mxu1 %v1075_v45  ;;  %647 = vmatprep.mubr.bf16.mxu0 %v854_v61 }
  0x27   :  { %695 = vmatprep.mubr.bf16.mxu1 %v856_v4 }
  0x28   :  { %984 = vmatpush3.bf16.msra.mxu0 %v1076_v46 }
  0x29   :  { %1012 = vmatpush3.bf16.msra.mxu1 %v1077_v47  ;;  %985 = vmatprep.subr.bf16.mxu0 %v1078_v48 }
  0x2a   :  { %1013 = vmatprep.subr.bf16.mxu1 %v1079_v49 }
  0x2b   :  { %648 = vmatmul.mubr.bf16.gmra.mrb[4].mxu0 %v853_v63 }
  0x2c   :  { %986 = vmatpush3.bf16.msra.mxu0 %v1080_v50  ;;  %696 = vmatmul.mubr.bf16.gmra.mrb[4].mxu1 %v855_v5 }
  0x2d   :  { %1014 = vmatpush3.bf16.msra.mxu1 %v1081_v51  ;;  %987 = vmatprep.subr.bf16.mxu0 %v1082_v52 }
  0x2e   :  { %1015 = vmatprep.subr.bf16.mxu1 %v1083_v53  ;;  %735 = vmatprep.mubr.bf16.mxu0 %v850_v18 }
  0x2f   :  { %783 = vmatprep.mubr.bf16.mxu1 %v852_v23 }
  0x30   :  { %988 = vmatpush3.bf16.msra.mxu0 %v1084_v54 }
  0x31   :  { %1016 = vmatpush3.bf16.msra.mxu1 %v1085_v55  ;;  %989 = vmatprep.subr.bf16.mxu0 %v1086_v56 }
  0x32   :  { %1017 = vmatprep.subr.bf16.mxu1 %v1087_v57 }
  0x34   :  { %990 = vmatpush3.bf16.msra.mxu0 %v1088_v58 }
  0x35   :  { %1018 = vmatpush3.bf16.msra.mxu1 %v1089_v59  ;;  %991 = vmatprep.subr.bf16.mxu0 %v1091_v62 }
  0x36   :  { %1019 = vmatprep.subr.bf16.mxu1 %v1092_v0 }
  0x38   :  { %992 = vmatpush3.bf16.msra.mxu0 %v1094_v1 }
  0x39   :  { %1020 = vmatpush3.bf16.msra.mxu1 %v1095_v2  ;;  %993 = vmatprep.subr.bf16.mxu0 %v1098_v6 }
  0x3a   :  { %1021 = vmatprep.subr.bf16.mxu1 %v1099_v7 }
  0x3c   :  { %994 = vmatpush3.bf16.msra.mxu0 %v1100_v8 }
  0x3d   :  { %1022 = vmatpush3.bf16.msra.mxu1 %v1101_v9  ;;  %995 = vmatprep.subr.bf16.mxu0 %v1102_v10 }
  0x3e   :  { %1023 = vmatprep.subr.bf16.mxu1 %v1103_v11 }
  0x40   :  { %996 = vmatpush3.bf16.msra.mxu0 %v1104_v12 }
  0x41   :  { %1024 = vmatpush3.bf16.msra.mxu1 %v1105_v13 }
  0x43   :  { %736 = vmatmul.mubr.bf16.vlgmr.msra.gmra.mrb[8].mxu0 %v849_v17 }
  0x44   :  { %784 = vmatmul.mubr.bf16.vlgmr.msra.gmra.mrb[8].mxu1 %v851_v22  ;;  %743 = vmatprep.mubr.bf16.mxu0 %v858_v24 }
  0x45   :  { %791 = vmatprep.mubr.bf16.mxu1 %v860_v25 }
  0x4b   :  { %744 = vmatmul.mubr.bf16.gmra.mrb[12].mxu0 %v857_v26 }
  0x4c   :  { %792 = vmatmul.mubr.bf16.gmra.mrb[12].mxu1 %v859_v27 }
  0xf6   :  { %v941_v29 = vpop.f32.mrb[0].mxu0 }
  0xf7   :  { %v969_v30 = vpop.f32.mrb[0].mxu1  ;;  %v942_v31 = vpop.f32.mrb[1].mxu0 }
  0xf8   :  { %v943_v32 = vadd.f32 %v942_v31, %v941_v29  ;;  %v970_v33 = vpop.f32.mrb[1].mxu1  ;;  %v944_v34 = vpop.f32.mrb[2].mxu0 }
  0xf9   :  { %v971_v35 = vadd.f32 %v970_v33, %v969_v30  ;;  %v972_v36 = vpop.f32.mrb[2].mxu1  ;;  %v945_v37 = vpop.f32.mrb[3].mxu0 }
  0xfa   :  { %v946_v38 = vadd.f32 %v945_v37, %v944_v34  ;;  %v973_v39 = vpop.f32.mrb[3].mxu1  ;;  %v808_v34 = vld [vmem:[%s1393_s3] sm:$0x1] }
  0xfb   :  { %v690_v40 = vadd.f32 %v971_v35, %v943_v32  ;;  %v974_v41 = vadd.f32 %v973_v39, %v972_v36  ;;  %v819_v37 = vld [vmem:[%s1394_s4] sm:$0x1] }
  0xfd   :  { %v693_v42 = vadd.f32 %v974_v41, %v946_v38 }
  0xfe   :  { %v947_v43 = vpop.f32.mrb[4].mxu0 }
  0xff   :  { %v948_v44 = vpop.f32.mrb[5].mxu0  ;;  %v975_v48 = vpop.f32.mrb[4].mxu1 }
 0x100   :  { %v949_v45 = vadd.f32 %v948_v44, %v947_v43  ;;  %v950_v46 = vpop.f32.mrb[6].mxu0  ;;  %v976_v49 = vpop.f32.mrb[5].mxu1 }
 0x101   :  { %v951_v47 = vpop.f32.mrb[7].mxu0  ;;  %v977_v50 = vadd.f32 %v976_v49, %v975_v48  ;;  %v978_v51 = vpop.f32.mrb[6].mxu1 }
 0x102   :  { %v979_v52 = vpop.f32.mrb[7].mxu1 }
 0x103   :  { %v698_v53 = vadd.f32 %v977_v50, %v949_v45 }
 0x116   :  { %v997_v54 = vpop.f32.mrb[8].mxu0 }
 0x117   :  { %v1025_v55 = vpop.f32.mrb[8].mxu1  ;;  %v998_v56 = vpop.f32.mrb[9].mxu0 }
 0x118   :  { %v999_v57 = vadd.f32 %v998_v56, %v997_v54  ;;  %v1026_v58 = vpop.f32.mrb[9].mxu1  ;;  %v1000_v59 = vpop.f32.mrb[10].mxu0 }
 0x119   :  { %v1027_v60 = vadd.f32 %v1026_v58, %v1025_v55  ;;  %v1028_v61 = vpop.f32.mrb[10].mxu1  ;;  %v1001_v62 = vpop.f32.mrb[11].mxu0 }
 0x11a   :  { %v738_v63 = vadd.f32 %v999_v57, %v690_v40  ;;  %v1002_v0 = vadd.f32 %v1001_v62, %v1000_v59  ;;  %v1029_v1 = vpop.f32.mrb[11].mxu1 }
 0x11b   :  { %v1030_v2 = vadd.f32 %v1029_v1, %v1028_v61 }
 0x11c   :  { %v786_v3 = vadd.f32 %v1027_v60, %v738_v63  ;;  %v741_v4 = vadd.f32 %v1002_v0, %v693_v42 }
 0x11e   :  { %799 = vst [vmem:[%s1395_s2] sm:$0xff] %v786_v3  ;;  %v789_v5 = vadd.f32 %v1030_v2, %v741_v4  ;;  %v1003_v6 = vpop.f32.mrb[12].mxu0  ;;  %v820_v9 = vmul.f32 %v786_v3, %v786_v3 }
 0x11f   :  { %v1031_v7 = vpop.f32.mrb[12].mxu1  ;;  %v1004_v8 = vpop.f32.mrb[13].mxu0 }
 0x120   :  { %800 = vst [vmem:[%s1395_s2 + $0x8] sm:$0xff] %v789_v5  ;;  %v809_v10 = vadd.f32 %v789_v5, %v786_v3  ;;  %v821_v11 = vmul.f32 %v789_v5, %v789_v5  ;;  %v1005_v12 = vadd.f32 %v1004_v8, %v1003_v6  ;;  %v1032_v13 = vpop.f32.mrb[13].mxu1  ;;  %v1006_v14 = vpop.f32.mrb[14].mxu0 }
 0x121   :  { %v1033_v15 = vadd.f32 %v1032_v13, %v1031_v7  ;;  %v1034_v16 = vpop.f32.mrb[14].mxu1  ;;  %v1007_v17 = vpop.f32.mrb[15].mxu0 }
 0x122   :  { %v823_v18 = vadd.f32 %v821_v11, %v820_v9  ;;  %v746_v19 = vadd.f32 %v1005_v12, %v698_v53  ;;  %v1035_v20 = vpop.f32.mrb[15].mxu1 }
 0x124   :  { %v794_v21 = vadd.f32 %v1033_v15, %v746_v19 }
 0x126   :  { %801 = vst [vmem:[%s1395_s2 + $0x10] sm:$0xff] %v794_v21  ;;  %v810_v22 = vadd.f32 %v809_v10, %v794_v21  ;;  %v822_v23 = vmul.f32 %v794_v21, %v794_v21 }
 0x128   :  { %v811_v24 = vrot.slane %v810_v22, 4  ;;  %v824_v25 = vadd.f32 %v823_v18, %v822_v23 }
 0x12a   :  { %v812_v26 = vadd.f32 %v811_v24, %v810_v22  ;;  %v825_v27 = vrot.slane %v824_v25, 4 }
 0x12c   :  { %v813_v28 = vrot.slane %v812_v26, 2  ;;  %v826_v29 = vadd.f32 %v825_v27, %v824_v25 }
 0x12e   :  { %v814_v30 = vadd.f32 %v813_v28, %v812_v26  ;;  %v827_v31 = vrot.slane %v826_v29, 2 }
 0x130   :  { %v815_v32 = vrot.slane %v814_v30, 1  ;;  %v828_v33 = vadd.f32 %v827_v31, %v826_v29 }
 0x132   :  { %v816_v35 = vadd.f32 %v815_v32, %v814_v30  ;;  %v829_v36 = vrot.slane %v828_v33, 1 }
 0x134   :  { %v817_v38 = vadd.f32 %v816_v35, %v808_v34  ;;  %v830_v39 = vadd.f32 %v829_v36, %v828_v33 }
 0x136   :  { %818 = vst [vmem:[%s1393_s3] sm:$0x1] %v817_v38  ;;  %v831_v40 = vadd.f32 %v830_v39, %v819_v37 }
 0x138   :  { %832 = vst [vmem:[%s1394_s4] sm:$0x1] %v831_v40 }

// kernel: _lambda_.15
= control target key start
LH: loop header
LB: loop body
LE: loop exit
PB: predicated region body
PF: predicated region fallthrough
CT: control target
= control target key end

     0   :  { %s2332_s1 = inlined_call_operand.vmem [shape: bf16[2048,128], index: 1, kind: input, shape index: {}]   ;;  %s2333_s0 = inlined_call_operand.vmem [shape: bf16[8,2048], index: 0, kind: input, shape index: {}]   ;;  %s2334_s2 = inlined_call_operand.vmem [shape: f32[8,128], index: 2, kind: input, shape index: {}]   ;;  %s2335_s3 = inlined_call_operand.vmem [shape: f32[8,128], index: 3, kind: output, shape index: {}]  }
   0x1   :  { %v1754_v0 = vld [vmem:[%s2332_s1 + $0x40] sm:$0xff]   ;;  %v1758_v4 = vld [vmem:[%s2332_s1 + $0x48] sm:$0xff]   ;;  %v1762_v8 = vld [vmem:[%s2332_s1 + $0x50] sm:$0xff]  }
   0x2   :  { %v1755_v1 = vld [vmem:[%s2332_s1 + $0xc0] sm:$0xff]   ;;  %1578 = vmatprep.subr.bf16.mxu0 %v1754_v0  ;;  %v1759_v5 = vld [vmem:[%s2332_s1 + $0xc8] sm:$0xff]   ;;  %v1763_v9 = vld [vmem:[%s2332_s1 + $0xd0] sm:$0xff]  }
   0x3   :  { %v1756_v2 = vld [vmem:[%s2332_s1] sm:$0xff]   ;;  %1600 = vmatprep.subr.bf16.mxu1 %v1755_v1  ;;  %v1760_v6 = vld [vmem:[%s2332_s1 + $0x8] sm:$0xff]   ;;  %v1764_v10 = vld [vmem:[%s2332_s1 + $0x10] sm:$0xff]  }
   0x4   :  { %v1757_v3 = vld [vmem:[%s2332_s1 + $0x80] sm:$0xff]   ;;  %1579 = vmatpush3.bf16.msra.mxu0 %v1756_v2  ;;  %v1761_v7 = vld [vmem:[%s2332_s1 + $0x88] sm:$0xff]   ;;  %v1765_v11 = vld [vmem:[%s2332_s1 + $0x90] sm:$0xff]  }
   0x5   :  { %1601 = vmatpush3.bf16.msra.mxu1 %v1757_v3  ;;  %1580 = vmatprep.subr.bf16.mxu0 %v1758_v4  ;;  %v1766_v12 = vld [vmem:[%s2332_s1 + $0x58] sm:$0xff]   ;;  %v1770_v16 = vld [vmem:[%s2332_s1 + $0x60] sm:$0xff]   ;;  %v1774_v20 = vld [vmem:[%s2332_s1 + $0x68] sm:$0xff]  }
   0x6   :  { %1602 = vmatprep.subr.bf16.mxu1 %v1759_v5  ;;  %v1767_v13 = vld [vmem:[%s2332_s1 + $0xd8] sm:$0xff]   ;;  %v1771_v17 = vld [vmem:[%s2332_s1 + $0xe0] sm:$0xff]   ;;  %v1775_v21 = vld [vmem:[%s2332_s1 + $0xe8] sm:$0xff]  }
   0x7   :  { %v1768_v14 = vld [vmem:[%s2332_s1 + $0x18] sm:$0xff]   ;;  %v1772_v18 = vld [vmem:[%s2332_s1 + $0x20] sm:$0xff]   ;;  %v1776_v22 = vld [vmem:[%s2332_s1 + $0x28] sm:$0xff]  }
   0x8   :  { %1581 = vmatpush3.bf16.msra.mxu0 %v1760_v6  ;;  %v1769_v15 = vld [vmem:[%s2332_s1 + $0x98] sm:$0xff]   ;;  %v1773_v19 = vld [vmem:[%s2332_s1 + $0xa0] sm:$0xff]   ;;  %v1777_v23 = vld [vmem:[%s2332_s1 + $0xa8] sm:$0xff]  }
   0x9   :  { %1603 = vmatpush3.bf16.msra.mxu1 %v1761_v7  ;;  %1582 = vmatprep.subr.bf16.mxu0 %v1762_v8  ;;  %v1778_v24 = vld [vmem:[%s2332_s1 + $0x70] sm:$0xff]   ;;  %v1782_v28 = vld [vmem:[%s2332_s1 + $0x78] sm:$0xff]   ;;  %v15_v32 = vld [vmem:[%s2333_s0] sm:$0xff] }
   0xa   :  { %1604 = vmatprep.subr.bf16.mxu1 %v1763_v9  ;;  %v1779_v25 = vld [vmem:[%s2332_s1 + $0xf0] sm:$0xff]   ;;  %v1783_v29 = vld [vmem:[%s2332_s1 + $0xf8] sm:$0xff]   ;;  %v16_v33 = vld [vmem:[%s2333_s0 + $0x8] sm:$0xff]  ;;  %v1434_v34 = vcombine.low %v15_v32, %v15_v32  ;;  %v1435_v35 = vcombine.high %v15_v32, %v15_v32 }
   0xb   :  { %v1780_v26 = vld [vmem:[%s2332_s1 + $0x30] sm:$0xff]   ;;  %v1784_v30 = vld [vmem:[%s2332_s1 + $0x38] sm:$0xff]   ;;  %v1436_v36 = vcombine.low %v16_v33, %v16_v33  ;;  %v1437_v37 = vcombine.high %v16_v33, %v16_v33  ;;  %v1790_v38 = vld [vmem:[%s2332_s1 + $0x140] sm:$0xff]  }
   0xc   :  { %1583 = vmatpush3.bf16.msra.mxu0 %v1764_v10  ;;  %v1781_v27 = vld [vmem:[%s2332_s1 + $0xb0] sm:$0xff]   ;;  %v1785_v31 = vld [vmem:[%s2332_s1 + $0xb8] sm:$0xff]   ;;  %v1791_v39 = vld [vmem:[%s2332_s1 + $0x1c0] sm:$0xff]   ;;  %1140 = vmatprep.mubr.bf16.mxu0 %v1435_v35 }
   0xd   :  { %1605 = vmatpush3.bf16.msra.mxu1 %v1765_v11  ;;  %1584 = vmatprep.subr.bf16.mxu0 %v1766_v12  ;;  %v1792_v40 = vld [vmem:[%s2332_s1 + $0x100] sm:$0xff]   ;;  %v1794_v42 = vld [vmem:[%s2332_s1 + $0x148] sm:$0xff]   ;;  %v1798_v46 = vld [vmem:[%s2332_s1 + $0x150] sm:$0xff]  }
   0xe   :  { %1606 = vmatprep.subr.bf16.mxu1 %v1767_v13  ;;  %1180 = vmatprep.mubr.bf16.mxu1 %v1437_v37  ;;  %v1793_v41 = vld [vmem:[%s2332_s1 + $0x180] sm:$0xff]   ;;  %v1795_v43 = vld [vmem:[%s2332_s1 + $0x1c8] sm:$0xff]   ;;  %v1799_v47 = vld [vmem:[%s2332_s1 + $0x1d0] sm:$0xff]  }
   0xf   :  { %v1796_v44 = vld [vmem:[%s2332_s1 + $0x108] sm:$0xff]   ;;  %v1800_v48 = vld [vmem:[%s2332_s1 + $0x110] sm:$0xff]   ;;  %v1802_v50 = vld [vmem:[%s2332_s1 + $0x158] sm:$0xff]  }
  0x10   :  { %1585 = vmatpush3.bf16.msra.mxu0 %v1768_v14  ;;  %v1797_v45 = vld [vmem:[%s2332_s1 + $0x188] sm:$0xff]   ;;  %v1801_v49 = vld [vmem:[%s2332_s1 + $0x190] sm:$0xff]   ;;  %v1803_v51 = vld [vmem:[%s2332_s1 + $0x1d8] sm:$0xff]  }
  0x11   :  { %1607 = vmatpush3.bf16.msra.mxu1 %v1769_v15  ;;  %1586 = vmatprep.subr.bf16.mxu0 %v1770_v16  ;;  %v1804_v52 = vld [vmem:[%s2332_s1 + $0x118] sm:$0xff]   ;;  %v1806_v54 = vld [vmem:[%s2332_s1 + $0x160] sm:$0xff]   ;;  %v1810_v58 = vld [vmem:[%s2332_s1 + $0x168] sm:$0xff]  }
  0x12   :  { %1608 = vmatprep.subr.bf16.mxu1 %v1771_v17  ;;  %v1805_v53 = vld [vmem:[%s2332_s1 + $0x198] sm:$0xff]   ;;  %v1807_v55 = vld [vmem:[%s2332_s1 + $0x1e0] sm:$0xff]   ;;  %v1811_v59 = vld [vmem:[%s2332_s1 + $0x1e8] sm:$0xff]  }
  0x13   :  { %v1808_v56 = vld [vmem:[%s2332_s1 + $0x120] sm:$0xff]   ;;  %v1812_v60 = vld [vmem:[%s2332_s1 + $0x128] sm:$0xff]   ;;  %v1814_v62 = vld [vmem:[%s2332_s1 + $0x170] sm:$0xff]  }
  0x14   :  { %1587 = vmatpush3.bf16.msra.mxu0 %v1772_v18  ;;  %v1809_v57 = vld [vmem:[%s2332_s1 + $0x1a0] sm:$0xff]   ;;  %v1813_v61 = vld [vmem:[%s2332_s1 + $0x1a8] sm:$0xff]   ;;  %v1815_v63 = vld [vmem:[%s2332_s1 + $0x1f0] sm:$0xff]  }
  0x15   :  { %1609 = vmatpush3.bf16.msra.mxu1 %v1773_v19  ;;  %1588 = vmatprep.subr.bf16.mxu0 %v1774_v20  ;;  %v1816_v0 = vld [vmem:[%s2332_s1 + $0x130] sm:$0xff]   ;;  %v1818_v2 = vld [vmem:[%s2332_s1 + $0x178] sm:$0xff]   ;;  %v1826_v12 = vld [vmem:[%s2332_s1 + $0x240] sm:$0xff]  }
  0x16   :  { %1610 = vmatprep.subr.bf16.mxu1 %v1775_v21  ;;  %v1817_v1 = vld [vmem:[%s2332_s1 + $0x1b0] sm:$0xff]   ;;  %v1819_v3 = vld [vmem:[%s2332_s1 + $0x1f8] sm:$0xff]   ;;  %v1827_v13 = vld [vmem:[%s2332_s1 + $0x2c0] sm:$0xff]  }
  0x17   :  { %v1820_v4 = vld [vmem:[%s2332_s1 + $0x138] sm:$0xff]   ;;  %v17_v6 = vld [vmem:[%s2333_s0 + $0x10] sm:$0xff]  ;;  %v1828_v14 = vld [vmem:[%s2332_s1 + $0x200] sm:$0xff]  }
  0x18   :  { %1589 = vmatpush3.bf16.msra.mxu0 %v1776_v22  ;;  %v1821_v5 = vld [vmem:[%s2332_s1 + $0x1b8] sm:$0xff]   ;;  %v1438_v7 = vcombine.low %v17_v6, %v17_v6  ;;  %v1439_v8 = vcombine.high %v17_v6, %v17_v6  ;;  %v1829_v15 = vld [vmem:[%s2332_s1 + $0x280] sm:$0xff]   ;;  %v1830_v16 = vld [vmem:[%s2332_s1 + $0x248] sm:$0xff]  }
  0x19   :  { %1611 = vmatpush3.bf16.msra.mxu1 %v1777_v23  ;;  %1590 = vmatprep.subr.bf16.mxu0 %v1778_v24  ;;  %v18_v9 = vld [vmem:[%s2333_s0 + $0x18] sm:$0xff]  ;;  %v1831_v17 = vld [vmem:[%s2332_s1 + $0x2c8] sm:$0xff]   ;;  %v1834_v20 = vld [vmem:[%s2332_s1 + $0x250] sm:$0xff]  }
  0x1a   :  { %1612 = vmatprep.subr.bf16.mxu1 %v1779_v25  ;;  %v1440_v10 = vcombine.low %v18_v9, %v18_v9  ;;  %v1441_v11 = vcombine.high %v18_v9, %v18_v9  ;;  %v1832_v18 = vld [vmem:[%s2332_s1 + $0x208] sm:$0xff]   ;;  %v1835_v21 = vld [vmem:[%s2332_s1 + $0x2d0] sm:$0xff]   ;;  %v1838_v24 = vld [vmem:[%s2332_s1 + $0x258] sm:$0xff]  }
  0x1b   :  { %v1833_v19 = vld [vmem:[%s2332_s1 + $0x288] sm:$0xff]   ;;  %v1836_v22 = vld [vmem:[%s2332_s1 + $0x210] sm:$0xff]   ;;  %v1839_v25 = vld [vmem:[%s2332_s1 + $0x2d8] sm:$0xff]  }
  0x1c   :  { %1591 = vmatpush3.bf16.msra.mxu0 %v1780_v26  ;;  %v1837_v23 = vld [vmem:[%s2332_s1 + $0x290] sm:$0xff]   ;;  %v1840_v26 = vld [vmem:[%s2332_s1 + $0x218] sm:$0xff]   ;;  %v1846_v32 = vld [vmem:[%s2332_s1 + $0x268] sm:$0xff]  }
  0x1d   :  { %1613 = vmatpush3.bf16.msra.mxu1 %v1781_v27  ;;  %1592 = vmatprep.subr.bf16.mxu0 %v1782_v28  ;;  %v1841_v27 = vld [vmem:[%s2332_s1 + $0x298] sm:$0xff]   ;;  %v1842_v28 = vld [vmem:[%s2332_s1 + $0x260] sm:$0xff]   ;;  %v1847_v33 = vld [vmem:[%s2332_s1 + $0x2e8] sm:$0xff]  }
  0x1e   :  { %1614 = vmatprep.subr.bf16.mxu1 %v1783_v29  ;;  %v1843_v29 = vld [vmem:[%s2332_s1 + $0x2e0] sm:$0xff]   ;;  %v1849_v35 = vld [vmem:[%s2332_s1 + $0x2a8] sm:$0xff]   ;;  %v1851_v37 = vld [vmem:[%s2332_s1 + $0x2f0] sm:$0xff]  }
  0x1f   :  { %v1882_v6 = vld [vmem:[%s2332_s1 + $0x368] sm:$0xff]  }
  0x20   :  { %1593 = vmatpush3.bf16.msra.mxu0 %v1784_v30  ;;  %v1844_v30 = vld [vmem:[%s2332_s1 + $0x220] sm:$0xff]   ;;  %v1885_v9 = vld [vmem:[%s2332_s1 + $0x3a8] sm:$0xff]  }
  0x21   :  { %1615 = vmatpush3.bf16.msra.mxu1 %v1785_v31  ;;  %1622 = vmatprep.subr.bf16.mxu0 %v1790_v38  ;;  %v1845_v31 = vld [vmem:[%s2332_s1 + $0x2a0] sm:$0xff]   ;;  %v1852_v38 = vld [vmem:[%s2332_s1 + $0x230] sm:$0xff]  }
  0x22   :  { %1644 = vmatprep.subr.bf16.mxu1 %v1791_v39  ;;  %v1853_v39 = vld [vmem:[%s2332_s1 + $0x2b0] sm:$0xff]  }
  0x23   :  { %1141 = vmatmul.mubr.bf16.vlgmr.msra.gmra.mrb[0].mxu0 %v1434_v34  ;;  %v1848_v34 = vld [vmem:[%s2332_s1 + $0x228] sm:$0xff]  }
  0x24   :  { %1181 = vmatmul.mubr.bf16.vlgmr.msra.gmra.mrb[0].mxu1 %v1436_v36  ;;  %1623 = vmatpush3.bf16.msra.mxu0 %v1792_v40  ;;  %v1850_v36 = vld [vmem:[%s2332_s1 + $0x270] sm:$0xff]   ;;  %v1854_v40 = vld [vmem:[%s2332_s1 + $0x278] sm:$0xff]  }
  0x25   :  { %1645 = vmatpush3.bf16.msra.mxu1 %v1793_v41  ;;  %1624 = vmatprep.subr.bf16.mxu0 %v1794_v42  ;;  %v1855_v41 = vld [vmem:[%s2332_s1 + $0x2f8] sm:$0xff]  }
  0x26   :  { %1646 = vmatprep.subr.bf16.mxu1 %v1795_v43  ;;  %1220 = vmatprep.mubr.bf16.mxu0 %v1439_v8  ;;  %v1856_v42 = vld [vmem:[%s2332_s1 + $0x238] sm:$0xff]   ;;  %v1884_v8 = vld [vmem:[%s2332_s1 + $0x328] sm:$0xff]  }
  0x27   :  { %1260 = vmatprep.mubr.bf16.mxu1 %v1441_v11  ;;  %v1857_v43 = vld [vmem:[%s2332_s1 + $0x2b8] sm:$0xff]   ;;  %v1887_v11 = vld [vmem:[%s2332_s1 + $0x3f0] sm:$0xff]  }
  0x28   :  { %1625 = vmatpush3.bf16.msra.mxu0 %v1796_v44  ;;  %v19_v44 = vld [vmem:[%s2333_s0 + $0x20] sm:$0xff] }
  0x29   :  { %1647 = vmatpush3.bf16.msra.mxu1 %v1797_v45  ;;  %1626 = vmatprep.subr.bf16.mxu0 %v1798_v46  ;;  %v20_v45 = vld [vmem:[%s2333_s0 + $0x28] sm:$0xff]  ;;  %v1442_v46 = vcombine.low %v19_v44, %v19_v44 }
  0x2a   :  { %1648 = vmatprep.subr.bf16.mxu1 %v1799_v47  ;;  %v1443_v47 = vcombine.high %v19_v44, %v19_v44 }
  0x2c   :  { %1627 = vmatpush3.bf16.msra.mxu0 %v1800_v48  ;;  %v1444_v48 = vcombine.low %v20_v45, %v20_v45 }
  0x2d   :  { %1649 = vmatpush3.bf16.msra.mxu1 %v1801_v49  ;;  %1628 = vmatprep.subr.bf16.mxu0 %v1802_v50  ;;  %v1445_v49 = vcombine.high %v20_v45, %v20_v45  ;;  %v1862_v50 = vld [vmem:[%s2332_s1 + $0x340] sm:$0xff]  }
  0x2e   :  { %1650 = vmatprep.subr.bf16.mxu1 %v1803_v51  ;;  %v1863_v51 = vld [vmem:[%s2332_s1 + $0x3c0] sm:$0xff]  }
  0x30   :  { %1629 = vmatpush3.bf16.msra.mxu0 %v1804_v52  ;;  %v1864_v52 = vld [vmem:[%s2332_s1 + $0x300] sm:$0xff]  }
  0x31   :  { %1651 = vmatpush3.bf16.msra.mxu1 %v1805_v53  ;;  %1630 = vmatprep.subr.bf16.mxu0 %v1806_v54  ;;  %v1865_v53 = vld [vmem:[%s2332_s1 + $0x380] sm:$0xff]   ;;  %v1866_v54 = vld [vmem:[%s2332_s1 + $0x348] sm:$0xff]  }
  0x32   :  { %1652 = vmatprep.subr.bf16.mxu1 %v1807_v55  ;;  %v1867_v55 = vld [vmem:[%s2332_s1 + $0x3c8] sm:$0xff]  }
  0x34   :  { %1631 = vmatpush3.bf16.msra.mxu0 %v1808_v56  ;;  %v1868_v56 = vld [vmem:[%s2332_s1 + $0x308] sm:$0xff]  }
  0x35   :  { %1653 = vmatpush3.bf16.msra.mxu1 %v1809_v57  ;;  %1632 = vmatprep.subr.bf16.mxu0 %v1810_v58  ;;  %v1869_v57 = vld [vmem:[%s2332_s1 + $0x388] sm:$0xff]   ;;  %v1870_v58 = vld [vmem:[%s2332_s1 + $0x350] sm:$0xff]  }
  0x36   :  { %1654 = vmatprep.subr.bf16.mxu1 %v1811_v59  ;;  %v1871_v59 = vld [vmem:[%s2332_s1 + $0x3d0] sm:$0xff]  }
  0x38   :  { %1633 = vmatpush3.bf16.msra.mxu0 %v1812_v60  ;;  %v1872_v60 = vld [vmem:[%s2332_s1 + $0x310] sm:$0xff]  }
  0x39   :  { %1655 = vmatpush3.bf16.msra.mxu1 %v1813_v61  ;;  %1634 = vmatprep.subr.bf16.mxu0 %v1814_v62  ;;  %v1873_v61 = vld [vmem:[%s2332_s1 + $0x390] sm:$0xff]   ;;  %v1874_v62 = vld [vmem:[%s2332_s1 + $0x358] sm:$0xff]  }
  0x3a   :  { %1656 = vmatprep.subr.bf16.mxu1 %v1815_v63  ;;  %v1875_v63 = vld [vmem:[%s2332_s1 + $0x3d8] sm:$0xff]  }
  0x3c   :  { %1635 = vmatpush3.bf16.msra.mxu0 %v1816_v0  ;;  %v1876_v0 = vld [vmem:[%s2332_s1 + $0x318] sm:$0xff]  }
  0x3d   :  { %1657 = vmatpush3.bf16.msra.mxu1 %v1817_v1  ;;  %1636 = vmatprep.subr.bf16.mxu0 %v1818_v2  ;;  %v1877_v1 = vld [vmem:[%s2332_s1 + $0x398] sm:$0xff]   ;;  %v1878_v2 = vld [vmem:[%s2332_s1 + $0x360] sm:$0xff]  }
  0x3e   :  { %1658 = vmatprep.subr.bf16.mxu1 %v1819_v3  ;;  %v1879_v3 = vld [vmem:[%s2332_s1 + $0x3e0] sm:$0xff]  }
  0x40   :  { %1637 = vmatpush3.bf16.msra.mxu0 %v1820_v4  ;;  %v1880_v4 = vld [vmem:[%s2332_s1 + $0x320] sm:$0xff]  }
  0x41   :  { %1659 = vmatpush3.bf16.msra.mxu1 %v1821_v5  ;;  %1666 = vmatprep.subr.bf16.mxu0 %v1826_v12  ;;  %v1881_v5 = vld [vmem:[%s2332_s1 + $0x3a0] sm:$0xff]   ;;  %v1888_v12 = vld [vmem:[%s2332_s1 + $0x330] sm:$0xff]  }
  0x42   :  { %1688 = vmatprep.subr.bf16.mxu1 %v1827_v13  ;;  %v1889_v13 = vld [vmem:[%s2332_s1 + $0x3b0] sm:$0xff]  }
  0x43   :  { %1221 = vmatmul.mubr.bf16.vlgmr.msra.gmra.mrb[4].mxu0 %v1438_v7  ;;  %v1883_v7 = vld [vmem:[%s2332_s1 + $0x3e8] sm:$0xff]  }
  0x44   :  { %1261 = vmatmul.mubr.bf16.vlgmr.msra.gmra.mrb[4].mxu1 %v1440_v10  ;;  %1667 = vmatpush3.bf16.msra.mxu0 %v1828_v14  ;;  %v1886_v10 = vld [vmem:[%s2332_s1 + $0x370] sm:$0xff]   ;;  %v1890_v14 = vld [vmem:[%s2332_s1 + $0x378] sm:$0xff]  }
  0x45   :  { %1689 = vmatpush3.bf16.msra.mxu1 %v1829_v15  ;;  %1668 = vmatprep.subr.bf16.mxu0 %v1830_v16  ;;  %v1891_v15 = vld [vmem:[%s2332_s1 + $0x3f8] sm:$0xff]  }
  0x46   :  { %1690 = vmatprep.subr.bf16.mxu1 %v1831_v17  ;;  %1300 = vmatprep.mubr.bf16.mxu0 %v1443_v47  ;;  %v1892_v16 = vld [vmem:[%s2332_s1 + $0x338] sm:$0xff]  }
  0x47   :  { %1340 = vmatprep.mubr.bf16.mxu1 %v1445_v49  ;;  %v1893_v17 = vld [vmem:[%s2332_s1 + $0x3b8] sm:$0xff]  }
  0x48   :  { %1669 = vmatpush3.bf16.msra.mxu0 %v1832_v18  ;;  %v21_v18 = vld [vmem:[%s2333_s0 + $0x30] sm:$0xff] }
  0x49   :  { %1691 = vmatpush3.bf16.msra.mxu1 %v1833_v19  ;;  %1670 = vmatprep.subr.bf16.mxu0 %v1834_v20  ;;  %v22_v19 = vld [vmem:[%s2333_s0 + $0x38] sm:$0xff]  ;;  %v1446_v20 = vcombine.low %v21_v18, %v21_v18 }
  0x4a   :  { %1692 = vmatprep.subr.bf16.mxu1 %v1835_v21  ;;  %v1447_v21 = vcombine.high %v21_v18, %v21_v18 }
  0x4c   :  { %1671 = vmatpush3.bf16.msra.mxu0 %v1836_v22  ;;  %v1448_v22 = vcombine.low %v22_v19, %v22_v19 }
  0x4d   :  { %1693 = vmatpush3.bf16.msra.mxu1 %v1837_v23  ;;  %1672 = vmatprep.subr.bf16.mxu0 %v1838_v24  ;;  %v1449_v23 = vcombine.high %v22_v19, %v22_v19 }
  0x4e   :  { %1694 = vmatprep.subr.bf16.mxu1 %v1839_v25 }
  0x50   :  { %1673 = vmatpush3.bf16.msra.mxu0 %v1840_v26  ;;  %v1433_v26 = vld [vmem:[%s2334_s2] ss:$0 sm:$0xff] }
  0x51   :  { %1695 = vmatpush3.bf16.msra.mxu1 %v1841_v27  ;;  %1674 = vmatprep.subr.bf16.mxu0 %v1842_v28 }
  0x52   :  { %1696 = vmatprep.subr.bf16.mxu1 %v1843_v29 }
  0x54   :  { %1675 = vmatpush3.bf16.msra.mxu0 %v1844_v30 }
  0x55   :  { %1697 = vmatpush3.bf16.msra.mxu1 %v1845_v31  ;;  %1676 = vmatprep.subr.bf16.mxu0 %v1846_v32 }
  0x56   :  { %1698 = vmatprep.subr.bf16.mxu1 %v1847_v33 }
  0x58   :  { %1677 = vmatpush3.bf16.msra.mxu0 %v1848_v34 }
  0x59   :  { %1699 = vmatpush3.bf16.msra.mxu1 %v1849_v35  ;;  %1678 = vmatprep.subr.bf16.mxu0 %v1850_v36 }
  0x5a   :  { %1700 = vmatprep.subr.bf16.mxu1 %v1851_v37 }
  0x5c   :  { %1679 = vmatpush3.bf16.msra.mxu0 %v1852_v38 }
  0x5d   :  { %1701 = vmatpush3.bf16.msra.mxu1 %v1853_v39  ;;  %1680 = vmatprep.subr.bf16.mxu0 %v1854_v40 }
  0x5e   :  { %1702 = vmatprep.subr.bf16.mxu1 %v1855_v41 }
  0x60   :  { %1681 = vmatpush3.bf16.msra.mxu0 %v1856_v42 }
  0x61   :  { %1703 = vmatpush3.bf16.msra.mxu1 %v1857_v43  ;;  %1710 = vmatprep.subr.bf16.mxu0 %v1862_v50 }
  0x62   :  { %1732 = vmatprep.subr.bf16.mxu1 %v1863_v51 }
  0x63   :  { %1301 = vmatmul.mubr.bf16.vlgmr.msra.gmra.mrb[8].mxu0 %v1442_v46 }
  0x64   :  { %1341 = vmatmul.mubr.bf16.vlgmr.msra.gmra.mrb[8].mxu1 %v1444_v48  ;;  %1711 = vmatpush3.bf16.msra.mxu0 %v1864_v52 }
  0x65   :  { %1733 = vmatpush3.bf16.msra.mxu1 %v1865_v53  ;;  %1712 = vmatprep.subr.bf16.mxu0 %v1866_v54 }
  0x66   :  { %1734 = vmatprep.subr.bf16.mxu1 %v1867_v55  ;;  %1380 = vmatprep.mubr.bf16.mxu0 %v1447_v21 }
  0x67   :  { %1420 = vmatprep.mubr.bf16.mxu1 %v1449_v23 }
  0x68   :  { %1713 = vmatpush3.bf16.msra.mxu0 %v1868_v56 }
  0x69   :  { %1735 = vmatpush3.bf16.msra.mxu1 %v1869_v57  ;;  %1714 = vmatprep.subr.bf16.mxu0 %v1870_v58 }
  0x6a   :  { %1736 = vmatprep.subr.bf16.mxu1 %v1871_v59 }
  0x6c   :  { %1715 = vmatpush3.bf16.msra.mxu0 %v1872_v60 }
  0x6d   :  { %1737 = vmatpush3.bf16.msra.mxu1 %v1873_v61  ;;  %1716 = vmatprep.subr.bf16.mxu0 %v1874_v62 }
  0x6e   :  { %1738 = vmatprep.subr.bf16.mxu1 %v1875_v63 }
  0x70   :  { %1717 = vmatpush3.bf16.msra.mxu0 %v1876_v0 }
  0x71   :  { %1739 = vmatpush3.bf16.msra.mxu1 %v1877_v1  ;;  %1718 = vmatprep.subr.bf16.mxu0 %v1878_v2 }
  0x72   :  { %1740 = vmatprep.subr.bf16.mxu1 %v1879_v3 }
  0x74   :  { %1719 = vmatpush3.bf16.msra.mxu0 %v1880_v4 }
  0x75   :  { %1741 = vmatpush3.bf16.msra.mxu1 %v1881_v5  ;;  %1720 = vmatprep.subr.bf16.mxu0 %v1882_v6 }
  0x76   :  { %1742 = vmatprep.subr.bf16.mxu1 %v1883_v7 }
  0x78   :  { %1721 = vmatpush3.bf16.msra.mxu0 %v1884_v8 }
  0x79   :  { %1743 = vmatpush3.bf16.msra.mxu1 %v1885_v9  ;;  %1722 = vmatprep.subr.bf16.mxu0 %v1886_v10 }
  0x7a   :  { %1744 = vmatprep.subr.bf16.mxu1 %v1887_v11 }
  0x7c   :  { %1723 = vmatpush3.bf16.msra.mxu0 %v1888_v12 }
  0x7d   :  { %1745 = vmatpush3.bf16.msra.mxu1 %v1889_v13  ;;  %1724 = vmatprep.subr.bf16.mxu0 %v1890_v14 }
  0x7e   :  { %1746 = vmatprep.subr.bf16.mxu1 %v1891_v15 }
  0x80   :  { %1725 = vmatpush3.bf16.msra.mxu0 %v1892_v16 }
  0x81   :  { %1747 = vmatpush3.bf16.msra.mxu1 %v1893_v17 }
  0x83   :  { %1381 = vmatmul.mubr.bf16.vlgmr.msra.gmra.mrb[12].mxu0 %v1446_v20 }
  0x84   :  { %1421 = vmatmul.mubr.bf16.vlgmr.msra.gmra.mrb[12].mxu1 %v1448_v22 }
  0xf6   :  { %v1594_v24 = vpop.f32.mrb[0].mxu0 }
  0xf7   :  { %v1616_v25 = vpop.f32.mrb[0].mxu1  ;;  %v1595_v27 = vpop.f32.mrb[1].mxu0 }
  0xf8   :  { %v1617_v28 = vpop.f32.mrb[1].mxu1  ;;  %v1596_v29 = vadd.f32 %v1595_v27, %v1594_v24  ;;  %v1597_v31 = vpop.f32.mrb[2].mxu0 }
  0xf9   :  { %v1618_v30 = vadd.f32 %v1617_v28, %v1616_v25  ;;  %v1619_v32 = vpop.f32.mrb[2].mxu1  ;;  %v1598_v33 = vpop.f32.mrb[3].mxu0 }
  0xfa   :  { %v1620_v34 = vpop.f32.mrb[3].mxu1  ;;  %v1143_v35 = vadd.f32 %v1596_v29, %v1433_v26 }
  0xfc   :  { %v1183_v36 = vadd.f32 %v1618_v30, %v1143_v35 }
 0x116   :  { %v1638_v37 = vpop.f32.mrb[4].mxu0 }
 0x117   :  { %v1660_v38 = vpop.f32.mrb[4].mxu1  ;;  %v1639_v39 = vpop.f32.mrb[5].mxu0 }
 0x118   :  { %v1661_v40 = vpop.f32.mrb[5].mxu1  ;;  %v1640_v41 = vadd.f32 %v1639_v39, %v1638_v37  ;;  %v1641_v43 = vpop.f32.mrb[6].mxu0 }
 0x119   :  { %v1662_v42 = vadd.f32 %v1661_v40, %v1660_v38  ;;  %v1663_v44 = vpop.f32.mrb[6].mxu1  ;;  %v1642_v45 = vpop.f32.mrb[7].mxu0 }
 0x11a   :  { %v1664_v46 = vpop.f32.mrb[7].mxu1  ;;  %v1223_v47 = vadd.f32 %v1640_v41, %v1183_v36 }
 0x11c   :  { %v1263_v48 = vadd.f32 %v1662_v42, %v1223_v47 }
 0x136   :  { %v1682_v49 = vpop.f32.mrb[8].mxu0 }
 0x137   :  { %v1704_v50 = vpop.f32.mrb[8].mxu1  ;;  %v1683_v51 = vpop.f32.mrb[9].mxu0 }
 0x138   :  { %v1684_v52 = vadd.f32 %v1683_v51, %v1682_v49  ;;  %v1705_v53 = vpop.f32.mrb[9].mxu1  ;;  %v1685_v54 = vpop.f32.mrb[10].mxu0 }
 0x139   :  { %v1706_v55 = vadd.f32 %v1705_v53, %v1704_v50  ;;  %v1707_v56 = vpop.f32.mrb[10].mxu1  ;;  %v1686_v57 = vpop.f32.mrb[11].mxu0 }
 0x13a   :  { %v1303_v58 = vadd.f32 %v1684_v52, %v1263_v48  ;;  %v1708_v59 = vpop.f32.mrb[11].mxu1 }
 0x13c   :  { %v1343_v60 = vadd.f32 %v1706_v55, %v1303_v58 }
 0x156   :  { %v1726_v61 = vpop.f32.mrb[12].mxu0 }
 0x157   :  { %v1748_v62 = vpop.f32.mrb[12].mxu1  ;;  %v1727_v63 = vpop.f32.mrb[13].mxu0 }
 0x158   :  { %v1728_v0 = vadd.f32 %v1727_v63, %v1726_v61  ;;  %v1749_v1 = vpop.f32.mrb[13].mxu1  ;;  %v1729_v2 = vpop.f32.mrb[14].mxu0 }
 0x159   :  { %v1750_v3 = vadd.f32 %v1749_v1, %v1748_v62  ;;  %v1751_v4 = vpop.f32.mrb[14].mxu1  ;;  %v1730_v5 = vpop.f32.mrb[15].mxu0 }
 0x15a   :  { %v1383_v6 = vadd.f32 %v1728_v0, %v1343_v60  ;;  %v1752_v7 = vpop.f32.mrb[15].mxu1 }
 0x15c   :  { %v1423_v8 = vadd.f32 %v1750_v3, %v1383_v6 }
 0x15e   :  { %1428 = vst [vmem:[%s2335_s3] sm:$0xff] %v1423_v8 }

</bundles_post_ra>
